<compile_context>
chip_gen: v7x
topology: tpu7x:2x2x1
jax: 0.10.0
libtpu: 0.0.40
codegen_flags: <defaults>
</compile_context>

<pallas_src>
import functools

import jax
import jax.numpy as jnp
from jax.experimental import pallas as pl
from jax.experimental.pallas import tpu as pltpu

LANE = 128  # TPU lane width; channel dims are zero-padded to a multiple of this.


def _round_up(v, m):
    return (v + m - 1) // m * m


def _pick_row_chunk(h, pref=8):
    for r in (pref, 4, 2, 1):
        if h % r == 0:
            return r
    return 1


# ----------------------------------------------------------------------------- kernel


def _fused_res_block_kernel(*refs, n_blocks, H, W, C, Wp, R):
    """Fused unetResConv2 forward for one image (grid step).

    refs = x, w_kd, b_kd, (w_i, b_i) * n_blocks, o, res, slab_a, slab_b
      x      : (1, H*W, Cin)  bf16
      w_kd   : (Cin, C)       bf16          b_kd : (1, C) f32
      w_i    : (3, 3*C, C)    bf16 (ky, kx*C+cin, cout), BN folded
      b_i    : (1, C)         f32  (conv bias + BN shift, folded)
      o      : (1, H, W, C)   f32
      res    : (H*W, C)       bf16 scratch  (keep_dim output = residual)
      slab_a/b: ((H+2)*Wp, 3*C) bf16 scratch (padded, kx-pre-shifted conv input)
    """
    x_ref, wkd_ref, bkd_ref = refs[0], refs[1], refs[2]
    blk_refs = refs[3:3 + 2 * n_blocks]
    o_ref = refs[3 + 2 * n_blocks]
    res_ref = refs[4 + 2 * n_blocks]
    slab_a = refs[5 + 2 * n_blocks]
    slab_b = refs[6 + 2 * n_blocks]

    # Border-only zeroing: only the top / bottom pad rows of each slab are zeroed (the
    # left/right boundary zeros are baked into every stored row below).  Done every grid
    # step (NOT guarded by program_id) so it stays megacore-safe.
    zero_pad = jnp.zeros((Wp, 3 * C), jnp.bfloat16)
    for slab in (slab_a, slab_b):
        slab[pl.ds(0, Wp), :] = zero_pad
        slab[pl.ds((H + 1) * Wp, Wp), :] = zero_pad

    zrow = jnp.zeros((1, C), jnp.float32)

    def shifted_row(rowf):
        """(W, C) f32 row -> (W, 3C) bf16 [left-shift | centre | right-shift] triple."""
        left = jnp.concatenate([zrow, rowf[:W - 1, :]], axis=0)    # input(.., c-1), kx=0
        right = jnp.concatenate([rowf[1:, :], zrow], axis=0)       # input(.., c+1), kx=2
        return jnp.concatenate([left, rowf, right], axis=1).astype(jnp.bfloat16)

    # ---- stage 0: keep_dim 1x1 conv; fills the residual scratch and slab_a -----------
    for h0 in range(0, H, R):
        xg = x_ref[0, pl.ds(h0 * W, R * W), :]                      # (R*W, Cin) bf16
        rg = jnp.dot(xg, wkd_ref[...], preferred_element_type=jnp.float32)
        rg = rg + bkd_ref[...]
        for rl in range(R):
            h = h0 + rl
            rowf = rg[rl * W:(rl + 1) * W, :]                       # (W, C) f32
            res_ref[pl.ds(h * W, W), :] = rowf.astype(jnp.bfloat16)
            slab_a[pl.ds((h + 1) * Wp, W), :] = shifted_row(rowf)

    # ---- n_blocks x (3x3 conv + folded BN [+ ReLU]) -----------------------------------
    src, dst = slab_a, slab_b
    for b in range(n_blocks):
        w_ref = blk_refs[2 * b]
        b_ref = blk_refs[2 * b + 1]
        last = b == n_blocks - 1
        for h0 in range(0, H, R):                                   # R output rows / chunk
            m0 = h0 * Wp
            m = R * Wp
            # 3 MXU matmuls, K = 3C; SSA accumulator (register / MRB), written once.
            acc = jnp.dot(src[pl.ds(m0, m), :], w_ref[0],
                          preferred_element_type=jnp.float32)
            acc += jnp.dot(src[pl.ds(m0 + Wp, m), :], w_ref[1],
                           preferred_element_type=jnp.float32)
            acc += jnp.dot(src[pl.ds(m0 + 2 * Wp, m), :], w_ref[2],
                           preferred_element_type=jnp.float32)
            acc = acc + b_ref[...]                                   # conv bias + BN shift
            # Row-wise epilogue: aligned (W, C) slices, aligned full-width stores.
            for rl in range(R):
                h = h0 + rl
                rowf = acc[rl * Wp:rl * Wp + W, :]
                if last:
                    res_f = res_ref[pl.ds(h * W, W), :].astype(jnp.float32)
                    o_ref[0, h] = jnp.maximum(rowf + res_f, 0.0).astype(o_ref.dtype)
                else:
                    rowf = jnp.maximum(rowf, 0.0)
                    dst[pl.ds((h + 1) * Wp, W), :] = shifted_row(rowf)
        src, dst = dst, src


# ---------------------------------------------------------------------------- wrapper


@functools.partial(jax.jit, static_argnums=(2,))
def unet_res_conv2_forward(x_nchw, params, out_size):
    """Forward of unetResConv2. Input/output NCHW (PyTorch convention); NHWC inside."""
    x = jnp.transpose(x_nchw, (0, 2, 3, 1))                 # NCHW -> NHWC, once
    N, H, W, cin = x.shape
    cin_p, cp = params["w_kd"].shape
    n_blocks = len(params["blocks"])

    Wp = _round_up(W, 8)                                    # 8-aligned flattened row pitch
    R = _pick_row_chunk(H)                                  # output rows per MXU chunk

    xp = jnp.pad(x, ((0, 0), (0, 0), (0, 0), (0, cin_p - cin))).astype(jnp.bfloat16)
    xp = xp.reshape(N, H * W, cin_p)

    kernel = functools.partial(_fused_res_block_kernel, n_blocks=n_blocks,
                               H=H, W=W, C=cp, Wp=Wp, R=R)

    in_specs = [
        pl.BlockSpec((1, H * W, cin_p), lambda n: (n, 0, 0)),
        pl.BlockSpec((cin_p, cp), lambda n: (0, 0)),
        pl.BlockSpec((1, cp), lambda n: (0, 0)),
    ]
    inputs = [xp, params["w_kd"], params["b_kd"]]
    for blk in params["blocks"]:
        in_specs.append(pl.BlockSpec((3, 3 * cp, cp), lambda n: (0, 0, 0)))
        in_specs.append(pl.BlockSpec((1, cp), lambda n: (0, 0)))
        inputs.extend([blk["w"], blk["b"]])

    out = pl.pallas_call(
        kernel,
        out_shape=jax.ShapeDtypeStruct((N, H, W, cp), jnp.float32),
        grid=(N,),
        in_specs=in_specs,
        out_specs=pl.BlockSpec((1, H, W, cp), lambda n: (n, 0, 0, 0)),
        scratch_shapes=[
            pltpu.VMEM((H * W, cp), jnp.bfloat16),           # residual (keep_dim output)
            pltpu.VMEM(((H + 2) * Wp, 3 * cp), jnp.bfloat16),  # padded shifted slab A
            pltpu.VMEM(((H + 2) * Wp, 3 * cp), jnp.bfloat16),  # padded shifted slab B
        ],
        compiler_params=pltpu.CompilerParams(
            dimension_semantics=("parallel",),
            vmem_limit_bytes=32 * 1024 * 1024),
    )(*inputs)

    out = out[..., :out_size]                                # drop channel padding
    return jnp.transpose(out, (0, 3, 1, 2))                  # NHWC -> NCHW


# ------------------------------------------------------------------------ params / init


def init_unet_res_conv2_params(key, in_size, out_size, n=2, ks=3, eps=1e-5):
    """Deterministic 'kaiming-ish' init; eval-mode BN + conv bias folded into weights/bias."""
    assert ks == 3, "kernel is specialized for 3x3 convs (stride=1, padding=1)"
    cin_p = _round_up(in_size, LANE)
    cout_p = _round_up(out_size, LANE)

    key, k_w1, k_b1 = jax.random.split(key, 3)
    w_kd = jax.random.normal(k_w1, (in_size, out_size), jnp.float32) * (2.0 / in_size) ** 0.5
    b_kd = 0.01 * jax.random.normal(k_b1, (out_size,), jnp.float32)
    w_kd_p = jnp.zeros((cin_p, cout_p), jnp.float32).at[:in_size, :out_size].set(w_kd)
    b_kd_p = jnp.zeros((1, cout_p), jnp.float32).at[0, :out_size].set(b_kd)

    blocks = []
    for _ in range(n):
        key, kw, kb, kg, kbt, km, kv = jax.random.split(key, 7)
        fan_in = out_size * ks * ks
        w = jax.random.normal(kw, (ks, ks, out_size, out_size), jnp.float32) * (2.0 / fan_in) ** 0.5
        b = 0.01 * jax.random.normal(kb, (out_size,), jnp.float32)
        gamma = 1.0 + 0.1 * jax.random.normal(kg, (out_size,), jnp.float32)
        beta = 0.1 * jax.random.normal(kbt, (out_size,), jnp.float32)
        mean = 0.1 * jax.random.normal(km, (out_size,), jnp.float32)
        var = 1.0 + 0.1 * jax.random.uniform(kv, (out_size,), jnp.float32)
        scale = gamma / jnp.sqrt(var + eps)
        w_f = w * scale                                  # fold BN scale into weights
        b_f = (b - mean) * scale + beta                  # fold conv bias + BN shift
        w_p = jnp.zeros((ks, ks, cout_p, cout_p), jnp.float32)
        w_p = w_p.at[:, :, :out_size, :out_size].set(w_f)
        # (ky, kx, cin, cout) -> (ky, kx*C + cin, cout): matches the kernel's 3C lane order.
        w_p = w_p.reshape(ks, ks * cout_p, cout_p)
        b_p = jnp.zeros((1, cout_p), jnp.float32).at[0, :out_size].set(b_f)
        blocks.append({"w": w_p.astype(jnp.bfloat16), "b": b_p})

    return {"w_kd": w_kd_p.astype(jnp.bfloat16), "b_kd": b_kd_p, "blocks": tuple(blocks)}


# --------------------------------------------------------------------- pure-JAX reference


def _reference_forward(x_nchw, params, out_size):
    """lax.conv reference using the same folded/padded bf16 params (bf16 storage mimicked)."""
    x = jnp.transpose(x_nchw, (0, 2, 3, 1)).astype(jnp.float32)
    cin_p, cp = params["w_kd"].shape
    xp = jnp.pad(x, ((0, 0), (0, 0), (0, 0), (0, cin_p - x.shape[-1])))
    xp = xp.astype(jnp.bfloat16).astype(jnp.float32)

    r = jnp.einsum("nhwc,cd->nhwd", xp, params["w_kd"].astype(jnp.float32),
                   precision=jax.lax.Precision.HIGHEST) + params["b_kd"][0]
    r = r.astype(jnp.bfloat16).astype(jnp.float32)       # activations stored in bf16

    h = r
    nb = len(params["blocks"])
    for i, blk in enumerate(params["blocks"]):
        w = blk["w"].astype(jnp.float32).reshape(3, 3, cp, cp)   # back to HWIO
        y = jax.lax.conv_general_dilated(
            h, w, window_strides=(1, 1), padding="SAME",
            dimension_numbers=("NHWC", "HWIO", "NHWC"),
            precision=jax.lax.Precision.HIGHEST) + blk["b"][0]
        if i != nb - 1:
            y = jnp.maximum(y, 0.0).astype(jnp.bfloat16).astype(jnp.float32)
        else:
            y = jnp.maximum(y + r, 0.0)
        h = y
    out = h[..., :out_size]
    return jnp.transpose(out, (0, 3, 1, 2))


# ------------------------------------------------------------------------------- main


if __name__ == "__main__":
    key = jax.random.PRNGKey(0)
    key, kx = jax.random.split(key)

    N, Cin, H, W = 2, 4, 16, 16
    Cout = 8
    x = jax.random.normal(kx, (N, Cin, H, W), jnp.float32)

    params = init_unet_res_conv2_params(key, in_size=Cin, out_size=Cout, n=2, ks=3)

    out = unet_res_conv2_forward(x, params, Cout)
    out = jax.block_until_ready(out)

    assert out.shape == (N, Cout, H, W), out.shape
    assert out.dtype == jnp.float32
    assert bool(jnp.all(jnp.isfinite(out)))
    assert bool(jnp.all(out >= 0.0))         # final op is ReLU

    # Numerical check against a pure-JAX reference (loose tolerance: bf16 activations).
    ref = _reference_forward(x, params, Cout)
    assert bool(jnp.allclose(out, ref, rtol=0.1, atol=0.1)), \
        float(jnp.max(jnp.abs(out - ref)))

    print("KERNEL_OK")
</pallas_src>

<mosaic_0001>
module attributes {stable_mosaic.version = 11 : i64} {
  func.func @_fused_res_block_kernel(%arg0: i32, %arg1: memref<1x256x128xbf16, #tpu.memory_space<vmem>>, %arg2: memref<128x128xbf16, #tpu.memory_space<vmem>>, %arg3: memref<1x128xf32, #tpu.memory_space<vmem>>, %arg4: memref<3x384x128xbf16, #tpu.memory_space<vmem>>, %arg5: memref<1x128xf32, #tpu.memory_space<vmem>>, %arg6: memref<3x384x128xbf16, #tpu.memory_space<vmem>>, %arg7: memref<1x128xf32, #tpu.memory_space<vmem>>, %arg8: memref<1x16x16x128xf32, #tpu.memory_space<vmem>>, %arg9: memref<256x128xbf16, #tpu.memory_space<vmem>>, %arg10: memref<288x384xbf16, #tpu.memory_space<vmem>>, %arg11: memref<288x384xbf16, #tpu.memory_space<vmem>>) attributes {dimension_semantics = [#tpu.dimension_semantics<parallel>], iteration_bounds = array<i64: 2>, scalar_prefetch = 0 : i64, scratch_operands = 3 : i64, tpu.core_type = #tpu.core_type<tc>, window_params = [{transform_indices = @transform_0, window_bounds = array<i64: 1, 256, 128>}, {pipeline_mode = #tpu.pipeline_mode<synchronous>, transform_indices = @transform_1, window_bounds = array<i64: 128, 128>}, {pipeline_mode = #tpu.pipeline_mode<synchronous>, transform_indices = @transform_2, window_bounds = array<i64: 1, 128>}, {pipeline_mode = #tpu.pipeline_mode<synchronous>, transform_indices = @transform_3, window_bounds = array<i64: 3, 384, 128>}, {pipeline_mode = #tpu.pipeline_mode<synchronous>, transform_indices = @transform_4, window_bounds = array<i64: 1, 128>}, {pipeline_mode = #tpu.pipeline_mode<synchronous>, transform_indices = @transform_5, window_bounds = array<i64: 3, 384, 128>}, {pipeline_mode = #tpu.pipeline_mode<synchronous>, transform_indices = @transform_6, window_bounds = array<i64: 1, 128>}, {transform_indices = @transform_7, window_bounds = array<i64: 1, 16, 16, 128>}]} {
    %cst = arith.constant 0.000000e+00 : bf16
    %0 = vector.broadcast %cst : bf16 to vector<16x384xbf16>
    %c0 = arith.constant 0 : index
    %c0_0 = arith.constant 0 : index
    %1 = vector.load %arg10[%c0, %c0_0] : memref<288x384xbf16, #tpu.memory_space<vmem>>, vector<16x384xbf16>
    tpu.vector_store %arg10[%c0, %c0_0], %0 {strides = array<i32>} : memref<288x384xbf16, #tpu.memory_space<vmem>>, vector<16x384xbf16>,
    %c272 = arith.constant 272 : index
    %c0_1 = arith.constant 0 : index
    %2 = vector.load %arg10[%c272, %c0_1] : memref<288x384xbf16, #tpu.memory_space<vmem>>, vector<16x384xbf16>
    tpu.vector_store %arg10[%c272, %c0_1], %0 {strides = array<i32>} : memref<288x384xbf16, #tpu.memory_space<vmem>>, vector<16x384xbf16>,
    %c0_2 = arith.constant 0 : index
    %c0_3 = arith.constant 0 : index
    %3 = vector.load %arg11[%c0_2, %c0_3] : memref<288x384xbf16, #tpu.memory_space<vmem>>, vector<16x384xbf16>
    tpu.vector_store %arg11[%c0_2, %c0_3], %0 {strides = array<i32>} : memref<288x384xbf16, #tpu.memory_space<vmem>>, vector<16x384xbf16>,
    %c272_4 = arith.constant 272 : index
    %c0_5 = arith.constant 0 : index
    %4 = vector.load %arg11[%c272_4, %c0_5] : memref<288x384xbf16, #tpu.memory_space<vmem>>, vector<16x384xbf16>
    tpu.vector_store %arg11[%c272_4, %c0_5], %0 {strides = array<i32>} : memref<288x384xbf16, #tpu.memory_space<vmem>>, vector<16x384xbf16>,
    %cst_6 = arith.constant 0.000000e+00 : f32
    %5 = vector.broadcast %cst_6 : f32 to vector<1x128xf32>
    %c0_7 = arith.constant 0 : index
    %c0_8 = arith.constant 0 : index
    %c0_9 = arith.constant 0 : index
    %6 = vector.load %arg1[%c0_7, %c0_8, %c0_9] : memref<1x256x128xbf16, #tpu.memory_space<vmem>>, vector<1x128x128xbf16>
    %7 = vector.shape_cast %6 : vector<1x128x128xbf16> to vector<128x128xbf16>
    %c0_10 = arith.constant 0 : index
    %c0_11 = arith.constant 0 : index
    %8 = vector.load %arg2[%c0_10, %c0_11] : memref<128x128xbf16, #tpu.memory_space<vmem>>, vector<128x128xbf16>
    %cst_12 = arith.constant dense<0.000000e+00> : vector<128x128xf32>
    %9 = tpu.matmul %7, %8, %cst_12 {dimension_numbers = #tpu.dot_dimension_numbers<[1], [0], [0], [1], [0, 0, 1, 1], [], []>} : vector<128x128xbf16>, vector<128x128xbf16>, vector<128x128xf32> -> vector<128x128xf32>
    %c0_13 = arith.constant 0 : index
    %c0_14 = arith.constant 0 : index
    %10 = vector.load %arg3[%c0_13, %c0_14] : memref<1x128xf32, #tpu.memory_space<vmem>>, vector<1x128xf32>
    %11 = vector.broadcast %10 : vector<1x128xf32> to vector<128x128xf32>
    %12 = arith.addf %9, %11 : vector<128x128xf32>
    %13 = vector.extract_strided_slice %12 {offsets = [0, 0], sizes = [16, 128], strides = [1, 1]} : vector<128x128xf32> to vector<16x128xf32>
    %14 = arith.truncf %13 : vector<16x128xf32> to vector<16x128xbf16>
    %c0_15 = arith.constant 0 : index
    %c0_16 = arith.constant 0 : index
    %15 = vector.load %arg9[%c0_15, %c0_16] : memref<256x128xbf16, #tpu.memory_space<vmem>>, vector<16x128xbf16>
    tpu.vector_store %arg9[%c0_15, %c0_16], %14 {strides = array<i32>} : memref<256x128xbf16, #tpu.memory_space<vmem>>, vector<16x128xbf16>,
    %16 = vector.extract_strided_slice %13 {offsets = [0, 0], sizes = [15, 128], strides = [1, 1]} : vector<16x128xf32> to vector<15x128xf32>
    %17 = tpu.concatenate %5, %16 in 0 : vector<1x128xf32>, vector<15x128xf32> -> vector<16x128xf32>
    %18 = vector.extract_strided_slice %13 {offsets = [1, 0], sizes = [15, 128], strides = [1, 1]} : vector<16x128xf32> to vector<15x128xf32>
    %19 = tpu.concatenate %18, %5 in 0 : vector<15x128xf32>, vector<1x128xf32> -> vector<16x128xf32>
    %20 = tpu.concatenate %17, %13, %19 in 1 : vector<16x128xf32>, vector<16x128xf32>, vector<16x128xf32> -> vector<16x384xf32>
    %21 = arith.truncf %20 : vector<16x384xf32> to vector<16x384xbf16>
    %c16 = arith.constant 16 : index
    %c0_17 = arith.constant 0 : index
    %22 = vector.load %arg10[%c16, %c0_17] : memref<288x384xbf16, #tpu.memory_space<vmem>>, vector<16x384xbf16>
    tpu.vector_store %arg10[%c16, %c0_17], %21 {strides = array<i32>} : memref<288x384xbf16, #tpu.memory_space<vmem>>, vector<16x384xbf16>,
    %23 = vector.extract_strided_slice %12 {offsets = [16, 0], sizes = [16, 128], strides = [1, 1]} : vector<128x128xf32> to vector<16x128xf32>
    %24 = arith.truncf %23 : vector<16x128xf32> to vector<16x128xbf16>
    %c16_18 = arith.constant 16 : index
    %c0_19 = arith.constant 0 : index
    %25 = vector.load %arg9[%c16_18, %c0_19] : memref<256x128xbf16, #tpu.memory_space<vmem>>, vector<16x128xbf16>
    tpu.vector_store %arg9[%c16_18, %c0_19], %24 {strides = array<i32>} : memref<256x128xbf16, #tpu.memory_space<vmem>>, vector<16x128xbf16>,
    %26 = vector.extract_strided_slice %23 {offsets = [0, 0], sizes = [15, 128], strides = [1, 1]} : vector<16x128xf32> to vector<15x128xf32>
    %27 = tpu.concatenate %5, %26 in 0 : vector<1x128xf32>, vector<15x128xf32> -> vector<16x128xf32>
    %28 = vector.extract_strided_slice %23 {offsets = [1, 0], sizes = [15, 128], strides = [1, 1]} : vector<16x128xf32> to vector<15x128xf32>
    %29 = tpu.concatenate %28, %5 in 0 : vector<15x128xf32>, vector<1x128xf32> -> vector<16x128xf32>
    %30 = tpu.concatenate %27, %23, %29 in 1 : vector<16x128xf32>, vector<16x128xf32>, vector<16x128xf32> -> vector<16x384xf32>
    %31 = arith.truncf %30 : vector<16x384xf32> to vector<16x384xbf16>
    %c32 = arith.constant 32 : index
    %c0_20 = arith.constant 0 : index
    %32 = vector.load %arg10[%c32, %c0_20] : memref<288x384xbf16, #tpu.memory_space<vmem>>, vector<16x384xbf16>
    tpu.vector_store %arg10[%c32, %c0_20], %31 {strides = array<i32>} : memref<288x384xbf16, #tpu.memory_space<vmem>>, vector<16x384xbf16>,
    %33 = vector.extract_strided_slice %12 {offsets = [32, 0], sizes = [16, 128], strides = [1, 1]} : vector<128x128xf32> to vector<16x128xf32>
    %34 = arith.truncf %33 : vector<16x128xf32> to vector<16x128xbf16>
    %c32_21 = arith.constant 32 : index
    %c0_22 = arith.constant 0 : index
    %35 = vector.load %arg9[%c32_21, %c0_22] : memref<256x128xbf16, #tpu.memory_space<vmem>>, vector<16x128xbf16>
    tpu.vector_store %arg9[%c32_21, %c0_22], %34 {strides = array<i32>} : memref<256x128xbf16, #tpu.memory_space<vmem>>, vector<16x128xbf16>,
    %36 = vector.extract_strided_slice %33 {offsets = [0, 0], sizes = [15, 128], strides = [1, 1]} : vector<16x128xf32> to vector<15x128xf32>
    %37 = tpu.concatenate %5, %36 in 0 : vector<1x128xf32>, vector<15x128xf32> -> vector<16x128xf32>
    %38 = vector.extract_strided_slice %33 {offsets = [1, 0], sizes = [15, 128], strides = [1, 1]} : vector<16x128xf32> to vector<15x128xf32>
    %39 = tpu.concatenate %38, %5 in 0 : vector<15x128xf32>, vector<1x128xf32> -> vector<16x128xf32>
    %40 = tpu.concatenate %37, %33, %39 in 1 : vector<16x128xf32>, vector<16x128xf32>, vector<16x128xf32> -> vector<16x384xf32>
    %41 = arith.truncf %40 : vector<16x384xf32> to vector<16x384xbf16>
    %c48 = arith.constant 48 : index
    %c0_23 = arith.constant 0 : index
    %42 = vector.load %arg10[%c48, %c0_23] : memref<288x384xbf16, #tpu.memory_space<vmem>>, vector<16x384xbf16>
    tpu.vector_store %arg10[%c48, %c0_23], %41 {strides = array<i32>} : memref<288x384xbf16, #tpu.memory_space<vmem>>, vector<16x384xbf16>,
    %43 = vector.extract_strided_slice %12 {offsets = [48, 0], sizes = [16, 128], strides = [1, 1]} : vector<128x128xf32> to vector<16x128xf32>
    %44 = arith.truncf %43 : vector<16x128xf32> to vector<16x128xbf16>
    %c48_24 = arith.constant 48 : index
    %c0_25 = arith.constant 0 : index
    %45 = vector.load %arg9[%c48_24, %c0_25] : memref<256x128xbf16, #tpu.memory_space<vmem>>, vector<16x128xbf16>
    tpu.vector_store %arg9[%c48_24, %c0_25], %44 {strides = array<i32>} : memref<256x128xbf16, #tpu.memory_space<vmem>>, vector<16x128xbf16>,
    %46 = vector.extract_strided_slice %43 {offsets = [0, 0], sizes = [15, 128], strides = [1, 1]} : vector<16x128xf32> to vector<15x128xf32>
    %47 = tpu.concatenate %5, %46 in 0 : vector<1x128xf32>, vector<15x128xf32> -> vector<16x128xf32>
    %48 = vector.extract_strided_slice %43 {offsets = [1, 0], sizes = [15, 128], strides = [1, 1]} : vector<16x128xf32> to vector<15x128xf32>
    %49 = tpu.concatenate %48, %5 in 0 : vector<15x128xf32>, vector<1x128xf32> -> vector<16x128xf32>
    %50 = tpu.concatenate %47, %43, %49 in 1 : vector<16x128xf32>, vector<16x128xf32>, vector<16x128xf32> -> vector<16x384xf32>
    %51 = arith.truncf %50 : vector<16x384xf32> to vector<16x384xbf16>
    %c64 = arith.constant 64 : index
    %c0_26 = arith.constant 0 : index
    %52 = vector.load %arg10[%c64, %c0_26] : memref<288x384xbf16, #tpu.memory_space<vmem>>, vector<16x384xbf16>
    tpu.vector_store %arg10[%c64, %c0_26], %51 {strides = array<i32>} : memref<288x384xbf16, #tpu.memory_space<vmem>>, vector<16x384xbf16>,
    %53 = vector.extract_strided_slice %12 {offsets = [64, 0], sizes = [16, 128], strides = [1, 1]} : vector<128x128xf32> to vector<16x128xf32>
    %54 = arith.truncf %53 : vector<16x128xf32> to vector<16x128xbf16>
    %c64_27 = arith.constant 64 : index
    %c0_28 = arith.constant 0 : index
    %55 = vector.load %arg9[%c64_27, %c0_28] : memref<256x128xbf16, #tpu.memory_space<vmem>>, vector<16x128xbf16>
    tpu.vector_store %arg9[%c64_27, %c0_28], %54 {strides = array<i32>} : memref<256x128xbf16, #tpu.memory_space<vmem>>, vector<16x128xbf16>,
    %56 = vector.extract_strided_slice %53 {offsets = [0, 0], sizes = [15, 128], strides = [1, 1]} : vector<16x128xf32> to vector<15x128xf32>
    %57 = tpu.concatenate %5, %56 in 0 : vector<1x128xf32>, vector<15x128xf32> -> vector<16x128xf32>
    %58 = vector.extract_strided_slice %53 {offsets = [1, 0], sizes = [15, 128], strides = [1, 1]} : vector<16x128xf32> to vector<15x128xf32>
    %59 = tpu.concatenate %58, %5 in 0 : vector<15x128xf32>, vector<1x128xf32> -> vector<16x128xf32>
    %60 = tpu.concatenate %57, %53, %59 in 1 : vector<16x128xf32>, vector<16x128xf32>, vector<16x128xf32> -> vector<16x384xf32>
    %61 = arith.truncf %60 : vector<16x384xf32> to vector<16x384xbf16>
    %c80 = arith.constant 80 : index
    %c0_29 = arith.constant 0 : index
    %62 = vector.load %arg10[%c80, %c0_29] : memref<288x384xbf16, #tpu.memory_space<vmem>>, vector<16x384xbf16>
    tpu.vector_store %arg10[%c80, %c0_29], %61 {strides = array<i32>} : memref<288x384xbf16, #tpu.memory_space<vmem>>, vector<16x384xbf16>,
    %63 = vector.extract_strided_slice %12 {offsets = [80, 0], sizes = [16, 128], strides = [1, 1]} : vector<128x128xf32> to vector<16x128xf32>
    %64 = arith.truncf %63 : vector<16x128xf32> to vector<16x128xbf16>
    %c80_30 = arith.constant 80 : index
    %c0_31 = arith.constant 0 : index
    %65 = vector.load %arg9[%c80_30, %c0_31] : memref<256x128xbf16, #tpu.memory_space<vmem>>, vector<16x128xbf16>
    tpu.vector_store %arg9[%c80_30, %c0_31], %64 {strides = array<i32>} : memref<256x128xbf16, #tpu.memory_space<vmem>>, vector<16x128xbf16>,
    %66 = vector.extract_strided_slice %63 {offsets = [0, 0], sizes = [15, 128], strides = [1, 1]} : vector<16x128xf32> to vector<15x128xf32>
    %67 = tpu.concatenate %5, %66 in 0 : vector<1x128xf32>, vector<15x128xf32> -> vector<16x128xf32>
    %68 = vector.extract_strided_slice %63 {offsets = [1, 0], sizes = [15, 128], strides = [1, 1]} : vector<16x128xf32> to vector<15x128xf32>
    %69 = tpu.concatenate %68, %5 in 0 : vector<15x128xf32>, vector<1x128xf32> -> vector<16x128xf32>
    %70 = tpu.concatenate %67, %63, %69 in 1 : vector<16x128xf32>, vector<16x128xf32>, vector<16x128xf32> -> vector<16x384xf32>
    %71 = arith.truncf %70 : vector<16x384xf32> to vector<16x384xbf16>
    %c96 = arith.constant 96 : index
    %c0_32 = arith.constant 0 : index
    %72 = vector.load %arg10[%c96, %c0_32] : memref<288x384xbf16, #tpu.memory_space<vmem>>, vector<16x384xbf16>
    tpu.vector_store %arg10[%c96, %c0_32], %71 {strides = array<i32>} : memref<288x384xbf16, #tpu.memory_space<vmem>>, vector<16x384xbf16>,
    %73 = vector.extract_strided_slice %12 {offsets = [96, 0], sizes = [16, 128], strides = [1, 1]} : vector<128x128xf32> to vector<16x128xf32>
    %74 = arith.truncf %73 : vector<16x128xf32> to vector<16x128xbf16>
    %c96_33 = arith.constant 96 : index
    %c0_34 = arith.constant 0 : index
    %75 = vector.load %arg9[%c96_33, %c0_34] : memref<256x128xbf16, #tpu.memory_space<vmem>>, vector<16x128xbf16>
    tpu.vector_store %arg9[%c96_33, %c0_34], %74 {strides = array<i32>} : memref<256x128xbf16, #tpu.memory_space<vmem>>, vector<16x128xbf16>,
    %76 = vector.extract_strided_slice %73 {offsets = [0, 0], sizes = [15, 128], strides = [1, 1]} : vector<16x128xf32> to vector<15x128xf32>
    %77 = tpu.concatenate %5, %76 in 0 : vector<1x128xf32>, vector<15x128xf32> -> vector<16x128xf32>
    %78 = vector.extract_strided_slice %73 {offsets = [1, 0], sizes = [15, 128], strides = [1, 1]} : vector<16x128xf32> to vector<15x128xf32>
    %79 = tpu.concatenate %78, %5 in 0 : vector<15x128xf32>, vector<1x128xf32> -> vector<16x128xf32>
    %80 = tpu.concatenate %77, %73, %79 in 1 : vector<16x128xf32>, vector<16x128xf32>, vector<16x128xf32> -> vector<16x384xf32>
    %81 = arith.truncf %80 : vector<16x384xf32> to vector<16x384xbf16>
    %c112 = arith.constant 112 : index
    %c0_35 = arith.constant 0 : index
    %82 = vector.load %arg10[%c112, %c0_35] : memref<288x384xbf16, #tpu.memory_space<vmem>>, vector<16x384xbf16>
    tpu.vector_store %arg10[%c112, %c0_35], %81 {strides = array<i32>} : memref<288x384xbf16, #tpu.memory_space<vmem>>, vector<16x384xbf16>,
    %83 = vector.extract_strided_slice %12 {offsets = [112, 0], sizes = [16, 128], strides = [1, 1]} : vector<128x128xf32> to vector<16x128xf32>
    %84 = arith.truncf %83 : vector<16x128xf32> to vector<16x128xbf16>
    %c112_36 = arith.constant 112 : index
    %c0_37 = arith.constant 0 : index
    %85 = vector.load %arg9[%c112_36, %c0_37] : memref<256x128xbf16, #tpu.memory_space<vmem>>, vector<16x128xbf16>
    tpu.vector_store %arg9[%c112_36, %c0_37], %84 {strides = array<i32>} : memref<256x128xbf16, #tpu.memory_space<vmem>>, vector<16x128xbf16>,
    %86 = vector.extract_strided_slice %83 {offsets = [0, 0], sizes = [15, 128], strides = [1, 1]} : vector<16x128xf32> to vector<15x128xf32>
    %87 = tpu.concatenate %5, %86 in 0 : vector<1x128xf32>, vector<15x128xf32> -> vector<16x128xf32>
    %88 = vector.extract_strided_slice %83 {offsets = [1, 0], sizes = [15, 128], strides = [1, 1]} : vector<16x128xf32> to vector<15x128xf32>
    %89 = tpu.concatenate %88, %5 in 0 : vector<15x128xf32>, vector<1x128xf32> -> vector<16x128xf32>
    %90 = tpu.concatenate %87, %83, %89 in 1 : vector<16x128xf32>, vector<16x128xf32>, vector<16x128xf32> -> vector<16x384xf32>
    %91 = arith.truncf %90 : vector<16x384xf32> to vector<16x384xbf16>
    %c128 = arith.constant 128 : index
    %c0_38 = arith.constant 0 : index
    %92 = vector.load %arg10[%c128, %c0_38] : memref<288x384xbf16, #tpu.memory_space<vmem>>, vector<16x384xbf16>
    tpu.vector_store %arg10[%c128, %c0_38], %91 {strides = array<i32>} : memref<288x384xbf16, #tpu.memory_space<vmem>>, vector<16x384xbf16>,
    %c0_39 = arith.constant 0 : index
    %c128_40 = arith.constant 128 : index
    %c0_41 = arith.constant 0 : index
    %93 = vector.load %arg1[%c0_39, %c128_40, %c0_41] : memref<1x256x128xbf16, #tpu.memory_space<vmem>>, vector<1x128x128xbf16>
    %94 = vector.shape_cast %93 : vector<1x128x128xbf16> to vector<128x128xbf16>
    %c0_42 = arith.constant 0 : index
    %c0_43 = arith.constant 0 : index
    %95 = vector.load %arg2[%c0_42, %c0_43] : memref<128x128xbf16, #tpu.memory_space<vmem>>, vector<128x128xbf16>
    %cst_44 = arith.constant dense<0.000000e+00> : vector<128x128xf32>
    %96 = tpu.matmul %94, %95, %cst_44 {dimension_numbers = #tpu.dot_dimension_numbers<[1], [0], [0], [1], [0, 0, 1, 1], [], []>} : vector<128x128xbf16>, vector<128x128xbf16>, vector<128x128xf32> -> vector<128x128xf32>
    %c0_45 = arith.constant 0 : index
    %c0_46 = arith.constant 0 : index
    %97 = vector.load %arg3[%c0_45, %c0_46] : memref<1x128xf32, #tpu.memory_space<vmem>>, vector<1x128xf32>
    %98 = vector.broadcast %97 : vector<1x128xf32> to vector<128x128xf32>
    %99 = arith.addf %96, %98 : vector<128x128xf32>
    %100 = vector.extract_strided_slice %99 {offsets = [0, 0], sizes = [16, 128], strides = [1, 1]} : vector<128x128xf32> to vector<16x128xf32>
    %101 = arith.truncf %100 : vector<16x128xf32> to vector<16x128xbf16>
    %c128_47 = arith.constant 128 : index
    %c0_48 = arith.constant 0 : index
    %102 = vector.load %arg9[%c128_47, %c0_48] : memref<256x128xbf16, #tpu.memory_space<vmem>>, vector<16x128xbf16>
    tpu.vector_store %arg9[%c128_47, %c0_48], %101 {strides = array<i32>} : memref<256x128xbf16, #tpu.memory_space<vmem>>, vector<16x128xbf16>,
    %103 = vector.extract_strided_slice %100 {offsets = [0, 0], sizes = [15, 128], strides = [1, 1]} : vector<16x128xf32> to vector<15x128xf32>
    %104 = tpu.concatenate %5, %103 in 0 : vector<1x128xf32>, vector<15x128xf32> -> vector<16x128xf32>
    %105 = vector.extract_strided_slice %100 {offsets = [1, 0], sizes = [15, 128], strides = [1, 1]} : vector<16x128xf32> to vector<15x128xf32>
    %106 = tpu.concatenate %105, %5 in 0 : vector<15x128xf32>, vector<1x128xf32> -> vector<16x128xf32>
    %107 = tpu.concatenate %104, %100, %106 in 1 : vector<16x128xf32>, vector<16x128xf32>, vector<16x128xf32> -> vector<16x384xf32>
    %108 = arith.truncf %107 : vector<16x384xf32> to vector<16x384xbf16>
    %c144 = arith.constant 144 : index
    %c0_49 = arith.constant 0 : index
    %109 = vector.load %arg10[%c144, %c0_49] : memref<288x384xbf16, #tpu.memory_space<vmem>>, vector<16x384xbf16>
    tpu.vector_store %arg10[%c144, %c0_49], %108 {strides = array<i32>} : memref<288x384xbf16, #tpu.memory_space<vmem>>, vector<16x384xbf16>,
    %110 = vector.extract_strided_slice %99 {offsets = [16, 0], sizes = [16, 128], strides = [1, 1]} : vector<128x128xf32> to vector<16x128xf32>
    %111 = arith.truncf %110 : vector<16x128xf32> to vector<16x128xbf16>
    %c144_50 = arith.constant 144 : index
    %c0_51 = arith.constant 0 : index
    %112 = vector.load %arg9[%c144_50, %c0_51] : memref<256x128xbf16, #tpu.memory_space<vmem>>, vector<16x128xbf16>
    tpu.vector_store %arg9[%c144_50, %c0_51], %111 {strides = array<i32>} : memref<256x128xbf16, #tpu.memory_space<vmem>>, vector<16x128xbf16>,
    %113 = vector.extract_strided_slice %110 {offsets = [0, 0], sizes = [15, 128], strides = [1, 1]} : vector<16x128xf32> to vector<15x128xf32>
    %114 = tpu.concatenate %5, %113 in 0 : vector<1x128xf32>, vector<15x128xf32> -> vector<16x128xf32>
    %115 = vector.extract_strided_slice %110 {offsets = [1, 0], sizes = [15, 128], strides = [1, 1]} : vector<16x128xf32> to vector<15x128xf32>
    %116 = tpu.concatenate %115, %5 in 0 : vector<15x128xf32>, vector<1x128xf32> -> vector<16x128xf32>
    %117 = tpu.concatenate %114, %110, %116 in 1 : vector<16x128xf32>, vector<16x128xf32>, vector<16x128xf32> -> vector<16x384xf32>
    %118 = arith.truncf %117 : vector<16x384xf32> to vector<16x384xbf16>
    %c160 = arith.constant 160 : index
    %c0_52 = arith.constant 0 : index
    %119 = vector.load %arg10[%c160, %c0_52] : memref<288x384xbf16, #tpu.memory_space<vmem>>, vector<16x384xbf16>
    tpu.vector_store %arg10[%c160, %c0_52], %118 {strides = array<i32>} : memref<288x384xbf16, #tpu.memory_space<vmem>>, vector<16x384xbf16>,
    %120 = vector.extract_strided_slice %99 {offsets = [32, 0], sizes = [16, 128], strides = [1, 1]} : vector<128x128xf32> to vector<16x128xf32>
    %121 = arith.truncf %120 : vector<16x128xf32> to vector<16x128xbf16>
    %c160_53 = arith.constant 160 : index
    %c0_54 = arith.constant 0 : index
    %122 = vector.load %arg9[%c160_53, %c0_54] : memref<256x128xbf16, #tpu.memory_space<vmem>>, vector<16x128xbf16>
    tpu.vector_store %arg9[%c160_53, %c0_54], %121 {strides = array<i32>} : memref<256x128xbf16, #tpu.memory_space<vmem>>, vector<16x128xbf16>,
    %123 = vector.extract_strided_slice %120 {offsets = [0, 0], sizes = [15, 128], strides = [1, 1]} : vector<16x128xf32> to vector<15x128xf32>
    %124 = tpu.concatenate %5, %123 in 0 : vector<1x128xf32>, vector<15x128xf32> -> vector<16x128xf32>
    %125 = vector.extract_strided_slice %120 {offsets = [1, 0], sizes = [15, 128], strides = [1, 1]} : vector<16x128xf32> to vector<15x128xf32>
    %126 = tpu.concatenate %125, %5 in 0 : vector<15x128xf32>, vector<1x128xf32> -> vector<16x128xf32>
    %127 = tpu.concatenate %124, %120, %126 in 1 : vector<16x128xf32>, vector<16x128xf32>, vector<16x128xf32> -> vector<16x384xf32>
    %128 = arith.truncf %127 : vector<16x384xf32> to vector<16x384xbf16>
    %c176 = arith.constant 176 : index
    %c0_55 = arith.constant 0 : index
    %129 = vector.load %arg10[%c176, %c0_55] : memref<288x384xbf16, #tpu.memory_space<vmem>>, vector<16x384xbf16>
    tpu.vector_store %arg10[%c176, %c0_55], %128 {strides = array<i32>} : memref<288x384xbf16, #tpu.memory_space<vmem>>, vector<16x384xbf16>,
    %130 = vector.extract_strided_slice %99 {offsets = [48, 0], sizes = [16, 128], strides = [1, 1]} : vector<128x128xf32> to vector<16x128xf32>
    %131 = arith.truncf %130 : vector<16x128xf32> to vector<16x128xbf16>
    %c176_56 = arith.constant 176 : index
    %c0_57 = arith.constant 0 : index
    %132 = vector.load %arg9[%c176_56, %c0_57] : memref<256x128xbf16, #tpu.memory_space<vmem>>, vector<16x128xbf16>
    tpu.vector_store %arg9[%c176_56, %c0_57], %131 {strides = array<i32>} : memref<256x128xbf16, #tpu.memory_space<vmem>>, vector<16x128xbf16>,
    %133 = vector.extract_strided_slice %130 {offsets = [0, 0], sizes = [15, 128], strides = [1, 1]} : vector<16x128xf32> to vector<15x128xf32>
    %134 = tpu.concatenate %5, %133 in 0 : vector<1x128xf32>, vector<15x128xf32> -> vector<16x128xf32>
    %135 = vector.extract_strided_slice %130 {offsets = [1, 0], sizes = [15, 128], strides = [1, 1]} : vector<16x128xf32> to vector<15x128xf32>
    %136 = tpu.concatenate %135, %5 in 0 : vector<15x128xf32>, vector<1x128xf32> -> vector<16x128xf32>
    %137 = tpu.concatenate %134, %130, %136 in 1 : vector<16x128xf32>, vector<16x128xf32>, vector<16x128xf32> -> vector<16x384xf32>
    %138 = arith.truncf %137 : vector<16x384xf32> to vector<16x384xbf16>
    %c192 = arith.constant 192 : index
    %c0_58 = arith.constant 0 : index
    %139 = vector.load %arg10[%c192, %c0_58] : memref<288x384xbf16, #tpu.memory_space<vmem>>, vector<16x384xbf16>
    tpu.vector_store %arg10[%c192, %c0_58], %138 {strides = array<i32>} : memref<288x384xbf16, #tpu.memory_space<vmem>>, vector<16x384xbf16>,
    %140 = vector.extract_strided_slice %99 {offsets = [64, 0], sizes = [16, 128], strides = [1, 1]} : vector<128x128xf32> to vector<16x128xf32>
    %141 = arith.truncf %140 : vector<16x128xf32> to vector<16x128xbf16>
    %c192_59 = arith.constant 192 : index
    %c0_60 = arith.constant 0 : index
    %142 = vector.load %arg9[%c192_59, %c0_60] : memref<256x128xbf16, #tpu.memory_space<vmem>>, vector<16x128xbf16>
    tpu.vector_store %arg9[%c192_59, %c0_60], %141 {strides = array<i32>} : memref<256x128xbf16, #tpu.memory_space<vmem>>, vector<16x128xbf16>,
    %143 = vector.extract_strided_slice %140 {offsets = [0, 0], sizes = [15, 128], strides = [1, 1]} : vector<16x128xf32> to vector<15x128xf32>
    %144 = tpu.concatenate %5, %143 in 0 : vector<1x128xf32>, vector<15x128xf32> -> vector<16x128xf32>
    %145 = vector.extract_strided_slice %140 {offsets = [1, 0], sizes = [15, 128], strides = [1, 1]} : vector<16x128xf32> to vector<15x128xf32>
    %146 = tpu.concatenate %145, %5 in 0 : vector<15x128xf32>, vector<1x128xf32> -> vector<16x128xf32>
    %147 = tpu.concatenate %144, %140, %146 in 1 : vector<16x128xf32>, vector<16x128xf32>, vector<16x128xf32> -> vector<16x384xf32>
    %148 = arith.truncf %147 : vector<16x384xf32> to vector<16x384xbf16>
    %c208 = arith.constant 208 : index
    %c0_61 = arith.constant 0 : index
    %149 = vector.load %arg10[%c208, %c0_61] : memref<288x384xbf16, #tpu.memory_space<vmem>>, vector<16x384xbf16>
    tpu.vector_store %arg10[%c208, %c0_61], %148 {strides = array<i32>} : memref<288x384xbf16, #tpu.memory_space<vmem>>, vector<16x384xbf16>,
    %150 = vector.extract_strided_slice %99 {offsets = [80, 0], sizes = [16, 128], strides = [1, 1]} : vector<128x128xf32> to vector<16x128xf32>
    %151 = arith.truncf %150 : vector<16x128xf32> to vector<16x128xbf16>
    %c208_62 = arith.constant 208 : index
    %c0_63 = arith.constant 0 : index
    %152 = vector.load %arg9[%c208_62, %c0_63] : memref<256x128xbf16, #tpu.memory_space<vmem>>, vector<16x128xbf16>
    tpu.vector_store %arg9[%c208_62, %c0_63], %151 {strides = array<i32>} : memref<256x128xbf16, #tpu.memory_space<vmem>>, vector<16x128xbf16>,
    %153 = vector.extract_strided_slice %150 {offsets = [0, 0], sizes = [15, 128], strides = [1, 1]} : vector<16x128xf32> to vector<15x128xf32>
    %154 = tpu.concatenate %5, %153 in 0 : vector<1x128xf32>, vector<15x128xf32> -> vector<16x128xf32>
    %155 = vector.extract_strided_slice %150 {offsets = [1, 0], sizes = [15, 128], strides = [1, 1]} : vector<16x128xf32> to vector<15x128xf32>
    %156 = tpu.concatenate %155, %5 in 0 : vector<15x128xf32>, vector<1x128xf32> -> vector<16x128xf32>
    %157 = tpu.concatenate %154, %150, %156 in 1 : vector<16x128xf32>, vector<16x128xf32>, vector<16x128xf32> -> vector<16x384xf32>
    %158 = arith.truncf %157 : vector<16x384xf32> to vector<16x384xbf16>
    %c224 = arith.constant 224 : index
    %c0_64 = arith.constant 0 : index
    %159 = vector.load %arg10[%c224, %c0_64] : memref<288x384xbf16, #tpu.memory_space<vmem>>, vector<16x384xbf16>
    tpu.vector_store %arg10[%c224, %c0_64], %158 {strides = array<i32>} : memref<288x384xbf16, #tpu.memory_space<vmem>>, vector<16x384xbf16>,
    %160 = vector.extract_strided_slice %99 {offsets = [96, 0], sizes = [16, 128], strides = [1, 1]} : vector<128x128xf32> to vector<16x128xf32>
    %161 = arith.truncf %160 : vector<16x128xf32> to vector<16x128xbf16>
    %c224_65 = arith.constant 224 : index
    %c0_66 = arith.constant 0 : index
    %162 = vector.load %arg9[%c224_65, %c0_66] : memref<256x128xbf16, #tpu.memory_space<vmem>>, vector<16x128xbf16>
    tpu.vector_store %arg9[%c224_65, %c0_66], %161 {strides = array<i32>} : memref<256x128xbf16, #tpu.memory_space<vmem>>, vector<16x128xbf16>,
    %163 = vector.extract_strided_slice %160 {offsets = [0, 0], sizes = [15, 128], strides = [1, 1]} : vector<16x128xf32> to vector<15x128xf32>
    %164 = tpu.concatenate %5, %163 in 0 : vector<1x128xf32>, vector<15x128xf32> -> vector<16x128xf32>
    %165 = vector.extract_strided_slice %160 {offsets = [1, 0], sizes = [15, 128], strides = [1, 1]} : vector<16x128xf32> to vector<15x128xf32>
    %166 = tpu.concatenate %165, %5 in 0 : vector<15x128xf32>, vector<1x128xf32> -> vector<16x128xf32>
    %167 = tpu.concatenate %164, %160, %166 in 1 : vector<16x128xf32>, vector<16x128xf32>, vector<16x128xf32> -> vector<16x384xf32>
    %168 = arith.truncf %167 : vector<16x384xf32> to vector<16x384xbf16>
    %c240 = arith.constant 240 : index
    %c0_67 = arith.constant 0 : index
    %169 = vector.load %arg10[%c240, %c0_67] : memref<288x384xbf16, #tpu.memory_space<vmem>>, vector<16x384xbf16>
    tpu.vector_store %arg10[%c240, %c0_67], %168 {strides = array<i32>} : memref<288x384xbf16, #tpu.memory_space<vmem>>, vector<16x384xbf16>,
    %170 = vector.extract_strided_slice %99 {offsets = [112, 0], sizes = [16, 128], strides = [1, 1]} : vector<128x128xf32> to vector<16x128xf32>
    %171 = arith.truncf %170 : vector<16x128xf32> to vector<16x128xbf16>
    %c240_68 = arith.constant 240 : index
    %c0_69 = arith.constant 0 : index
    %172 = vector.load %arg9[%c240_68, %c0_69] : memref<256x128xbf16, #tpu.memory_space<vmem>>, vector<16x128xbf16>
    tpu.vector_store %arg9[%c240_68, %c0_69], %171 {strides = array<i32>} : memref<256x128xbf16, #tpu.memory_space<vmem>>, vector<16x128xbf16>,
    %173 = vector.extract_strided_slice %170 {offsets = [0, 0], sizes = [15, 128], strides = [1, 1]} : vector<16x128xf32> to vector<15x128xf32>
    %174 = tpu.concatenate %5, %173 in 0 : vector<1x128xf32>, vector<15x128xf32> -> vector<16x128xf32>
    %175 = vector.extract_strided_slice %170 {offsets = [1, 0], sizes = [15, 128], strides = [1, 1]} : vector<16x128xf32> to vector<15x128xf32>
    %176 = tpu.concatenate %175, %5 in 0 : vector<15x128xf32>, vector<1x128xf32> -> vector<16x128xf32>
    %177 = tpu.concatenate %174, %170, %176 in 1 : vector<16x128xf32>, vector<16x128xf32>, vector<16x128xf32> -> vector<16x384xf32>
    %178 = arith.truncf %177 : vector<16x384xf32> to vector<16x384xbf16>
    %c256 = arith.constant 256 : index
    %c0_70 = arith.constant 0 : index
    %179 = vector.load %arg10[%c256, %c0_70] : memref<288x384xbf16, #tpu.memory_space<vmem>>, vector<16x384xbf16>
    tpu.vector_store %arg10[%c256, %c0_70], %178 {strides = array<i32>} : memref<288x384xbf16, #tpu.memory_space<vmem>>, vector<16x384xbf16>,
    %c0_71 = arith.constant 0 : index
    %c0_72 = arith.constant 0 : index
    %180 = vector.load %arg10[%c0_71, %c0_72] : memref<288x384xbf16, #tpu.memory_space<vmem>>, vector<128x384xbf16>
    %c0_73 = arith.constant 0 : index
    %c0_74 = arith.constant 0 : index
    %c0_75 = arith.constant 0 : index
    %181 = vector.load %arg4[%c0_73, %c0_74, %c0_75] : memref<3x384x128xbf16, #tpu.memory_space<vmem>>, vector<1x384x128xbf16>
    %182 = vector.shape_cast %181 : vector<1x384x128xbf16> to vector<384x128xbf16>
    %cst_76 = arith.constant dense<0.000000e+00> : vector<128x128xf32>
    %183 = tpu.matmul %180, %182, %cst_76 {dimension_numbers = #tpu.dot_dimension_numbers<[1], [0], [0], [1], [0, 0, 1, 1], [], []>} : vector<128x384xbf16>, vector<384x128xbf16>, vector<128x128xf32> -> vector<128x128xf32>
    %c16_77 = arith.constant 16 : index
    %c0_78 = arith.constant 0 : index
    %184 = vector.load %arg10[%c16_77, %c0_78] : memref<288x384xbf16, #tpu.memory_space<vmem>>, vector<128x384xbf16>
    %c1 = arith.constant 1 : index
    %c0_79 = arith.constant 0 : index
    %c0_80 = arith.constant 0 : index
    %185 = vector.load %arg4[%c1, %c0_79, %c0_80] : memref<3x384x128xbf16, #tpu.memory_space<vmem>>, vector<1x384x128xbf16>
    %186 = vector.shape_cast %185 : vector<1x384x128xbf16> to vector<384x128xbf16>
    %cst_81 = arith.constant dense<0.000000e+00> : vector<128x128xf32>
    %187 = tpu.matmul %184, %186, %cst_81 {dimension_numbers = #tpu.dot_dimension_numbers<[1], [0], [0], [1], [0, 0, 1, 1], [], []>} : vector<128x384xbf16>, vector<384x128xbf16>, vector<128x128xf32> -> vector<128x128xf32>
    %188 = arith.addf %183, %187 : vector<128x128xf32>
    %c32_82 = arith.constant 32 : index
    %c0_83 = arith.constant 0 : index
    %189 = vector.load %arg10[%c32_82, %c0_83] : memref<288x384xbf16, #tpu.memory_space<vmem>>, vector<128x384xbf16>
    %c2 = arith.constant 2 : index
    %c0_84 = arith.constant 0 : index
    %c0_85 = arith.constant 0 : index
    %190 = vector.load %arg4[%c2, %c0_84, %c0_85] : memref<3x384x128xbf16, #tpu.memory_space<vmem>>, vector<1x384x128xbf16>
    %191 = vector.shape_cast %190 : vector<1x384x128xbf16> to vector<384x128xbf16>
    %cst_86 = arith.constant dense<0.000000e+00> : vector<128x128xf32>
    %192 = tpu.matmul %189, %191, %cst_86 {dimension_numbers = #tpu.dot_dimension_numbers<[1], [0], [0], [1], [0, 0, 1, 1], [], []>} : vector<128x384xbf16>, vector<384x128xbf16>, vector<128x128xf32> -> vector<128x128xf32>
    %193 = arith.addf %188, %192 : vector<128x128xf32>
    %c0_87 = arith.constant 0 : index
    %c0_88 = arith.constant 0 : index
    %194 = vector.load %arg5[%c0_87, %c0_88] : memref<1x128xf32, #tpu.memory_space<vmem>>, vector<1x128xf32>
    %195 = vector.broadcast %194 : vector<1x128xf32> to vector<128x128xf32>
    %196 = arith.addf %193, %195 : vector<128x128xf32>
    %197 = vector.extract_strided_slice %196 {offsets = [0, 0], sizes = [16, 128], strides = [1, 1]} : vector<128x128xf32> to vector<16x128xf32>
    %cst_89 = arith.constant 0.000000e+00 : f32
    %198 = vector.broadcast %cst_89 : f32 to vector<16x128xf32>
    %199 = arith.maximumf %197, %198 : vector<16x128xf32>
    %200 = vector.extract_strided_slice %199 {offsets = [0, 0], sizes = [15, 128], strides = [1, 1]} : vector<16x128xf32> to vector<15x128xf32>
    %201 = tpu.concatenate %5, %200 in 0 : vector<1x128xf32>, vector<15x128xf32> -> vector<16x128xf32>
    %202 = vector.extract_strided_slice %199 {offsets = [1, 0], sizes = [15, 128], strides = [1, 1]} : vector<16x128xf32> to vector<15x128xf32>
    %203 = tpu.concatenate %202, %5 in 0 : vector<15x128xf32>, vector<1x128xf32> -> vector<16x128xf32>
    %204 = tpu.concatenate %201, %199, %203 in 1 : vector<16x128xf32>, vector<16x128xf32>, vector<16x128xf32> -> vector<16x384xf32>
    %205 = arith.truncf %204 : vector<16x384xf32> to vector<16x384xbf16>
    %c16_90 = arith.constant 16 : index
    %c0_91 = arith.constant 0 : index
    %206 = vector.load %arg11[%c16_90, %c0_91] : memref<288x384xbf16, #tpu.memory_space<vmem>>, vector<16x384xbf16>
    tpu.vector_store %arg11[%c16_90, %c0_91], %205 {strides = array<i32>} : memref<288x384xbf16, #tpu.memory_space<vmem>>, vector<16x384xbf16>,
    %207 = vector.extract_strided_slice %196 {offsets = [16, 0], sizes = [16, 128], strides = [1, 1]} : vector<128x128xf32> to vector<16x128xf32>
    %cst_92 = arith.constant 0.000000e+00 : f32
    %208 = vector.broadcast %cst_92 : f32 to vector<16x128xf32>
    %209 = arith.maximumf %207, %208 : vector<16x128xf32>
    %210 = vector.extract_strided_slice %209 {offsets = [0, 0], sizes = [15, 128], strides = [1, 1]} : vector<16x128xf32> to vector<15x128xf32>
    %211 = tpu.concatenate %5, %210 in 0 : vector<1x128xf32>, vector<15x128xf32> -> vector<16x128xf32>
    %212 = vector.extract_strided_slice %209 {offsets = [1, 0], sizes = [15, 128], strides = [1, 1]} : vector<16x128xf32> to vector<15x128xf32>
    %213 = tpu.concatenate %212, %5 in 0 : vector<15x128xf32>, vector<1x128xf32> -> vector<16x128xf32>
    %214 = tpu.concatenate %211, %209, %213 in 1 : vector<16x128xf32>, vector<16x128xf32>, vector<16x128xf32> -> vector<16x384xf32>
    %215 = arith.truncf %214 : vector<16x384xf32> to vector<16x384xbf16>
    %c32_93 = arith.constant 32 : index
    %c0_94 = arith.constant 0 : index
    %216 = vector.load %arg11[%c32_93, %c0_94] : memref<288x384xbf16, #tpu.memory_space<vmem>>, vector<16x384xbf16>
    tpu.vector_store %arg11[%c32_93, %c0_94], %215 {strides = array<i32>} : memref<288x384xbf16, #tpu.memory_space<vmem>>, vector<16x384xbf16>,
    %217 = vector.extract_strided_slice %196 {offsets = [32, 0], sizes = [16, 128], strides = [1, 1]} : vector<128x128xf32> to vector<16x128xf32>
    %cst_95 = arith.constant 0.000000e+00 : f32
    %218 = vector.broadcast %cst_95 : f32 to vector<16x128xf32>
    %219 = arith.maximumf %217, %218 : vector<16x128xf32>
    %220 = vector.extract_strided_slice %219 {offsets = [0, 0], sizes = [15, 128], strides = [1, 1]} : vector<16x128xf32> to vector<15x128xf32>
    %221 = tpu.concatenate %5, %220 in 0 : vector<1x128xf32>, vector<15x128xf32> -> vector<16x128xf32>
    %222 = vector.extract_strided_slice %219 {offsets = [1, 0], sizes = [15, 128], strides = [1, 1]} : vector<16x128xf32> to vector<15x128xf32>
    %223 = tpu.concatenate %222, %5 in 0 : vector<15x128xf32>, vector<1x128xf32> -> vector<16x128xf32>
    %224 = tpu.concatenate %221, %219, %223 in 1 : vector<16x128xf32>, vector<16x128xf32>, vector<16x128xf32> -> vector<16x384xf32>
    %225 = arith.truncf %224 : vector<16x384xf32> to vector<16x384xbf16>
    %c48_96 = arith.constant 48 : index
    %c0_97 = arith.constant 0 : index
    %226 = vector.load %arg11[%c48_96, %c0_97] : memref<288x384xbf16, #tpu.memory_space<vmem>>, vector<16x384xbf16>
    tpu.vector_store %arg11[%c48_96, %c0_97], %225 {strides = array<i32>} : memref<288x384xbf16, #tpu.memory_space<vmem>>, vector<16x384xbf16>,
    %227 = vector.extract_strided_slice %196 {offsets = [48, 0], sizes = [16, 128], strides = [1, 1]} : vector<128x128xf32> to vector<16x128xf32>
    %cst_98 = arith.constant 0.000000e+00 : f32
    %228 = vector.broadcast %cst_98 : f32 to vector<16x128xf32>
    %229 = arith.maximumf %227, %228 : vector<16x128xf32>
    %230 = vector.extract_strided_slice %229 {offsets = [0, 0], sizes = [15, 128], strides = [1, 1]} : vector<16x128xf32> to vector<15x128xf32>
    %231 = tpu.concatenate %5, %230 in 0 : vector<1x128xf32>, vector<15x128xf32> -> vector<16x128xf32>
    %232 = vector.extract_strided_slice %229 {offsets = [1, 0], sizes = [15, 128], strides = [1, 1]} : vector<16x128xf32> to vector<15x128xf32>
    %233 = tpu.concatenate %232, %5 in 0 : vector<15x128xf32>, vector<1x128xf32> -> vector<16x128xf32>
    %234 = tpu.concatenate %231, %229, %233 in 1 : vector<16x128xf32>, vector<16x128xf32>, vector<16x128xf32> -> vector<16x384xf32>
    %235 = arith.truncf %234 : vector<16x384xf32> to vector<16x384xbf16>
    %c64_99 = arith.constant 64 : index
    %c0_100 = arith.constant 0 : index
    %236 = vector.load %arg11[%c64_99, %c0_100] : memref<288x384xbf16, #tpu.memory_space<vmem>>, vector<16x384xbf16>
    tpu.vector_store %arg11[%c64_99, %c0_100], %235 {strides = array<i32>} : memref<288x384xbf16, #tpu.memory_space<vmem>>, vector<16x384xbf16>,
    %237 = vector.extract_strided_slice %196 {offsets = [64, 0], sizes = [16, 128], strides = [1, 1]} : vector<128x128xf32> to vector<16x128xf32>
    %cst_101 = arith.constant 0.000000e+00 : f32
    %238 = vector.broadcast %cst_101 : f32 to vector<16x128xf32>
    %239 = arith.maximumf %237, %238 : vector<16x128xf32>
    %240 = vector.extract_strided_slice %239 {offsets = [0, 0], sizes = [15, 128], strides = [1, 1]} : vector<16x128xf32> to vector<15x128xf32>
    %241 = tpu.concatenate %5, %240 in 0 : vector<1x128xf32>, vector<15x128xf32> -> vector<16x128xf32>
    %242 = vector.extract_strided_slice %239 {offsets = [1, 0], sizes = [15, 128], strides = [1, 1]} : vector<16x128xf32> to vector<15x128xf32>
    %243 = tpu.concatenate %242, %5 in 0 : vector<15x128xf32>, vector<1x128xf32> -> vector<16x128xf32>
    %244 = tpu.concatenate %241, %239, %243 in 1 : vector<16x128xf32>, vector<16x128xf32>, vector<16x128xf32> -> vector<16x384xf32>
    %245 = arith.truncf %244 : vector<16x384xf32> to vector<16x384xbf16>
    %c80_102 = arith.constant 80 : index
    %c0_103 = arith.constant 0 : index
    %246 = vector.load %arg11[%c80_102, %c0_103] : memref<288x384xbf16, #tpu.memory_space<vmem>>, vector<16x384xbf16>
    tpu.vector_store %arg11[%c80_102, %c0_103], %245 {strides = array<i32>} : memref<288x384xbf16, #tpu.memory_space<vmem>>, vector<16x384xbf16>,
    %247 = vector.extract_strided_slice %196 {offsets = [80, 0], sizes = [16, 128], strides = [1, 1]} : vector<128x128xf32> to vector<16x128xf32>
    %cst_104 = arith.constant 0.000000e+00 : f32
    %248 = vector.broadcast %cst_104 : f32 to vector<16x128xf32>
    %249 = arith.maximumf %247, %248 : vector<16x128xf32>
    %250 = vector.extract_strided_slice %249 {offsets = [0, 0], sizes = [15, 128], strides = [1, 1]} : vector<16x128xf32> to vector<15x128xf32>
    %251 = tpu.concatenate %5, %250 in 0 : vector<1x128xf32>, vector<15x128xf32> -> vector<16x128xf32>
    %252 = vector.extract_strided_slice %249 {offsets = [1, 0], sizes = [15, 128], strides = [1, 1]} : vector<16x128xf32> to vector<15x128xf32>
    %253 = tpu.concatenate %252, %5 in 0 : vector<15x128xf32>, vector<1x128xf32> -> vector<16x128xf32>
    %254 = tpu.concatenate %251, %249, %253 in 1 : vector<16x128xf32>, vector<16x128xf32>, vector<16x128xf32> -> vector<16x384xf32>
    %255 = arith.truncf %254 : vector<16x384xf32> to vector<16x384xbf16>
    %c96_105 = arith.constant 96 : index
    %c0_106 = arith.constant 0 : index
    %256 = vector.load %arg11[%c96_105, %c0_106] : memref<288x384xbf16, #tpu.memory_space<vmem>>, vector<16x384xbf16>
    tpu.vector_store %arg11[%c96_105, %c0_106], %255 {strides = array<i32>} : memref<288x384xbf16, #tpu.memory_space<vmem>>, vector<16x384xbf16>,
    %257 = vector.extract_strided_slice %196 {offsets = [96, 0], sizes = [16, 128], strides = [1, 1]} : vector<128x128xf32> to vector<16x128xf32>
    %cst_107 = arith.constant 0.000000e+00 : f32
    %258 = vector.broadcast %cst_107 : f32 to vector<16x128xf32>
    %259 = arith.maximumf %257, %258 : vector<16x128xf32>
    %260 = vector.extract_strided_slice %259 {offsets = [0, 0], sizes = [15, 128], strides = [1, 1]} : vector<16x128xf32> to vector<15x128xf32>
    %261 = tpu.concatenate %5, %260 in 0 : vector<1x128xf32>, vector<15x128xf32> -> vector<16x128xf32>
    %262 = vector.extract_strided_slice %259 {offsets = [1, 0], sizes = [15, 128], strides = [1, 1]} : vector<16x128xf32> to vector<15x128xf32>
    %263 = tpu.concatenate %262, %5 in 0 : vector<15x128xf32>, vector<1x128xf32> -> vector<16x128xf32>
    %264 = tpu.concatenate %261, %259, %263 in 1 : vector<16x128xf32>, vector<16x128xf32>, vector<16x128xf32> -> vector<16x384xf32>
    %265 = arith.truncf %264 : vector<16x384xf32> to vector<16x384xbf16>
    %c112_108 = arith.constant 112 : index
    %c0_109 = arith.constant 0 : index
    %266 = vector.load %arg11[%c112_108, %c0_109] : memref<288x384xbf16, #tpu.memory_space<vmem>>, vector<16x384xbf16>
    tpu.vector_store %arg11[%c112_108, %c0_109], %265 {strides = array<i32>} : memref<288x384xbf16, #tpu.memory_space<vmem>>, vector<16x384xbf16>,
    %267 = vector.extract_strided_slice %196 {offsets = [112, 0], sizes = [16, 128], strides = [1, 1]} : vector<128x128xf32> to vector<16x128xf32>
    %cst_110 = arith.constant 0.000000e+00 : f32
    %268 = vector.broadcast %cst_110 : f32 to vector<16x128xf32>
    %269 = arith.maximumf %267, %268 : vector<16x128xf32>
    %270 = vector.extract_strided_slice %269 {offsets = [0, 0], sizes = [15, 128], strides = [1, 1]} : vector<16x128xf32> to vector<15x128xf32>
    %271 = tpu.concatenate %5, %270 in 0 : vector<1x128xf32>, vector<15x128xf32> -> vector<16x128xf32>
    %272 = vector.extract_strided_slice %269 {offsets = [1, 0], sizes = [15, 128], strides = [1, 1]} : vector<16x128xf32> to vector<15x128xf32>
    %273 = tpu.concatenate %272, %5 in 0 : vector<15x128xf32>, vector<1x128xf32> -> vector<16x128xf32>
    %274 = tpu.concatenate %271, %269, %273 in 1 : vector<16x128xf32>, vector<16x128xf32>, vector<16x128xf32> -> vector<16x384xf32>
    %275 = arith.truncf %274 : vector<16x384xf32> to vector<16x384xbf16>
    %c128_111 = arith.constant 128 : index
    %c0_112 = arith.constant 0 : index
    %276 = vector.load %arg11[%c128_111, %c0_112] : memref<288x384xbf16, #tpu.memory_space<vmem>>, vector<16x384xbf16>
    tpu.vector_store %arg11[%c128_111, %c0_112], %275 {strides = array<i32>} : memref<288x384xbf16, #tpu.memory_space<vmem>>, vector<16x384xbf16>,
    %c128_113 = arith.constant 128 : index
    %c0_114 = arith.constant 0 : index
    %277 = vector.load %arg10[%c128_113, %c0_114] : memref<288x384xbf16, #tpu.memory_space<vmem>>, vector<128x384xbf16>
    %c0_115 = arith.constant 0 : index
    %c0_116 = arith.constant 0 : index
    %c0_117 = arith.constant 0 : index
    %278 = vector.load %arg4[%c0_115, %c0_116, %c0_117] : memref<3x384x128xbf16, #tpu.memory_space<vmem>>, vector<1x384x128xbf16>
    %279 = vector.shape_cast %278 : vector<1x384x128xbf16> to vector<384x128xbf16>
    %cst_118 = arith.constant dense<0.000000e+00> : vector<128x128xf32>
    %280 = tpu.matmul %277, %279, %cst_118 {dimension_numbers = #tpu.dot_dimension_numbers<[1], [0], [0], [1], [0, 0, 1, 1], [], []>} : vector<128x384xbf16>, vector<384x128xbf16>, vector<128x128xf32> -> vector<128x128xf32>
    %c144_119 = arith.constant 144 : index
    %c0_120 = arith.constant 0 : index
    %281 = vector.load %arg10[%c144_119, %c0_120] : memref<288x384xbf16, #tpu.memory_space<vmem>>, vector<128x384xbf16>
    %c1_121 = arith.constant 1 : index
    %c0_122 = arith.constant 0 : index
    %c0_123 = arith.constant 0 : index
    %282 = vector.load %arg4[%c1_121, %c0_122, %c0_123] : memref<3x384x128xbf16, #tpu.memory_space<vmem>>, vector<1x384x128xbf16>
    %283 = vector.shape_cast %282 : vector<1x384x128xbf16> to vector<384x128xbf16>
    %cst_124 = arith.constant dense<0.000000e+00> : vector<128x128xf32>
    %284 = tpu.matmul %281, %283, %cst_124 {dimension_numbers = #tpu.dot_dimension_numbers<[1], [0], [0], [1], [0, 0, 1, 1], [], []>} : vector<128x384xbf16>, vector<384x128xbf16>, vector<128x128xf32> -> vector<128x128xf32>
    %285 = arith.addf %280, %284 : vector<128x128xf32>
    %c160_125 = arith.constant 160 : index
    %c0_126 = arith.constant 0 : index
    %286 = vector.load %arg10[%c160_125, %c0_126] : memref<288x384xbf16, #tpu.memory_space<vmem>>, vector<128x384xbf16>
    %c2_127 = arith.constant 2 : index
    %c0_128 = arith.constant 0 : index
    %c0_129 = arith.constant 0 : index
    %287 = vector.load %arg4[%c2_127, %c0_128, %c0_129] : memref<3x384x128xbf16, #tpu.memory_space<vmem>>, vector<1x384x128xbf16>
    %288 = vector.shape_cast %287 : vector<1x384x128xbf16> to vector<384x128xbf16>
    %cst_130 = arith.constant dense<0.000000e+00> : vector<128x128xf32>
    %289 = tpu.matmul %286, %288, %cst_130 {dimension_numbers = #tpu.dot_dimension_numbers<[1], [0], [0], [1], [0, 0, 1, 1], [], []>} : vector<128x384xbf16>, vector<384x128xbf16>, vector<128x128xf32> -> vector<128x128xf32>
    %290 = arith.addf %285, %289 : vector<128x128xf32>
    %c0_131 = arith.constant 0 : index
    %c0_132 = arith.constant 0 : index
    %291 = vector.load %arg5[%c0_131, %c0_132] : memref<1x128xf32, #tpu.memory_space<vmem>>, vector<1x128xf32>
    %292 = vector.broadcast %291 : vector<1x128xf32> to vector<128x128xf32>
    %293 = arith.addf %290, %292 : vector<128x128xf32>
    %294 = vector.extract_strided_slice %293 {offsets = [0, 0], sizes = [16, 128], strides = [1, 1]} : vector<128x128xf32> to vector<16x128xf32>
    %cst_133 = arith.constant 0.000000e+00 : f32
    %295 = vector.broadcast %cst_133 : f32 to vector<16x128xf32>
    %296 = arith.maximumf %294, %295 : vector<16x128xf32>
    %297 = vector.extract_strided_slice %296 {offsets = [0, 0], sizes = [15, 128], strides = [1, 1]} : vector<16x128xf32> to vector<15x128xf32>
    %298 = tpu.concatenate %5, %297 in 0 : vector<1x128xf32>, vector<15x128xf32> -> vector<16x128xf32>
    %299 = vector.extract_strided_slice %296 {offsets = [1, 0], sizes = [15, 128], strides = [1, 1]} : vector<16x128xf32> to vector<15x128xf32>
    %300 = tpu.concatenate %299, %5 in 0 : vector<15x128xf32>, vector<1x128xf32> -> vector<16x128xf32>
    %301 = tpu.concatenate %298, %296, %300 in 1 : vector<16x128xf32>, vector<16x128xf32>, vector<16x128xf32> -> vector<16x384xf32>
    %302 = arith.truncf %301 : vector<16x384xf32> to vector<16x384xbf16>
    %c144_134 = arith.constant 144 : index
    %c0_135 = arith.constant 0 : index
    %303 = vector.load %arg11[%c144_134, %c0_135] : memref<288x384xbf16, #tpu.memory_space<vmem>>, vector<16x384xbf16>
    tpu.vector_store %arg11[%c144_134, %c0_135], %302 {strides = array<i32>} : memref<288x384xbf16, #tpu.memory_space<vmem>>, vector<16x384xbf16>,
    %304 = vector.extract_strided_slice %293 {offsets = [16, 0], sizes = [16, 128], strides = [1, 1]} : vector<128x128xf32> to vector<16x128xf32>
    %cst_136 = arith.constant 0.000000e+00 : f32
    %305 = vector.broadcast %cst_136 : f32 to vector<16x128xf32>
    %306 = arith.maximumf %304, %305 : vector<16x128xf32>
    %307 = vector.extract_strided_slice %306 {offsets = [0, 0], sizes = [15, 128], strides = [1, 1]} : vector<16x128xf32> to vector<15x128xf32>
    %308 = tpu.concatenate %5, %307 in 0 : vector<1x128xf32>, vector<15x128xf32> -> vector<16x128xf32>
    %309 = vector.extract_strided_slice %306 {offsets = [1, 0], sizes = [15, 128], strides = [1, 1]} : vector<16x128xf32> to vector<15x128xf32>
    %310 = tpu.concatenate %309, %5 in 0 : vector<15x128xf32>, vector<1x128xf32> -> vector<16x128xf32>
    %311 = tpu.concatenate %308, %306, %310 in 1 : vector<16x128xf32>, vector<16x128xf32>, vector<16x128xf32> -> vector<16x384xf32>
    %312 = arith.truncf %311 : vector<16x384xf32> to vector<16x384xbf16>
    %c160_137 = arith.constant 160 : index
    %c0_138 = arith.constant 0 : index
    %313 = vector.load %arg11[%c160_137, %c0_138] : memref<288x384xbf16, #tpu.memory_space<vmem>>, vector<16x384xbf16>
    tpu.vector_store %arg11[%c160_137, %c0_138], %312 {strides = array<i32>} : memref<288x384xbf16, #tpu.memory_space<vmem>>, vector<16x384xbf16>,
    %314 = vector.extract_strided_slice %293 {offsets = [32, 0], sizes = [16, 128], strides = [1, 1]} : vector<128x128xf32> to vector<16x128xf32>
    %cst_139 = arith.constant 0.000000e+00 : f32
    %315 = vector.broadcast %cst_139 : f32 to vector<16x128xf32>
    %316 = arith.maximumf %314, %315 : vector<16x128xf32>
    %317 = vector.extract_strided_slice %316 {offsets = [0, 0], sizes = [15, 128], strides = [1, 1]} : vector<16x128xf32> to vector<15x128xf32>
    %318 = tpu.concatenate %5, %317 in 0 : vector<1x128xf32>, vector<15x128xf32> -> vector<16x128xf32>
    %319 = vector.extract_strided_slice %316 {offsets = [1, 0], sizes = [15, 128], strides = [1, 1]} : vector<16x128xf32> to vector<15x128xf32>
    %320 = tpu.concatenate %319, %5 in 0 : vector<15x128xf32>, vector<1x128xf32> -> vector<16x128xf32>
    %321 = tpu.concatenate %318, %316, %320 in 1 : vector<16x128xf32>, vector<16x128xf32>, vector<16x128xf32> -> vector<16x384xf32>
    %322 = arith.truncf %321 : vector<16x384xf32> to vector<16x384xbf16>
    %c176_140 = arith.constant 176 : index
    %c0_141 = arith.constant 0 : index
    %323 = vector.load %arg11[%c176_140, %c0_141] : memref<288x384xbf16, #tpu.memory_space<vmem>>, vector<16x384xbf16>
    tpu.vector_store %arg11[%c176_140, %c0_141], %322 {strides = array<i32>} : memref<288x384xbf16, #tpu.memory_space<vmem>>, vector<16x384xbf16>,
    %324 = vector.extract_strided_slice %293 {offsets = [48, 0], sizes = [16, 128], strides = [1, 1]} : vector<128x128xf32> to vector<16x128xf32>
    %cst_142 = arith.constant 0.000000e+00 : f32
    %325 = vector.broadcast %cst_142 : f32 to vector<16x128xf32>
    %326 = arith.maximumf %324, %325 : vector<16x128xf32>
    %327 = vector.extract_strided_slice %326 {offsets = [0, 0], sizes = [15, 128], strides = [1, 1]} : vector<16x128xf32> to vector<15x128xf32>
    %328 = tpu.concatenate %5, %327 in 0 : vector<1x128xf32>, vector<15x128xf32> -> vector<16x128xf32>
    %329 = vector.extract_strided_slice %326 {offsets = [1, 0], sizes = [15, 128], strides = [1, 1]} : vector<16x128xf32> to vector<15x128xf32>
    %330 = tpu.concatenate %329, %5 in 0 : vector<15x128xf32>, vector<1x128xf32> -> vector<16x128xf32>
    %331 = tpu.concatenate %328, %326, %330 in 1 : vector<16x128xf32>, vector<16x128xf32>, vector<16x128xf32> -> vector<16x384xf32>
    %332 = arith.truncf %331 : vector<16x384xf32> to vector<16x384xbf16>
    %c192_143 = arith.constant 192 : index
    %c0_144 = arith.constant 0 : index
    %333 = vector.load %arg11[%c192_143, %c0_144] : memref<288x384xbf16, #tpu.memory_space<vmem>>, vector<16x384xbf16>
    tpu.vector_store %arg11[%c192_143, %c0_144], %332 {strides = array<i32>} : memref<288x384xbf16, #tpu.memory_space<vmem>>, vector<16x384xbf16>,
    %334 = vector.extract_strided_slice %293 {offsets = [64, 0], sizes = [16, 128], strides = [1, 1]} : vector<128x128xf32> to vector<16x128xf32>
    %cst_145 = arith.constant 0.000000e+00 : f32
    %335 = vector.broadcast %cst_145 : f32 to vector<16x128xf32>
    %336 = arith.maximumf %334, %335 : vector<16x128xf32>
    %337 = vector.extract_strided_slice %336 {offsets = [0, 0], sizes = [15, 128], strides = [1, 1]} : vector<16x128xf32> to vector<15x128xf32>
    %338 = tpu.concatenate %5, %337 in 0 : vector<1x128xf32>, vector<15x128xf32> -> vector<16x128xf32>
    %339 = vector.extract_strided_slice %336 {offsets = [1, 0], sizes = [15, 128], strides = [1, 1]} : vector<16x128xf32> to vector<15x128xf32>
    %340 = tpu.concatenate %339, %5 in 0 : vector<15x128xf32>, vector<1x128xf32> -> vector<16x128xf32>
    %341 = tpu.concatenate %338, %336, %340 in 1 : vector<16x128xf32>, vector<16x128xf32>, vector<16x128xf32> -> vector<16x384xf32>
    %342 = arith.truncf %341 : vector<16x384xf32> to vector<16x384xbf16>
    %c208_146 = arith.constant 208 : index
    %c0_147 = arith.constant 0 : index
    %343 = vector.load %arg11[%c208_146, %c0_147] : memref<288x384xbf16, #tpu.memory_space<vmem>>, vector<16x384xbf16>
    tpu.vector_store %arg11[%c208_146, %c0_147], %342 {strides = array<i32>} : memref<288x384xbf16, #tpu.memory_space<vmem>>, vector<16x384xbf16>,
    %344 = vector.extract_strided_slice %293 {offsets = [80, 0], sizes = [16, 128], strides = [1, 1]} : vector<128x128xf32> to vector<16x128xf32>
    %cst_148 = arith.constant 0.000000e+00 : f32
    %345 = vector.broadcast %cst_148 : f32 to vector<16x128xf32>
    %346 = arith.maximumf %344, %345 : vector<16x128xf32>
    %347 = vector.extract_strided_slice %346 {offsets = [0, 0], sizes = [15, 128], strides = [1, 1]} : vector<16x128xf32> to vector<15x128xf32>
    %348 = tpu.concatenate %5, %347 in 0 : vector<1x128xf32>, vector<15x128xf32> -> vector<16x128xf32>
    %349 = vector.extract_strided_slice %346 {offsets = [1, 0], sizes = [15, 128], strides = [1, 1]} : vector<16x128xf32> to vector<15x128xf32>
    %350 = tpu.concatenate %349, %5 in 0 : vector<15x128xf32>, vector<1x128xf32> -> vector<16x128xf32>
    %351 = tpu.concatenate %348, %346, %350 in 1 : vector<16x128xf32>, vector<16x128xf32>, vector<16x128xf32> -> vector<16x384xf32>
    %352 = arith.truncf %351 : vector<16x384xf32> to vector<16x384xbf16>
    %c224_149 = arith.constant 224 : index
    %c0_150 = arith.constant 0 : index
    %353 = vector.load %arg11[%c224_149, %c0_150] : memref<288x384xbf16, #tpu.memory_space<vmem>>, vector<16x384xbf16>
    tpu.vector_store %arg11[%c224_149, %c0_150], %352 {strides = array<i32>} : memref<288x384xbf16, #tpu.memory_space<vmem>>, vector<16x384xbf16>,
    %354 = vector.extract_strided_slice %293 {offsets = [96, 0], sizes = [16, 128], strides = [1, 1]} : vector<128x128xf32> to vector<16x128xf32>
    %cst_151 = arith.constant 0.000000e+00 : f32
    %355 = vector.broadcast %cst_151 : f32 to vector<16x128xf32>
    %356 = arith.maximumf %354, %355 : vector<16x128xf32>
    %357 = vector.extract_strided_slice %356 {offsets = [0, 0], sizes = [15, 128], strides = [1, 1]} : vector<16x128xf32> to vector<15x128xf32>
    %358 = tpu.concatenate %5, %357 in 0 : vector<1x128xf32>, vector<15x128xf32> -> vector<16x128xf32>
    %359 = vector.extract_strided_slice %356 {offsets = [1, 0], sizes = [15, 128], strides = [1, 1]} : vector<16x128xf32> to vector<15x128xf32>
    %360 = tpu.concatenate %359, %5 in 0 : vector<15x128xf32>, vector<1x128xf32> -> vector<16x128xf32>
    %361 = tpu.concatenate %358, %356, %360 in 1 : vector<16x128xf32>, vector<16x128xf32>, vector<16x128xf32> -> vector<16x384xf32>
    %362 = arith.truncf %361 : vector<16x384xf32> to vector<16x384xbf16>
    %c240_152 = arith.constant 240 : index
    %c0_153 = arith.constant 0 : index
    %363 = vector.load %arg11[%c240_152, %c0_153] : memref<288x384xbf16, #tpu.memory_space<vmem>>, vector<16x384xbf16>
    tpu.vector_store %arg11[%c240_152, %c0_153], %362 {strides = array<i32>} : memref<288x384xbf16, #tpu.memory_space<vmem>>, vector<16x384xbf16>,
    %364 = vector.extract_strided_slice %293 {offsets = [112, 0], sizes = [16, 128], strides = [1, 1]} : vector<128x128xf32> to vector<16x128xf32>
    %cst_154 = arith.constant 0.000000e+00 : f32
    %365 = vector.broadcast %cst_154 : f32 to vector<16x128xf32>
    %366 = arith.maximumf %364, %365 : vector<16x128xf32>
    %367 = vector.extract_strided_slice %366 {offsets = [0, 0], sizes = [15, 128], strides = [1, 1]} : vector<16x128xf32> to vector<15x128xf32>
    %368 = tpu.concatenate %5, %367 in 0 : vector<1x128xf32>, vector<15x128xf32> -> vector<16x128xf32>
    %369 = vector.extract_strided_slice %366 {offsets = [1, 0], sizes = [15, 128], strides = [1, 1]} : vector<16x128xf32> to vector<15x128xf32>
    %370 = tpu.concatenate %369, %5 in 0 : vector<15x128xf32>, vector<1x128xf32> -> vector<16x128xf32>
    %371 = tpu.concatenate %368, %366, %370 in 1 : vector<16x128xf32>, vector<16x128xf32>, vector<16x128xf32> -> vector<16x384xf32>
    %372 = arith.truncf %371 : vector<16x384xf32> to vector<16x384xbf16>
    %c256_155 = arith.constant 256 : index
    %c0_156 = arith.constant 0 : index
    %373 = vector.load %arg11[%c256_155, %c0_156] : memref<288x384xbf16, #tpu.memory_space<vmem>>, vector<16x384xbf16>
    tpu.vector_store %arg11[%c256_155, %c0_156], %372 {strides = array<i32>} : memref<288x384xbf16, #tpu.memory_space<vmem>>, vector<16x384xbf16>,
    %c0_157 = arith.constant 0 : index
    %c0_158 = arith.constant 0 : index
    %374 = vector.load %arg11[%c0_157, %c0_158] : memref<288x384xbf16, #tpu.memory_space<vmem>>, vector<128x384xbf16>
    %c0_159 = arith.constant 0 : index
    %c0_160 = arith.constant 0 : index
    %c0_161 = arith.constant 0 : index
    %375 = vector.load %arg6[%c0_159, %c0_160, %c0_161] : memref<3x384x128xbf16, #tpu.memory_space<vmem>>, vector<1x384x128xbf16>
    %376 = vector.shape_cast %375 : vector<1x384x128xbf16> to vector<384x128xbf16>
    %cst_162 = arith.constant dense<0.000000e+00> : vector<128x128xf32>
    %377 = tpu.matmul %374, %376, %cst_162 {dimension_numbers = #tpu.dot_dimension_numbers<[1], [0], [0], [1], [0, 0, 1, 1], [], []>} : vector<128x384xbf16>, vector<384x128xbf16>, vector<128x128xf32> -> vector<128x128xf32>
    %c16_163 = arith.constant 16 : index
    %c0_164 = arith.constant 0 : index
    %378 = vector.load %arg11[%c16_163, %c0_164] : memref<288x384xbf16, #tpu.memory_space<vmem>>, vector<128x384xbf16>
    %c1_165 = arith.constant 1 : index
    %c0_166 = arith.constant 0 : index
    %c0_167 = arith.constant 0 : index
    %379 = vector.load %arg6[%c1_165, %c0_166, %c0_167] : memref<3x384x128xbf16, #tpu.memory_space<vmem>>, vector<1x384x128xbf16>
    %380 = vector.shape_cast %379 : vector<1x384x128xbf16> to vector<384x128xbf16>
    %cst_168 = arith.constant dense<0.000000e+00> : vector<128x128xf32>
    %381 = tpu.matmul %378, %380, %cst_168 {dimension_numbers = #tpu.dot_dimension_numbers<[1], [0], [0], [1], [0, 0, 1, 1], [], []>} : vector<128x384xbf16>, vector<384x128xbf16>, vector<128x128xf32> -> vector<128x128xf32>
    %382 = arith.addf %377, %381 : vector<128x128xf32>
    %c32_169 = arith.constant 32 : index
    %c0_170 = arith.constant 0 : index
    %383 = vector.load %arg11[%c32_169, %c0_170] : memref<288x384xbf16, #tpu.memory_space<vmem>>, vector<128x384xbf16>
    %c2_171 = arith.constant 2 : index
    %c0_172 = arith.constant 0 : index
    %c0_173 = arith.constant 0 : index
    %384 = vector.load %arg6[%c2_171, %c0_172, %c0_173] : memref<3x384x128xbf16, #tpu.memory_space<vmem>>, vector<1x384x128xbf16>
    %385 = vector.shape_cast %384 : vector<1x384x128xbf16> to vector<384x128xbf16>
    %cst_174 = arith.constant dense<0.000000e+00> : vector<128x128xf32>
    %386 = tpu.matmul %383, %385, %cst_174 {dimension_numbers = #tpu.dot_dimension_numbers<[1], [0], [0], [1], [0, 0, 1, 1], [], []>} : vector<128x384xbf16>, vector<384x128xbf16>, vector<128x128xf32> -> vector<128x128xf32>
    %387 = arith.addf %382, %386 : vector<128x128xf32>
    %c0_175 = arith.constant 0 : index
    %c0_176 = arith.constant 0 : index
    %388 = vector.load %arg7[%c0_175, %c0_176] : memref<1x128xf32, #tpu.memory_space<vmem>>, vector<1x128xf32>
    %389 = vector.broadcast %388 : vector<1x128xf32> to vector<128x128xf32>
    %390 = arith.addf %387, %389 : vector<128x128xf32>
    %391 = vector.extract_strided_slice %390 {offsets = [0, 0], sizes = [16, 128], strides = [1, 1]} : vector<128x128xf32> to vector<16x128xf32>
    %c0_177 = arith.constant 0 : index
    %c0_178 = arith.constant 0 : index
    %392 = vector.load %arg9[%c0_177, %c0_178] : memref<256x128xbf16, #tpu.memory_space<vmem>>, vector<16x128xbf16>
    %393 = arith.extf %392 : vector<16x128xbf16> to vector<16x128xf32>
    %394 = arith.addf %391, %393 : vector<16x128xf32>
    %cst_179 = arith.constant 0.000000e+00 : f32
    %395 = vector.broadcast %cst_179 : f32 to vector<16x128xf32>
    %396 = arith.maximumf %394, %395 : vector<16x128xf32>
    %c0_180 = arith.constant 0 : index
    %c0_181 = arith.constant 0 : index
    %c0_182 = arith.constant 0 : index
    %c0_183 = arith.constant 0 : index
    %397 = vector.load %arg8[%c0_180, %c0_181, %c0_182, %c0_183] : memref<1x16x16x128xf32, #tpu.memory_space<vmem>>, vector<1x1x16x128xf32>
    %398 = vector.shape_cast %397 : vector<1x1x16x128xf32> to vector<16x128xf32>
    %399 = vector.shape_cast %396 : vector<16x128xf32> to vector<1x1x16x128xf32>
    tpu.vector_store %arg8[%c0_180, %c0_181, %c0_182, %c0_183], %399 {strides = array<i32>} : memref<1x16x16x128xf32, #tpu.memory_space<vmem>>, vector<1x1x16x128xf32>,
    %400 = vector.extract_strided_slice %390 {offsets = [16, 0], sizes = [16, 128], strides = [1, 1]} : vector<128x128xf32> to vector<16x128xf32>
    %c16_184 = arith.constant 16 : index
    %c0_185 = arith.constant 0 : index
    %401 = vector.load %arg9[%c16_184, %c0_185] : memref<256x128xbf16, #tpu.memory_space<vmem>>, vector<16x128xbf16>
    %402 = arith.extf %401 : vector<16x128xbf16> to vector<16x128xf32>
    %403 = arith.addf %400, %402 : vector<16x128xf32>
    %cst_186 = arith.constant 0.000000e+00 : f32
    %404 = vector.broadcast %cst_186 : f32 to vector<16x128xf32>
    %405 = arith.maximumf %403, %404 : vector<16x128xf32>
    %c0_187 = arith.constant 0 : index
    %c1_188 = arith.constant 1 : index
    %c0_189 = arith.constant 0 : index
    %c0_190 = arith.constant 0 : index
    %406 = vector.load %arg8[%c0_187, %c1_188, %c0_189, %c0_190] : memref<1x16x16x128xf32, #tpu.memory_space<vmem>>, vector<1x1x16x128xf32>
    %407 = vector.shape_cast %406 : vector<1x1x16x128xf32> to vector<16x128xf32>
    %408 = vector.shape_cast %405 : vector<16x128xf32> to vector<1x1x16x128xf32>
    tpu.vector_store %arg8[%c0_187, %c1_188, %c0_189, %c0_190], %408 {strides = array<i32>} : memref<1x16x16x128xf32, #tpu.memory_space<vmem>>, vector<1x1x16x128xf32>,
    %409 = vector.extract_strided_slice %390 {offsets = [32, 0], sizes = [16, 128], strides = [1, 1]} : vector<128x128xf32> to vector<16x128xf32>
    %c32_191 = arith.constant 32 : index
    %c0_192 = arith.constant 0 : index
    %410 = vector.load %arg9[%c32_191, %c0_192] : memref<256x128xbf16, #tpu.memory_space<vmem>>, vector<16x128xbf16>
    %411 = arith.extf %410 : vector<16x128xbf16> to vector<16x128xf32>
    %412 = arith.addf %409, %411 : vector<16x128xf32>
    %cst_193 = arith.constant 0.000000e+00 : f32
    %413 = vector.broadcast %cst_193 : f32 to vector<16x128xf32>
    %414 = arith.maximumf %412, %413 : vector<16x128xf32>
    %c0_194 = arith.constant 0 : index
    %c2_195 = arith.constant 2 : index
    %c0_196 = arith.constant 0 : index
    %c0_197 = arith.constant 0 : index
    %415 = vector.load %arg8[%c0_194, %c2_195, %c0_196, %c0_197] : memref<1x16x16x128xf32, #tpu.memory_space<vmem>>, vector<1x1x16x128xf32>
    %416 = vector.shape_cast %415 : vector<1x1x16x128xf32> to vector<16x128xf32>
    %417 = vector.shape_cast %414 : vector<16x128xf32> to vector<1x1x16x128xf32>
    tpu.vector_store %arg8[%c0_194, %c2_195, %c0_196, %c0_197], %417 {strides = array<i32>} : memref<1x16x16x128xf32, #tpu.memory_space<vmem>>, vector<1x1x16x128xf32>,
    %418 = vector.extract_strided_slice %390 {offsets = [48, 0], sizes = [16, 128], strides = [1, 1]} : vector<128x128xf32> to vector<16x128xf32>
    %c48_198 = arith.constant 48 : index
    %c0_199 = arith.constant 0 : index
    %419 = vector.load %arg9[%c48_198, %c0_199] : memref<256x128xbf16, #tpu.memory_space<vmem>>, vector<16x128xbf16>
    %420 = arith.extf %419 : vector<16x128xbf16> to vector<16x128xf32>
    %421 = arith.addf %418, %420 : vector<16x128xf32>
    %cst_200 = arith.constant 0.000000e+00 : f32
    %422 = vector.broadcast %cst_200 : f32 to vector<16x128xf32>
    %423 = arith.maximumf %421, %422 : vector<16x128xf32>
    %c0_201 = arith.constant 0 : index
    %c3 = arith.constant 3 : index
    %c0_202 = arith.constant 0 : index
    %c0_203 = arith.constant 0 : index
    %424 = vector.load %arg8[%c0_201, %c3, %c0_202, %c0_203] : memref<1x16x16x128xf32, #tpu.memory_space<vmem>>, vector<1x1x16x128xf32>
    %425 = vector.shape_cast %424 : vector<1x1x16x128xf32> to vector<16x128xf32>
    %426 = vector.shape_cast %423 : vector<16x128xf32> to vector<1x1x16x128xf32>
    tpu.vector_store %arg8[%c0_201, %c3, %c0_202, %c0_203], %426 {strides = array<i32>} : memref<1x16x16x128xf32, #tpu.memory_space<vmem>>, vector<1x1x16x128xf32>,
    %427 = vector.extract_strided_slice %390 {offsets = [64, 0], sizes = [16, 128], strides = [1, 1]} : vector<128x128xf32> to vector<16x128xf32>
    %c64_204 = arith.constant 64 : index
    %c0_205 = arith.constant 0 : index
    %428 = vector.load %arg9[%c64_204, %c0_205] : memref<256x128xbf16, #tpu.memory_space<vmem>>, vector<16x128xbf16>
    %429 = arith.extf %428 : vector<16x128xbf16> to vector<16x128xf32>
    %430 = arith.addf %427, %429 : vector<16x128xf32>
    %cst_206 = arith.constant 0.000000e+00 : f32
    %431 = vector.broadcast %cst_206 : f32 to vector<16x128xf32>
    %432 = arith.maximumf %430, %431 : vector<16x128xf32>
    %c0_207 = arith.constant 0 : index
    %c4 = arith.constant 4 : index
    %c0_208 = arith.constant 0 : index
    %c0_209 = arith.constant 0 : index
    %433 = vector.load %arg8[%c0_207, %c4, %c0_208, %c0_209] : memref<1x16x16x128xf32, #tpu.memory_space<vmem>>, vector<1x1x16x128xf32>
    %434 = vector.shape_cast %433 : vector<1x1x16x128xf32> to vector<16x128xf32>
    %435 = vector.shape_cast %432 : vector<16x128xf32> to vector<1x1x16x128xf32>
    tpu.vector_store %arg8[%c0_207, %c4, %c0_208, %c0_209], %435 {strides = array<i32>} : memref<1x16x16x128xf32, #tpu.memory_space<vmem>>, vector<1x1x16x128xf32>,
    %436 = vector.extract_strided_slice %390 {offsets = [80, 0], sizes = [16, 128], strides = [1, 1]} : vector<128x128xf32> to vector<16x128xf32>
    %c80_210 = arith.constant 80 : index
    %c0_211 = arith.constant 0 : index
    %437 = vector.load %arg9[%c80_210, %c0_211] : memref<256x128xbf16, #tpu.memory_space<vmem>>, vector<16x128xbf16>
    %438 = arith.extf %437 : vector<16x128xbf16> to vector<16x128xf32>
    %439 = arith.addf %436, %438 : vector<16x128xf32>
    %cst_212 = arith.constant 0.000000e+00 : f32
    %440 = vector.broadcast %cst_212 : f32 to vector<16x128xf32>
    %441 = arith.maximumf %439, %440 : vector<16x128xf32>
    %c0_213 = arith.constant 0 : index
    %c5 = arith.constant 5 : index
    %c0_214 = arith.constant 0 : index
    %c0_215 = arith.constant 0 : index
    %442 = vector.load %arg8[%c0_213, %c5, %c0_214, %c0_215] : memref<1x16x16x128xf32, #tpu.memory_space<vmem>>, vector<1x1x16x128xf32>
    %443 = vector.shape_cast %442 : vector<1x1x16x128xf32> to vector<16x128xf32>
    %444 = vector.shape_cast %441 : vector<16x128xf32> to vector<1x1x16x128xf32>
    tpu.vector_store %arg8[%c0_213, %c5, %c0_214, %c0_215], %444 {strides = array<i32>} : memref<1x16x16x128xf32, #tpu.memory_space<vmem>>, vector<1x1x16x128xf32>,
    %445 = vector.extract_strided_slice %390 {offsets = [96, 0], sizes = [16, 128], strides = [1, 1]} : vector<128x128xf32> to vector<16x128xf32>
    %c96_216 = arith.constant 96 : index
    %c0_217 = arith.constant 0 : index
    %446 = vector.load %arg9[%c96_216, %c0_217] : memref<256x128xbf16, #tpu.memory_space<vmem>>, vector<16x128xbf16>
    %447 = arith.extf %446 : vector<16x128xbf16> to vector<16x128xf32>
    %448 = arith.addf %445, %447 : vector<16x128xf32>
    %cst_218 = arith.constant 0.000000e+00 : f32
    %449 = vector.broadcast %cst_218 : f32 to vector<16x128xf32>
    %450 = arith.maximumf %448, %449 : vector<16x128xf32>
    %c0_219 = arith.constant 0 : index
    %c6 = arith.constant 6 : index
    %c0_220 = arith.constant 0 : index
    %c0_221 = arith.constant 0 : index
    %451 = vector.load %arg8[%c0_219, %c6, %c0_220, %c0_221] : memref<1x16x16x128xf32, #tpu.memory_space<vmem>>, vector<1x1x16x128xf32>
    %452 = vector.shape_cast %451 : vector<1x1x16x128xf32> to vector<16x128xf32>
    %453 = vector.shape_cast %450 : vector<16x128xf32> to vector<1x1x16x128xf32>
    tpu.vector_store %arg8[%c0_219, %c6, %c0_220, %c0_221], %453 {strides = array<i32>} : memref<1x16x16x128xf32, #tpu.memory_space<vmem>>, vector<1x1x16x128xf32>,
    %454 = vector.extract_strided_slice %390 {offsets = [112, 0], sizes = [16, 128], strides = [1, 1]} : vector<128x128xf32> to vector<16x128xf32>
    %c112_222 = arith.constant 112 : index
    %c0_223 = arith.constant 0 : index
    %455 = vector.load %arg9[%c112_222, %c0_223] : memref<256x128xbf16, #tpu.memory_space<vmem>>, vector<16x128xbf16>
    %456 = arith.extf %455 : vector<16x128xbf16> to vector<16x128xf32>
    %457 = arith.addf %454, %456 : vector<16x128xf32>
    %cst_224 = arith.constant 0.000000e+00 : f32
    %458 = vector.broadcast %cst_224 : f32 to vector<16x128xf32>
    %459 = arith.maximumf %457, %458 : vector<16x128xf32>
    %c0_225 = arith.constant 0 : index
    %c7 = arith.constant 7 : index
    %c0_226 = arith.constant 0 : index
    %c0_227 = arith.constant 0 : index
    %460 = vector.load %arg8[%c0_225, %c7, %c0_226, %c0_227] : memref<1x16x16x128xf32, #tpu.memory_space<vmem>>, vector<1x1x16x128xf32>
    %461 = vector.shape_cast %460 : vector<1x1x16x128xf32> to vector<16x128xf32>
    %462 = vector.shape_cast %459 : vector<16x128xf32> to vector<1x1x16x128xf32>
    tpu.vector_store %arg8[%c0_225, %c7, %c0_226, %c0_227], %462 {strides = array<i32>} : memref<1x16x16x128xf32, #tpu.memory_space<vmem>>, vector<1x1x16x128xf32>,
    %c128_228 = arith.constant 128 : index
    %c0_229 = arith.constant 0 : index
    %463 = vector.load %arg11[%c128_228, %c0_229] : memref<288x384xbf16, #tpu.memory_space<vmem>>, vector<128x384xbf16>
    %c0_230 = arith.constant 0 : index
    %c0_231 = arith.constant 0 : index
    %c0_232 = arith.constant 0 : index
    %464 = vector.load %arg6[%c0_230, %c0_231, %c0_232] : memref<3x384x128xbf16, #tpu.memory_space<vmem>>, vector<1x384x128xbf16>
    %465 = vector.shape_cast %464 : vector<1x384x128xbf16> to vector<384x128xbf16>
    %cst_233 = arith.constant dense<0.000000e+00> : vector<128x128xf32>
    %466 = tpu.matmul %463, %465, %cst_233 {dimension_numbers = #tpu.dot_dimension_numbers<[1], [0], [0], [1], [0, 0, 1, 1], [], []>} : vector<128x384xbf16>, vector<384x128xbf16>, vector<128x128xf32> -> vector<128x128xf32>
    %c144_234 = arith.constant 144 : index
    %c0_235 = arith.constant 0 : index
    %467 = vector.load %arg11[%c144_234, %c0_235] : memref<288x384xbf16, #tpu.memory_space<vmem>>, vector<128x384xbf16>
    %c1_236 = arith.constant 1 : index
    %c0_237 = arith.constant 0 : index
    %c0_238 = arith.constant 0 : index
    %468 = vector.load %arg6[%c1_236, %c0_237, %c0_238] : memref<3x384x128xbf16, #tpu.memory_space<vmem>>, vector<1x384x128xbf16>
    %469 = vector.shape_cast %468 : vector<1x384x128xbf16> to vector<384x128xbf16>
    %cst_239 = arith.constant dense<0.000000e+00> : vector<128x128xf32>
    %470 = tpu.matmul %467, %469, %cst_239 {dimension_numbers = #tpu.dot_dimension_numbers<[1], [0], [0], [1], [0, 0, 1, 1], [], []>} : vector<128x384xbf16>, vector<384x128xbf16>, vector<128x128xf32> -> vector<128x128xf32>
    %471 = arith.addf %466, %470 : vector<128x128xf32>
    %c160_240 = arith.constant 160 : index
    %c0_241 = arith.constant 0 : index
    %472 = vector.load %arg11[%c160_240, %c0_241] : memref<288x384xbf16, #tpu.memory_space<vmem>>, vector<128x384xbf16>
    %c2_242 = arith.constant 2 : index
    %c0_243 = arith.constant 0 : index
    %c0_244 = arith.constant 0 : index
    %473 = vector.load %arg6[%c2_242, %c0_243, %c0_244] : memref<3x384x128xbf16, #tpu.memory_space<vmem>>, vector<1x384x128xbf16>
    %474 = vector.shape_cast %473 : vector<1x384x128xbf16> to vector<384x128xbf16>
    %cst_245 = arith.constant dense<0.000000e+00> : vector<128x128xf32>
    %475 = tpu.matmul %472, %474, %cst_245 {dimension_numbers = #tpu.dot_dimension_numbers<[1], [0], [0], [1], [0, 0, 1, 1], [], []>} : vector<128x384xbf16>, vector<384x128xbf16>, vector<128x128xf32> -> vector<128x128xf32>
    %476 = arith.addf %471, %475 : vector<128x128xf32>
    %c0_246 = arith.constant 0 : index
    %c0_247 = arith.constant 0 : index
    %477 = vector.load %arg7[%c0_246, %c0_247] : memref<1x128xf32, #tpu.memory_space<vmem>>, vector<1x128xf32>
    %478 = vector.broadcast %477 : vector<1x128xf32> to vector<128x128xf32>
    %479 = arith.addf %476, %478 : vector<128x128xf32>
    %480 = vector.extract_strided_slice %479 {offsets = [0, 0], sizes = [16, 128], strides = [1, 1]} : vector<128x128xf32> to vector<16x128xf32>
    %c128_248 = arith.constant 128 : index
    %c0_249 = arith.constant 0 : index
    %481 = vector.load %arg9[%c128_248, %c0_249] : memref<256x128xbf16, #tpu.memory_space<vmem>>, vector<16x128xbf16>
    %482 = arith.extf %481 : vector<16x128xbf16> to vector<16x128xf32>
    %483 = arith.addf %480, %482 : vector<16x128xf32>
    %cst_250 = arith.constant 0.000000e+00 : f32
    %484 = vector.broadcast %cst_250 : f32 to vector<16x128xf32>
    %485 = arith.maximumf %483, %484 : vector<16x128xf32>
    %c0_251 = arith.constant 0 : index
    %c8 = arith.constant 8 : index
    %c0_252 = arith.constant 0 : index
    %c0_253 = arith.constant 0 : index
    %486 = vector.load %arg8[%c0_251, %c8, %c0_252, %c0_253] : memref<1x16x16x128xf32, #tpu.memory_space<vmem>>, vector<1x1x16x128xf32>
    %487 = vector.shape_cast %486 : vector<1x1x16x128xf32> to vector<16x128xf32>
    %488 = vector.shape_cast %485 : vector<16x128xf32> to vector<1x1x16x128xf32>
    tpu.vector_store %arg8[%c0_251, %c8, %c0_252, %c0_253], %488 {strides = array<i32>} : memref<1x16x16x128xf32, #tpu.memory_space<vmem>>, vector<1x1x16x128xf32>,
    %489 = vector.extract_strided_slice %479 {offsets = [16, 0], sizes = [16, 128], strides = [1, 1]} : vector<128x128xf32> to vector<16x128xf32>
    %c144_254 = arith.constant 144 : index
    %c0_255 = arith.constant 0 : index
    %490 = vector.load %arg9[%c144_254, %c0_255] : memref<256x128xbf16, #tpu.memory_space<vmem>>, vector<16x128xbf16>
    %491 = arith.extf %490 : vector<16x128xbf16> to vector<16x128xf32>
    %492 = arith.addf %489, %491 : vector<16x128xf32>
    %cst_256 = arith.constant 0.000000e+00 : f32
    %493 = vector.broadcast %cst_256 : f32 to vector<16x128xf32>
    %494 = arith.maximumf %492, %493 : vector<16x128xf32>
    %c0_257 = arith.constant 0 : index
    %c9 = arith.constant 9 : index
    %c0_258 = arith.constant 0 : index
    %c0_259 = arith.constant 0 : index
    %495 = vector.load %arg8[%c0_257, %c9, %c0_258, %c0_259] : memref<1x16x16x128xf32, #tpu.memory_space<vmem>>, vector<1x1x16x128xf32>
    %496 = vector.shape_cast %495 : vector<1x1x16x128xf32> to vector<16x128xf32>
    %497 = vector.shape_cast %494 : vector<16x128xf32> to vector<1x1x16x128xf32>
    tpu.vector_store %arg8[%c0_257, %c9, %c0_258, %c0_259], %497 {strides = array<i32>} : memref<1x16x16x128xf32, #tpu.memory_space<vmem>>, vector<1x1x16x128xf32>,
    %498 = vector.extract_strided_slice %479 {offsets = [32, 0], sizes = [16, 128], strides = [1, 1]} : vector<128x128xf32> to vector<16x128xf32>
    %c160_260 = arith.constant 160 : index
    %c0_261 = arith.constant 0 : index
    %499 = vector.load %arg9[%c160_260, %c0_261] : memref<256x128xbf16, #tpu.memory_space<vmem>>, vector<16x128xbf16>
    %500 = arith.extf %499 : vector<16x128xbf16> to vector<16x128xf32>
    %501 = arith.addf %498, %500 : vector<16x128xf32>
    %cst_262 = arith.constant 0.000000e+00 : f32
    %502 = vector.broadcast %cst_262 : f32 to vector<16x128xf32>
    %503 = arith.maximumf %501, %502 : vector<16x128xf32>
    %c0_263 = arith.constant 0 : index
    %c10 = arith.constant 10 : index
    %c0_264 = arith.constant 0 : index
    %c0_265 = arith.constant 0 : index
    %504 = vector.load %arg8[%c0_263, %c10, %c0_264, %c0_265] : memref<1x16x16x128xf32, #tpu.memory_space<vmem>>, vector<1x1x16x128xf32>
    %505 = vector.shape_cast %504 : vector<1x1x16x128xf32> to vector<16x128xf32>
    %506 = vector.shape_cast %503 : vector<16x128xf32> to vector<1x1x16x128xf32>
    tpu.vector_store %arg8[%c0_263, %c10, %c0_264, %c0_265], %506 {strides = array<i32>} : memref<1x16x16x128xf32, #tpu.memory_space<vmem>>, vector<1x1x16x128xf32>,
    %507 = vector.extract_strided_slice %479 {offsets = [48, 0], sizes = [16, 128], strides = [1, 1]} : vector<128x128xf32> to vector<16x128xf32>
    %c176_266 = arith.constant 176 : index
    %c0_267 = arith.constant 0 : index
    %508 = vector.load %arg9[%c176_266, %c0_267] : memref<256x128xbf16, #tpu.memory_space<vmem>>, vector<16x128xbf16>
    %509 = arith.extf %508 : vector<16x128xbf16> to vector<16x128xf32>
    %510 = arith.addf %507, %509 : vector<16x128xf32>
    %cst_268 = arith.constant 0.000000e+00 : f32
    %511 = vector.broadcast %cst_268 : f32 to vector<16x128xf32>
    %512 = arith.maximumf %510, %511 : vector<16x128xf32>
    %c0_269 = arith.constant 0 : index
    %c11 = arith.constant 11 : index
    %c0_270 = arith.constant 0 : index
    %c0_271 = arith.constant 0 : index
    %513 = vector.load %arg8[%c0_269, %c11, %c0_270, %c0_271] : memref<1x16x16x128xf32, #tpu.memory_space<vmem>>, vector<1x1x16x128xf32>
    %514 = vector.shape_cast %513 : vector<1x1x16x128xf32> to vector<16x128xf32>
    %515 = vector.shape_cast %512 : vector<16x128xf32> to vector<1x1x16x128xf32>
    tpu.vector_store %arg8[%c0_269, %c11, %c0_270, %c0_271], %515 {strides = array<i32>} : memref<1x16x16x128xf32, #tpu.memory_space<vmem>>, vector<1x1x16x128xf32>,
    %516 = vector.extract_strided_slice %479 {offsets = [64, 0], sizes = [16, 128], strides = [1, 1]} : vector<128x128xf32> to vector<16x128xf32>
    %c192_272 = arith.constant 192 : index
    %c0_273 = arith.constant 0 : index
    %517 = vector.load %arg9[%c192_272, %c0_273] : memref<256x128xbf16, #tpu.memory_space<vmem>>, vector<16x128xbf16>
    %518 = arith.extf %517 : vector<16x128xbf16> to vector<16x128xf32>
    %519 = arith.addf %516, %518 : vector<16x128xf32>
    %cst_274 = arith.constant 0.000000e+00 : f32
    %520 = vector.broadcast %cst_274 : f32 to vector<16x128xf32>
    %521 = arith.maximumf %519, %520 : vector<16x128xf32>
    %c0_275 = arith.constant 0 : index
    %c12 = arith.constant 12 : index
    %c0_276 = arith.constant 0 : index
    %c0_277 = arith.constant 0 : index
    %522 = vector.load %arg8[%c0_275, %c12, %c0_276, %c0_277] : memref<1x16x16x128xf32, #tpu.memory_space<vmem>>, vector<1x1x16x128xf32>
    %523 = vector.shape_cast %522 : vector<1x1x16x128xf32> to vector<16x128xf32>
    %524 = vector.shape_cast %521 : vector<16x128xf32> to vector<1x1x16x128xf32>
    tpu.vector_store %arg8[%c0_275, %c12, %c0_276, %c0_277], %524 {strides = array<i32>} : memref<1x16x16x128xf32, #tpu.memory_space<vmem>>, vector<1x1x16x128xf32>,
    %525 = vector.extract_strided_slice %479 {offsets = [80, 0], sizes = [16, 128], strides = [1, 1]} : vector<128x128xf32> to vector<16x128xf32>
    %c208_278 = arith.constant 208 : index
    %c0_279 = arith.constant 0 : index
    %526 = vector.load %arg9[%c208_278, %c0_279] : memref<256x128xbf16, #tpu.memory_space<vmem>>, vector<16x128xbf16>
    %527 = arith.extf %526 : vector<16x128xbf16> to vector<16x128xf32>
    %528 = arith.addf %525, %527 : vector<16x128xf32>
    %cst_280 = arith.constant 0.000000e+00 : f32
    %529 = vector.broadcast %cst_280 : f32 to vector<16x128xf32>
    %530 = arith.maximumf %528, %529 : vector<16x128xf32>
    %c0_281 = arith.constant 0 : index
    %c13 = arith.constant 13 : index
    %c0_282 = arith.constant 0 : index
    %c0_283 = arith.constant 0 : index
    %531 = vector.load %arg8[%c0_281, %c13, %c0_282, %c0_283] : memref<1x16x16x128xf32, #tpu.memory_space<vmem>>, vector<1x1x16x128xf32>
    %532 = vector.shape_cast %531 : vector<1x1x16x128xf32> to vector<16x128xf32>
    %533 = vector.shape_cast %530 : vector<16x128xf32> to vector<1x1x16x128xf32>
    tpu.vector_store %arg8[%c0_281, %c13, %c0_282, %c0_283], %533 {strides = array<i32>} : memref<1x16x16x128xf32, #tpu.memory_space<vmem>>, vector<1x1x16x128xf32>,
    %534 = vector.extract_strided_slice %479 {offsets = [96, 0], sizes = [16, 128], strides = [1, 1]} : vector<128x128xf32> to vector<16x128xf32>
    %c224_284 = arith.constant 224 : index
    %c0_285 = arith.constant 0 : index
    %535 = vector.load %arg9[%c224_284, %c0_285] : memref<256x128xbf16, #tpu.memory_space<vmem>>, vector<16x128xbf16>
    %536 = arith.extf %535 : vector<16x128xbf16> to vector<16x128xf32>
    %537 = arith.addf %534, %536 : vector<16x128xf32>
    %cst_286 = arith.constant 0.000000e+00 : f32
    %538 = vector.broadcast %cst_286 : f32 to vector<16x128xf32>
    %539 = arith.maximumf %537, %538 : vector<16x128xf32>
    %c0_287 = arith.constant 0 : index
    %c14 = arith.constant 14 : index
    %c0_288 = arith.constant 0 : index
    %c0_289 = arith.constant 0 : index
    %540 = vector.load %arg8[%c0_287, %c14, %c0_288, %c0_289] : memref<1x16x16x128xf32, #tpu.memory_space<vmem>>, vector<1x1x16x128xf32>
    %541 = vector.shape_cast %540 : vector<1x1x16x128xf32> to vector<16x128xf32>
    %542 = vector.shape_cast %539 : vector<16x128xf32> to vector<1x1x16x128xf32>
    tpu.vector_store %arg8[%c0_287, %c14, %c0_288, %c0_289], %542 {strides = array<i32>} : memref<1x16x16x128xf32, #tpu.memory_space<vmem>>, vector<1x1x16x128xf32>,
    %543 = vector.extract_strided_slice %479 {offsets = [112, 0], sizes = [16, 128], strides = [1, 1]} : vector<128x128xf32> to vector<16x128xf32>
    %c240_290 = arith.constant 240 : index
    %c0_291 = arith.constant 0 : index
    %544 = vector.load %arg9[%c240_290, %c0_291] : memref<256x128xbf16, #tpu.memory_space<vmem>>, vector<16x128xbf16>
    %545 = arith.extf %544 : vector<16x128xbf16> to vector<16x128xf32>
    %546 = arith.addf %543, %545 : vector<16x128xf32>
    %cst_292 = arith.constant 0.000000e+00 : f32
    %547 = vector.broadcast %cst_292 : f32 to vector<16x128xf32>
    %548 = arith.maximumf %546, %547 : vector<16x128xf32>
    %c0_293 = arith.constant 0 : index
    %c15 = arith.constant 15 : index
    %c0_294 = arith.constant 0 : index
    %c0_295 = arith.constant 0 : index
    %549 = vector.load %arg8[%c0_293, %c15, %c0_294, %c0_295] : memref<1x16x16x128xf32, #tpu.memory_space<vmem>>, vector<1x1x16x128xf32>
    %550 = vector.shape_cast %549 : vector<1x1x16x128xf32> to vector<16x128xf32>
    %551 = vector.shape_cast %548 : vector<16x128xf32> to vector<1x1x16x128xf32>
    tpu.vector_store %arg8[%c0_293, %c15, %c0_294, %c0_295], %551 {strides = array<i32>} : memref<1x16x16x128xf32, #tpu.memory_space<vmem>>, vector<1x1x16x128xf32>,
    return
  }
  func.func @transform_0(%arg0: i32) -> (i32, i32, i32) {
    %c0_i32 = arith.constant 0 : i32
    %c0_i32_0 = arith.constant 0 : i32
    %c0_i32_1 = arith.constant 0 : i32
    return %arg0, %c0_i32, %c0_i32_0 : i32, i32, i32
  }
  func.func @transform_1(%arg0: i32) -> (i32, i32) {
    %c0_i32 = arith.constant 0 : i32
    %c0_i32_0 = arith.constant 0 : i32
    %c0_i32_1 = arith.constant 0 : i32
    return %c0_i32, %c0_i32_0 : i32, i32
  }
  func.func @transform_2(%arg0: i32) -> (i32, i32) {
    %c0_i32 = arith.constant 0 : i32
    %c0_i32_0 = arith.constant 0 : i32
    %c0_i32_1 = arith.constant 0 : i32
    return %c0_i32, %c0_i32_0 : i32, i32
  }
  func.func @transform_3(%arg0: i32) -> (i32, i32, i32) {
    %c0_i32 = arith.constant 0 : i32
    %c0_i32_0 = arith.constant 0 : i32
    %c0_i32_1 = arith.constant 0 : i32
    %c0_i32_2 = arith.constant 0 : i32
    return %c0_i32, %c0_i32_0, %c0_i32_1 : i32, i32, i32
  }
  func.func @transform_4(%arg0: i32) -> (i32, i32) {
    %c0_i32 = arith.constant 0 : i32
    %c0_i32_0 = arith.constant 0 : i32
    %c0_i32_1 = arith.constant 0 : i32
    return %c0_i32, %c0_i32_0 : i32, i32
  }
  func.func @transform_5(%arg0: i32) -> (i32, i32, i32) {
    %c0_i32 = arith.constant 0 : i32
    %c0_i32_0 = arith.constant 0 : i32
    %c0_i32_1 = arith.constant 0 : i32
    %c0_i32_2 = arith.constant 0 : i32
    return %c0_i32, %c0_i32_0, %c0_i32_1 : i32, i32, i32
  }
  func.func @transform_6(%arg0: i32) -> (i32, i32) {
    %c0_i32 = arith.constant 0 : i32
    %c0_i32_0 = arith.constant 0 : i32
    %c0_i32_1 = arith.constant 0 : i32
    return %c0_i32, %c0_i32_0 : i32, i32
  }
  func.func @transform_7(%arg0: i32) -> (i32, i32, i32, i32) {
    %c0_i32 = arith.constant 0 : i32
    %c0_i32_0 = arith.constant 0 : i32
    %c0_i32_1 = arith.constant 0 : i32
    %c0_i32_2 = arith.constant 0 : i32
    return %arg0, %c0_i32, %c0_i32_0, %c0_i32_1 : i32, i32, i32, i32
  }
}

</mosaic_0001>

<bundles_post_ra>
// kernel: unet_res_conv2_forward.1
= control target key start
LH: loop header
LB: loop body
LE: loop exit
PB: predicated region body
PF: predicated region fallthrough
CT: control target
= control target key end

     0   :  { %12 = vsyncpa [#allocation6], 0  ;;  %s10078_s24 = smov 0   ;;  %s12280_s0 = inlined_call_operand.vmem [shape: bf16[2,256,128], index: 0, kind: input, shape index: {}]   ;;  %s12281_s1 = inlined_call_operand.vmem [shape: bf16[128,128], index: 1, kind: input, shape index: {}]   ;;  %s12282_s2 = inlined_call_operand.vmem [shape: f32[1,128], index: 2, kind: input, shape index: {}]   ;;  %s12283_s3 = inlined_call_operand.vmem [shape: bf16[3,384,128], index: 3, kind: input, shape index: {}]   ;;  %s12284_s4 = inlined_call_operand.vmem [shape: f32[1,128], index: 4, kind: input, shape index: {}]   ;;  %s12285_s5 = inlined_call_operand.hbm [shape: bf16[3,384,128], index: 5, kind: input, shape index: {}]   ;;  %s12286_s6 = inlined_call_operand.vmem [shape: f32[1,128], index: 6, kind: input, shape index: {}]   ;;  %s12287_s7 = inlined_call_operand.vmem [shape: f32[2,16,16,128], index: 7, kind: output, shape index: {}]  }
   0x1 LB: > { %s10084_s25 = sadd.s32 4294967295, %s10031_s24   ;;  %p6685_p0 = scmp.ge.s32.totalorder %s10031_s24, 1  ;;  %s10031_s24 = sphi %s10078_s24, %s18_s24  }
   0x2   : > { %p201_p1 = scmp.lt.s32.totalorder %s10031_s24, 3  ;;  %s10033_s26 = smov [#allocation5]  }
   0x3   : > { %s225_s27 = sshll.u32 %s10033_s26, 4  ;;  %p12288_p3 = scmp.eq.s32.totalorder %s10084_s25, 0  ;;  %s226_s27 = int_to_ptr.vmem [resolvable:$true] %s225_s27 }
   0x4   : > { %p10088_p2 = pnand %p6685_p0, %p201_p1  ;;  %s9993_s9 = scalar_lea.hbm %s12285_s5, 9216 }
   0x5   : > { %p9994_p6 = scmp.ne.s32.totalorder %s12285_s5, %s9993_s9  ;;  %p10000_p10 = scmp.lt.u32.totalorder %s9993_s9, %s12285_s5 }
   0x6   : > { %s12316_s28 = scalar_select %p10088_p2, 1, 0 }
   0x7   : > { %p9654_p4 = pneg %p10088_p2 }
   0x9   : > { %p10097_p5 = pnand %p12288_p3, %p9654_p4 }
   0xb   : > { %p9995_p7 = pneg %p10097_p5 }
   0xd   : > { %p9996_p8 = pnand %p9995_p7, %p9994_p6 }
   0xf   : > { %p9997_p9 = pneg %p9996_p8 }
  0x11   : > { %p10002_p11 = pnand %p10000_p10, %p9997_p9 }
  0x13   : > { %10005 = shalt.err (!%p10002_p11)
}
  0x14   : > { %s10006_s14 = scalar_lea.vmem %s226_s27, 9216  ;;  %p10014_p1 = scmp.lt.s32.totalorder %s226_s27, %s226_s27 }
  0x15   : > { %p10007_p12 = scmp.ne.s32.totalorder %s226_s27, %s10006_s14  ;;  %p10015_p4 = scmp.lt.s32.totalorder %s10006_s14, %s10006_s14 }
  0x17   : > { %p10009_p13 = pnand %p10007_p12, %p9995_p7  ;;  %p10016_p3 = por %p10015_p4, %p10014_p1 }
  0x19   : > { %p10010_p0 = pneg %p10009_p13 }
  0x1b   : > { %p10017_p2 = pnand %p10016_p3, %p10010_p0 }
  0x1d   : > { %10020 = shalt.err (!%p10017_p2)
}
  0x1e   : > { %s10034_s15 = smov 64   ;;  %s10035_s16 = smov 4  }
  0x1f   : > { %9657 = dma.hbm_to_vmem [thread:$0]  (!%p10097_p5), %s12285_s5, 9216, %s226_s27, [#allocation6], %s10034_s15, %s10034_s15, %s10035_s16  }
  0x20   : > { %p12318_p6 = scmp.ne.s32.totalorder %s12316_s28, 0 }
  0x22   : > { %252 = sbr.rel (%p12318_p6) target bundleno = 1254 (0x4e6), region = 48 }
  0x29   : > { %p12319_p8 = scmp.eq.s32.totalorder %s10084_s25, 0 }
  0x2b   : > { %10026 = dma.done.wait (%p12319_p8), [#allocation6], 9216   ;;  %p12320_p7 = pmov %p12319_p8 }
  0x2c   : > { %p284_p2 = scmp.lt.s32.totalorder %s10084_s25, 1  ;;  %v9673_v0 = vld [vmem:[%s12281_s1] sm:$0xff]   ;;  %v9674_v1 = vld [vmem:[%s12281_s1 + $0x8] sm:$0xff]   ;;  %v9675_v2 = vld [vmem:[%s12281_s1 + $0x10] sm:$0xff]   ;;  %vm543_vm0 = vcmask 1040384   ;;  %vm550_vm2 = vcmask 1046528  }
  0x2d   : > { %10028 = vsyncadd (%p12320_p7), [#allocation6], 4294958080  ;;  %8882 = vmatprep.subr.bf16.mxu0 %v9673_v0  ;;  %v9676_v3 = vld [vmem:[%s12281_s1 + $0x18] sm:$0xff]   ;;  %v9677_v5 = vld [vmem:[%s12281_s1 + $0x20] sm:$0xff]   ;;  %vm10036_vm3 = vmmov 1  }
  0x2e   : > { %s12351_s25 = smov (!%p284_p2, %s10084_s25), 1  ;;  %8883 = vmatpush3.bf16.msra.mxu0 %v9673_v0  ;;  %v9678_v6 = vld [vmem:[%s12281_s1 + $0x28] sm:$0xff]   ;;  %v9679_v7 = vld [vmem:[%s12281_s1 + $0x30] sm:$0xff]   ;;  %v9680_v8 = vld [vmem:[%s12281_s1 + $0x38] sm:$0xff]  }
  0x2f   : > { %s7244_s23 = sshll.u32 %s12351_s25, 7  ;;  %8884 = vmatprep.subr.bf16.mxu0 %v9674_v1  ;;  %v9689_v9 = vld [vmem:[%s12281_s1] sm:$0xff]   ;;  %v9690_v12 = vld [vmem:[%s12281_s1 + $0x8] sm:$0xff]   ;;  %v9691_v14 = vld [vmem:[%s12281_s1 + $0x10] sm:$0xff]   ;;  %s7245_s17 = sshll.u32 %s12351_s25, 8 }
  0x30   : > { %s10140_s30 = scalar_lea.vmem %s12280_s0, %s7244_s23  ;;  %v9706_v13 = vld [vmem:[%s12283_s3 + $0x140] sm:$0xff]   ;;  %v9709_v15 = vld [vmem:[%s12283_s3 + $0x148] sm:$0xff]   ;;  %v9712_v18 = vld [vmem:[%s12283_s3 + $0x150] sm:$0xff]   ;;  %s12061_s19 = scalar_lea.vmem %s12287_s7, %s7245_s17 }
  0x31   : > { %v9681_v4 = vld [vmem:[%s10140_s30] sm:$0xff]   ;;  %v9682_v10 = vld [vmem:[%s10140_s30 + $0x8] sm:$0xff]   ;;  %v9683_v11 = vld [vmem:[%s10140_s30 + $0x10] sm:$0xff]   ;;  %8946 = vmatprep.subr.bf16.mxu1 %v9706_v13 }
  0x32   : > { %8885 = vmatpush3.bf16.msra.mxu0 %v9674_v1  ;;  %8898 = vmatprep.mubr.bf16.mxu0 %v9681_v4  ;;  %v9684_v16 = vld [vmem:[%s10140_s30 + $0x18] sm:$0xff]   ;;  %v9685_v17 = vld [vmem:[%s10140_s30 + $0x20] sm:$0xff]   ;;  %v9686_v21 = vld [vmem:[%s10140_s30 + $0x28] sm:$0xff]  }
  0x33   : > { %8886 = vmatprep.subr.bf16.mxu0 %v9675_v2  ;;  %8947 = vmatpush3.bf16.msra.mxu1 %v9706_v13  ;;  %v9692_v19 = vld [vmem:[%s12281_s1 + $0x18] sm:$0xff]   ;;  %v9693_v22 = vld [vmem:[%s12281_s1 + $0x20] sm:$0xff]   ;;  %v9687_v23 = vld [vmem:[%s10140_s30 + $0x30] sm:$0xff]  }
  0x34   : > { %8948 = vmatprep.subr.bf16.mxu1 %v9709_v15  ;;  %v9715_v20 = vld [vmem:[%s12283_s3 + $0x158] sm:$0xff]   ;;  %v9718_v24 = vld [vmem:[%s12283_s3 + $0x160] sm:$0xff]   ;;  %v9694_v25 = vld [vmem:[%s12281_s1 + $0x28] sm:$0xff]  }
  0x35   : > { %v9721_v26 = vld [vmem:[%s12283_s3 + $0x168] sm:$0xff]   ;;  %v9695_v27 = vld [vmem:[%s12281_s1 + $0x30] sm:$0xff]   ;;  %v9688_v28 = vld [vmem:[%s10140_s30 + $0x38] sm:$0xff]  }
  0x36   : > { %8887 = vmatpush3.bf16.msra.mxu0 %v9675_v2  ;;  %v9697_v29 = vld [vmem:[%s10140_s30 + $0x40] sm:$0xff]   ;;  %v9696_v30 = vld [vmem:[%s12281_s1 + $0x38] sm:$0xff]   ;;  %v9698_v32 = vld [vmem:[%s10140_s30 + $0x48] sm:$0xff]  }
  0x37   : > { %8888 = vmatprep.subr.bf16.mxu0 %v9676_v3  ;;  %8949 = vmatpush3.bf16.msra.mxu1 %v9709_v15  ;;  %v9705_v31 = vld [vmem:[%s12283_s3 + $0x100] sm:$0xff]   ;;  %v9699_v33 = vld [vmem:[%s10140_s30 + $0x50] sm:$0xff]   ;;  %v9708_v35 = vld [vmem:[%s12283_s3 + $0x108] sm:$0xff]  }
  0x38   : > { %8950 = vmatprep.subr.bf16.mxu1 %v9712_v18  ;;  %v9707_v34 = vld [vmem:[%s12283_s3 + $0xc0] sm:$0xff]   ;;  %v9710_v36 = vld [vmem:[%s12283_s3 + $0xc8] sm:$0xff]   ;;  %v9711_v37 = vld [vmem:[%s12283_s3 + $0x110] sm:$0xff]  }
  0x39   : > { %v9700_v38 = vld [vmem:[%s10140_s30 + $0x58] sm:$0xff]   ;;  %v9701_v39 = vld [vmem:[%s10140_s30 + $0x60] sm:$0xff]   ;;  %v9713_v40 = vld [vmem:[%s12283_s3 + $0xd0] sm:$0xff]  }
  0x3a   : > { %8889 = vmatpush3.bf16.msra.mxu0 %v9676_v3  ;;  %v9714_v41 = vld [vmem:[%s12283_s3 + $0x118] sm:$0xff]   ;;  %v9717_v43 = vld [vmem:[%s12283_s3 + $0x120] sm:$0xff]   ;;  %v9702_v44 = vld [vmem:[%s10140_s30 + $0x68] sm:$0xff]  }
  0x3b   : > { %8890 = vmatprep.subr.bf16.mxu0 %v9677_v5  ;;  %8951 = vmatpush3.bf16.msra.mxu1 %v9712_v18  ;;  %v9716_v42 = vld [vmem:[%s12283_s3 + $0xd8] sm:$0xff]   ;;  %v9703_v45 = vld [vmem:[%s10140_s30 + $0x70] sm:$0xff]   ;;  %v9719_v46 = vld [vmem:[%s12283_s3 + $0xe0] sm:$0xff]  }
  0x3c   : > { %8952 = vmatprep.subr.bf16.mxu1 %v9715_v20  ;;  %v9720_v47 = vld [vmem:[%s12283_s3 + $0x128] sm:$0xff]   ;;  %v9704_v48 = vld [vmem:[%s10140_s30 + $0x78] sm:$0xff]   ;;  %v9723_v50 = vld [vmem:[%s12283_s3 + $0x130] sm:$0xff]  }
  0x3d   : > { %v9722_v49 = vld [vmem:[%s12283_s3 + $0xe8] sm:$0xff]   ;;  %v9724_v51 = vld [vmem:[%s12283_s3 + $0x170] sm:$0xff]   ;;  %v9726_v53 = vld [vmem:[%s12283_s3 + $0x138] sm:$0xff]  }
  0x3e   : > { %8891 = vmatpush3.bf16.msra.mxu0 %v9677_v5  ;;  %v9725_v52 = vld [vmem:[%s12283_s3 + $0xf0] sm:$0xff]   ;;  %v9727_v54 = vld [vmem:[%s12283_s3 + $0x178] sm:$0xff]   ;;  %v9729_v56 = vld [vmem:[%s12283_s3 + $0x40] sm:$0xff]  }
  0x3f   : > { %8892 = vmatprep.subr.bf16.mxu0 %v9678_v6  ;;  %8953 = vmatpush3.bf16.msra.mxu1 %v9715_v20  ;;  %v9728_v55 = vld [vmem:[%s12283_s3 + $0xf8] sm:$0xff]   ;;  %v9746_v57 = vld [vmem:[%s12283_s3 + $0x1c0] sm:$0xff]   ;;  %vm7246_vm1 = vmneg %vm543_vm0 }
  0x40   : > { %8954 = vmatprep.subr.bf16.mxu1 %v9718_v24  ;;  %v10278_v58 = vld [vmem:[%s12282_s2] ss:$0 sm:$0xff]  ;;  %vm10287_vm4 = vmpackc.low %vm10036_vm3, %vm7246_vm1 }
  0x41   : > { %vm10294_vm5 = vmpackc.low %vm550_vm2, %vm10036_vm3 }
  0x42   : > { %8893 = vmatpush3.bf16.msra.mxu0 %v9678_v6 }
  0x43   : > { %8894 = vmatprep.subr.bf16.mxu0 %v9679_v7  ;;  %8955 = vmatpush3.bf16.msra.mxu1 %v9718_v24 }
  0x44   : > { %8956 = vmatprep.subr.bf16.mxu1 %v9721_v26 }
  0x46   : > { %8895 = vmatpush3.bf16.msra.mxu0 %v9679_v7 }
  0x47   : > { %8896 = vmatprep.subr.bf16.mxu0 %v9680_v8  ;;  %8957 = vmatpush3.bf16.msra.mxu1 %v9721_v26 }
  0x48   : > { %8958 = vmatprep.subr.bf16.mxu1 %v9724_v51 }
  0x4a   : > { %8897 = vmatpush3.bf16.msra.mxu0 %v9680_v8 }
  0x4b   : > { %8914 = vmatprep.subr.bf16.mxu0 %v9689_v9  ;;  %8959 = vmatpush3.bf16.msra.mxu1 %v9724_v51 }
  0x4c   : > { %8960 = vmatprep.subr.bf16.mxu1 %v9727_v54 }
  0x4d   : > { %8899 = vmatmul.mubr.bf16.vlgmr.msra.gmra.mrb[0].mxu0 %v9682_v10 }
  0x4e   : > { %8902 = vmatprep.mubr.bf16.mxu0 %v9683_v11  ;;  %8915 = vmatpush3.bf16.msra.mxu0 %v9689_v9 }
  0x4f   : > { %8916 = vmatprep.subr.bf16.mxu0 %v9690_v12  ;;  %8961 = vmatpush3.bf16.msra.mxu1 %v9727_v54 }
  0x50   : > { %8002 = vmatprep.subr.bf16.mxu1 %v9729_v56 }
  0x52   : > { %8917 = vmatpush3.bf16.msra.mxu0 %v9690_v12 }
  0x53   : > { %8918 = vmatprep.subr.bf16.mxu0 %v9691_v14 }
  0x55   : > { %8903 = vmatmul.mubr.bf16.gmra.mrb[4].mxu0 %v9684_v16  ;;  %v9730_v16 = vld [vmem:[%s12283_s3] sm:$0xff]  }
  0x56   : > { %8906 = vmatprep.mubr.bf16.mxu0 %v9685_v17  ;;  %8919 = vmatpush3.bf16.msra.mxu0 %v9691_v14 }
  0x57   : > { %8920 = vmatprep.subr.bf16.mxu0 %v9692_v19 }
  0x5a   : > { %8921 = vmatpush3.bf16.msra.mxu0 %v9692_v19 }
  0x5b   : > { %8922 = vmatprep.subr.bf16.mxu0 %v9693_v22 }
  0x5d   : > { %8907 = vmatmul.mubr.bf16.gmra.mrb[8].mxu0 %v9686_v21 }
  0x5e   : > { %8910 = vmatprep.mubr.bf16.mxu0 %v9687_v23  ;;  %8923 = vmatpush3.bf16.msra.mxu0 %v9693_v22  ;;  %v9731_v22 = vld [vmem:[%s12283_s3 + $0x48] sm:$0xff]  }
  0x5f   : > { %8924 = vmatprep.subr.bf16.mxu0 %v9694_v25 }
  0x62   : > { %8925 = vmatpush3.bf16.msra.mxu0 %v9694_v25 }
  0x63   : > { %8926 = vmatprep.subr.bf16.mxu0 %v9695_v27 }
  0x65   : > { %8911 = vmatmul.mubr.bf16.gmra.mrb[12].mxu0 %v9688_v28  ;;  %v9747_v28 = vld [vmem:[%s12283_s3 + $0x180] sm:$0xff]  }
  0x66   : > { %8927 = vmatpush3.bf16.msra.mxu0 %v9695_v27  ;;  %8930 = vmatprep.mubr.bf16.mxu0 %v9697_v29 }
  0x67   : > { %8928 = vmatprep.subr.bf16.mxu0 %v9696_v30 }
  0x6a   : > { %8929 = vmatpush3.bf16.msra.mxu0 %v9696_v30 }
  0x6b   : > { %7922 = vmatprep.subr.bf16.mxu0 %v9705_v31  ;;  %v9748_v31 = vld [vmem:[%s12283_s3 + $0x1c8] sm:$0xff]  }
  0x6d   : > { %8931 = vmatmul.mubr.bf16.vlgmr.msra.gmra.mrb[16].mxu0 %v9698_v32 }
  0x6e   : > { %8934 = vmatprep.mubr.bf16.mxu0 %v9699_v33  ;;  %7923 = vmatpush3.bf16.msra.mxu0 %v9707_v34  ;;  %v9732_v34 = vld [vmem:[%s12283_s3 + $0x8] sm:$0xff]  }
  0x6f   : > { %7924 = vmatprep.subr.bf16.mxu0 %v9708_v35 }
  0x72   : > { %7925 = vmatpush3.bf16.msra.mxu0 %v9710_v36 }
  0x73   : > { %7926 = vmatprep.subr.bf16.mxu0 %v9711_v37 }
  0x75   : > { %8935 = vmatmul.mubr.bf16.gmra.mrb[20].mxu0 %v9700_v38 }
  0x76   : > { %8938 = vmatprep.mubr.bf16.mxu0 %v9701_v39  ;;  %7927 = vmatpush3.bf16.msra.mxu0 %v9713_v40 }
  0x77   : > { %7928 = vmatprep.subr.bf16.mxu0 %v9714_v41 }
  0x7a   : > { %7929 = vmatpush3.bf16.msra.mxu0 %v9716_v42  ;;  %v9749_v42 = vld [vmem:[%s12283_s3 + $0x188] sm:$0xff]  }
  0x7b   : > { %7930 = vmatprep.subr.bf16.mxu0 %v9717_v43 }
  0x7d   : > { %8939 = vmatmul.mubr.bf16.gmra.mrb[24].mxu0 %v9702_v44 }
  0x7e   : > { %8942 = vmatprep.mubr.bf16.mxu0 %v9703_v45  ;;  %7931 = vmatpush3.bf16.msra.mxu0 %v9719_v46 }
  0x7f   : > { %7932 = vmatprep.subr.bf16.mxu0 %v9720_v47  ;;  %v9733_v47 = vld [vmem:[%s12283_s3 + $0x50] sm:$0xff]  }
  0x82   : > { %7933 = vmatpush3.bf16.msra.mxu0 %v9722_v49 }
  0x83   : > { %7934 = vmatprep.subr.bf16.mxu0 %v9723_v50 }
  0x85   : > { %8943 = vmatmul.mubr.bf16.gmra.mrb[28].mxu0 %v9704_v48  ;;  %v9751_v48 = vld [vmem:[%s12283_s3 + $0x1d0] sm:$0xff]  }
  0x86   : > { %7935 = vmatpush3.bf16.msra.mxu0 %v9725_v52 }
  0x87   : > { %7936 = vmatprep.subr.bf16.mxu0 %v9726_v53 }
  0x8a   : > { %7937 = vmatpush3.bf16.msra.mxu0 %v9728_v55 }
  0x8b   : > { %8082 = vmatprep.subr.bf16.mxu0 %v9746_v57 }
 0x120   : > { %v8900_v59 = vpop.f32.mrb[0].mxu0 }
 0x121   : > { %v485_v60 = vadd.f32 %v8900_v59, %v10278_v58  ;;  %v476_v61 = vpop.f32.mrb[1].mxu0 }
 0x122   : > { %v477_v62 = vadd.f32 %v10278_v58, %v476_v61  ;;  %v8901_v63 = vpop.f32.mrb[2].mxu0 }
 0x123   : > { %v488_v0 = vadd.f32 %v8901_v63, %v10278_v58  ;;  %v479_v1 = vpop.f32.mrb[3].mxu0  ;;  %v566_v2 = vrot.slane %v485_v60, 7  ;;  %v572_v3 = vrot.slane %v485_v60, 1 }
 0x124   : > { %v480_v4 = vadd.f32 %v10278_v58, %v479_v1  ;;  %v544_v5 = vrot.slane %v477_v62, 7  ;;  %v551_v12 = vrot.slane %v477_v62, 1  ;;  %v9735_v1 = vld [vmem:[%s12283_s3 + $0x58] sm:$0xff]  }
 0x125   : > { %v10285_v6 = vpack.c.bf16 %v488_v0, %v485_v60  ;;  %v567_v7 = vrot.slane %v488_v0, 7  ;;  %v573_v8 = vrot.slane %v488_v0, 1  ;;  %v9734_v60 = vld [vmem:[%s12283_s3 + $0x10] sm:$0xff]  }
 0x126   : > { %v545_v10 = vrot.slane %v480_v4, 7  ;;  %v10291_v11 = vpack.c.bf16 %v480_v4, %v477_v62  ;;  %v552_v13 = vrot.slane %v480_v4, 1  ;;  %v9752_v62 = vld [vmem:[%s12283_s3 + $0x190] sm:$0xff]  }
 0x127   : > { %v574_v15 = vsel %vm550_vm2, %v572_v3, %v573_v8  ;;  %v568_v17 = vsel %vm543_vm0, %v566_v2, %v567_v7 }
 0x128   : > { %12323 = vst [vmem:[#allocation8_spill] sm:$0xff] %v10291_v11  ;;  %v546_v18 = vsel %vm543_vm0, %v544_v5, %v545_v10  ;;  %v8904_v19 = vpop.f32.mrb[4].mxu0  ;;  %1409 = vmatprep.mubr.bf16.mxu0 %v10291_v11  ;;  %v553_v20 = vsel %vm550_vm2, %v551_v12, %v552_v13  ;;  %v10306_v21 = vpack.c.bf16 %v573_v8, %v574_v15 }
 0x129   : > { %v10311_v23 = vpack.c.bf16 %v568_v17, %v566_v2  ;;  %v10313_v24 = vpack.c.bf16 %v546_v18, %v544_v5  ;;  %v501_v25 = vadd.f32 %v8904_v19, %v10278_v58  ;;  %v492_v26 = vpop.f32.mrb[5].mxu0  ;;  %v10316_v27 = vpack.c.bf16 %v552_v13, %v553_v20  ;;  %v9753_v2 = vld [vmem:[%s12283_s3 + $0x1d8] sm:$0xff]  }
 0x12a   : > { %v493_v29 = vadd.f32 %v10278_v58, %v492_v26  ;;  %v8905_v30 = vpop.f32.mrb[6].mxu0  ;;  %v9754_v17 = vld [vmem:[%s12283_s3 + $0x198] sm:$0xff]   ;;  %v9756_v26 = vld [vmem:[%s12283_s3 + $0x1e0] sm:$0xff]  }
 0x12b   : > { %v504_v32 = vadd.f32 %v8905_v30, %v10278_v58  ;;  %v495_v33 = vpop.f32.mrb[7].mxu0  ;;  %7249 = vmatmul.mubr.msk.bf16.vlgmr.msra.gmra.mrb[32].mxu0 %vm10287_vm4, %v10313_v24  ;;  %8962 = vmatprep.mubr.msk.bf16.mxu1 %vm10294_vm5, %v10316_v27  ;;  %v608_v35 = vrot.slane %v501_v25, 7  ;;  %v614_v36 = vrot.slane %v501_v25, 1 }
 0x12c   : > { %v496_v37 = vadd.f32 %v10278_v58, %v495_v33  ;;  %1417 = vmatprep.mubr.bf16.mxu0 %v10285_v6  ;;  %8963 = vmatmul.mubr.msk.bf16.vlgmr.msra.gmra.mrb[0].mxu1 %vm10294_vm5, %v10306_v21  ;;  %v587_v38 = vrot.slane %v493_v29, 7  ;;  %v593_v43 = vrot.slane %v493_v29, 1 }
 0x12d   : > { %v10340_v39 = vpack.c.bf16 %v504_v32, %v501_v25  ;;  %v609_v40 = vrot.slane %v504_v32, 7  ;;  %v615_v41 = vrot.slane %v504_v32, 1  ;;  %8003 = vmatpush3.bf16.msra.mxu1 %v9730_v16  ;;  %8083 = vmatpush3.bf16.msra.mxu0 %v9747_v28  ;;  %v9736_v16 = vld [vmem:[%s12283_s3 + $0x18] sm:$0xff]   ;;  %v9737_v25 = vld [vmem:[%s12283_s3 + $0x60] sm:$0xff]  }
 0x12e   : > { %v10345_v44 = vpack.c.bf16 %v496_v37, %v493_v29  ;;  %v588_v45 = vrot.slane %v496_v37, 7  ;;  %v594_v46 = vrot.slane %v496_v37, 1  ;;  %8004 = vmatprep.subr.bf16.mxu1 %v9731_v22  ;;  %8084 = vmatprep.subr.bf16.mxu0 %v9748_v31 }
 0x12f   : > { %v616_v49 = vsel %vm550_vm2, %v614_v36, %v615_v41  ;;  %v610_v50 = vsel %vm543_vm0, %v608_v35, %v609_v40 }
 0x130   : > { %v8908_v51 = vpop.f32.mrb[8].mxu0  ;;  %v595_v52 = vsel %vm550_vm2, %v593_v43, %v594_v46  ;;  %v10356_v53 = vpack.c.bf16 %v615_v41, %v616_v49  ;;  %v589_v54 = vsel %vm543_vm0, %v587_v38, %v588_v45  ;;  %v10359_v55 = vpack.c.bf16 %v610_v50, %v608_v35  ;;  %v9757_v41 = vld [vmem:[%s12283_s3 + $0x1a0] sm:$0xff]   ;;  %v9739_v45 = vld [vmem:[%s12283_s3 + $0x68] sm:$0xff]  }
 0x131   : > { %v517_v56 = vadd.f32 %v8908_v51, %v10278_v58  ;;  %8005 = vmatpush3.bf16.msra.mxu1 %v9732_v34  ;;  %v508_v57 = vpop.f32.mrb[9].mxu0  ;;  %v10362_v59 = vpack.c.bf16 %v594_v46, %v595_v52  ;;  %v10367_v61 = vpack.c.bf16 %v589_v54, %v587_v38  ;;  %8085 = vmatpush3.bf16.msra.mxu0 %v9749_v42  ;;  %v9738_v38 = vld [vmem:[%s12283_s3 + $0x20] sm:$0xff]   ;;  %v9758_v46 = vld [vmem:[%s12283_s3 + $0x1e8] sm:$0xff]  }
 0x132   : > { %v509_v63 = vadd.f32 %v10278_v58, %v508_v57  ;;  %v8909_v0 = vpop.f32.mrb[10].mxu0  ;;  %8006 = vmatprep.subr.bf16.mxu1 %v9733_v47  ;;  %8086 = vmatprep.subr.bf16.mxu0 %v9751_v48 }
 0x133   : > { %v520_v3 = vadd.f32 %v8909_v0, %v10278_v58  ;;  %v511_v4 = vpop.f32.mrb[11].mxu0  ;;  %7253 = vmatmul.mubr.msk.bf16.gmra.mrb[36].mxu0 %vm10287_vm4, %v10311_v23  ;;  %8966 = vmatprep.mubr.msk.bf16.mxu1 %vm10294_vm5, %v10362_v59  ;;  %v650_v5 = vrot.slane %v517_v56, 7  ;;  %v656_v7 = vrot.slane %v517_v56, 1 }
 0x134   : > { %v512_v8 = vadd.f32 %v10278_v58, %v511_v4  ;;  %1425 = vmatprep.mubr.bf16.mxu0 %v10345_v44  ;;  %8967 = vmatmul.mubr.msk.bf16.gmra.mrb[4].mxu1 %vm10294_vm5, %v10356_v53  ;;  %v629_v10 = vrot.slane %v509_v63, 7  ;;  %v635_v18 = vrot.slane %v509_v63, 1  ;;  %v9761_v4 = vld [vmem:[%s12283_s3 + $0x1f0] sm:$0xff]  }
 0x135   : > { %v10391_v12 = vpack.c.bf16 %v520_v3, %v517_v56  ;;  %v651_v13 = vrot.slane %v520_v3, 7  ;;  %v657_v15 = vrot.slane %v520_v3, 1  ;;  %8007 = vmatpush3.bf16.msra.mxu1 %v9734_v60  ;;  %8087 = vmatpush3.bf16.msra.mxu0 %v9752_v62  ;;  %v9740_v60 = vld [vmem:[%s12283_s3 + $0x28] sm:$0xff]   ;;  %v9741_v3 = vld [vmem:[%s12283_s3 + $0x70] sm:$0xff]  }
 0x136   : > { %v10399_v19 = vpack.c.bf16 %v512_v8, %v509_v63  ;;  %v630_v20 = vrot.slane %v512_v8, 7  ;;  %v636_v22 = vrot.slane %v512_v8, 1  ;;  %8008 = vmatprep.subr.bf16.mxu1 %v9735_v1  ;;  %8088 = vmatprep.subr.bf16.mxu0 %v9753_v2  ;;  %v9759_v62 = vld [vmem:[%s12283_s3 + $0x1a8] sm:$0xff]  }
 0x137   : > { %v658_v28 = vsel %vm550_vm2, %v656_v7, %v657_v15  ;;  %v652_v29 = vsel %vm543_vm0, %v650_v5, %v651_v13 }
 0x138   : > { %12326 = vst [vmem:[#allocation9_spill] sm:$0xff] %v10399_v19  ;;  %v8912_v30 = vpop.f32.mrb[12].mxu0  ;;  %v637_v31 = vsel %vm550_vm2, %v635_v18, %v636_v22  ;;  %v10410_v32 = vpack.c.bf16 %v657_v15, %v658_v28  ;;  %v631_v33 = vsel %vm543_vm0, %v629_v10, %v630_v20  ;;  %v10413_v34 = vpack.c.bf16 %v652_v29, %v650_v5  ;;  %v9742_v18 = vld [vmem:[%s12283_s3 + $0x30] sm:$0xff]  }
 0x139   : > { %v533_v35 = vadd.f32 %v8912_v30, %v10278_v58  ;;  %8009 = vmatpush3.bf16.msra.mxu1 %v9736_v16  ;;  %v524_v36 = vpop.f32.mrb[13].mxu0  ;;  %v10416_v37 = vpack.c.bf16 %v636_v22, %v637_v31  ;;  %v10421_v40 = vpack.c.bf16 %v631_v33, %v629_v10  ;;  %8089 = vmatpush3.bf16.msra.mxu0 %v9754_v17  ;;  %v9762_v28 = vld [vmem:[%s12283_s3 + $0x1b0] sm:$0xff]   ;;  %v9763_v31 = vld [vmem:[%s12283_s3 + $0x1f8] sm:$0xff]  }
 0x13a   : > { %v525_v42 = vadd.f32 %v10278_v58, %v524_v36  ;;  %v8913_v43 = vpop.f32.mrb[14].mxu0  ;;  %8010 = vmatprep.subr.bf16.mxu1 %v9737_v25  ;;  %8090 = vmatprep.subr.bf16.mxu0 %v9756_v26  ;;  %v9743_v26 = vld [vmem:[%s12283_s3 + $0x78] sm:$0xff]  }
 0x13b   : > { %v536_v47 = vadd.f32 %v8913_v43, %v10278_v58  ;;  %v527_v48 = vpop.f32.mrb[15].mxu0  ;;  %7257 = vmatmul.mubr.msk.bf16.gmra.mrb[40].mxu0 %vm10287_vm4, %v10367_v61  ;;  %8970 = vmatprep.mubr.msk.bf16.mxu1 %vm10294_vm5, %v10416_v37  ;;  %v692_v49 = vrot.slane %v533_v35, 7  ;;  %v698_v50 = vrot.slane %v533_v35, 1 }
 0x13c   : > { %v528_v51 = vadd.f32 %v10278_v58, %v527_v48  ;;  %1433 = vmatprep.mubr.bf16.mxu0 %v10340_v39  ;;  %8971 = vmatmul.mubr.msk.bf16.gmra.mrb[8].mxu1 %vm10294_vm5, %v10410_v32  ;;  %v671_v52 = vrot.slane %v525_v42, 7  ;;  %v677_v63 = vrot.slane %v525_v42, 1 }
 0x13d   : > { %v10445_v54 = vpack.c.bf16 %v536_v47, %v533_v35  ;;  %v693_v56 = vrot.slane %v536_v47, 7  ;;  %v699_v57 = vrot.slane %v536_v47, 1  ;;  %8011 = vmatpush3.bf16.msra.mxu1 %v9738_v38  ;;  %8091 = vmatpush3.bf16.msra.mxu0 %v9757_v41 }
 0x13e   : > { %v10453_v0 = vpack.c.bf16 %v528_v51, %v525_v42  ;;  %v672_v1 = vrot.slane %v528_v51, 7  ;;  %v678_v2 = vrot.slane %v528_v51, 1  ;;  %8012 = vmatprep.subr.bf16.mxu1 %v9739_v45  ;;  %8092 = vmatprep.subr.bf16.mxu0 %v9758_v46  ;;  %v9744_v45 = vld [vmem:[%s12283_s3 + $0x38] sm:$0xff]   ;;  %v12290_v46 = vmov 0  }
 0x13f   : > { %12327 = vst [vmem:[#allocation10_spill] sm:$0xff] %v10445_v54  ;;  %v700_v5 = vsel %vm550_vm2, %v698_v50, %v699_v57  ;;  %v694_v7 = vsel %vm543_vm0, %v692_v49, %v693_v56  ;;  %v9745_v50 = vld [vmem:[%s12283_s3 + $0x80] sm:$0xff]   ;;  %v9764_v51 = vld [vmem:[%s12283_s3 + $0x1b8] sm:$0xff]  }
 0x140   : > { %12328 = vst [vmem:[#allocation11_spill] sm:$0xff] %v10453_v0  ;;  %v679_v8 = vsel %vm550_vm2, %v677_v63, %v678_v2  ;;  %v10464_v10 = vpack.c.bf16 %v699_v57, %v700_v5  ;;  %v673_v13 = vsel %vm543_vm0, %v671_v52, %v672_v1  ;;  %v10467_v15 = vpack.c.bf16 %v694_v7, %v692_v49  ;;  %v8932_v16 = vpop.f32.mrb[16].mxu0 }
 0x141   : > { %8013 = vmatpush3.bf16.msra.mxu1 %v9740_v60  ;;  %v10469_v17 = vpack.c.bf16 %v678_v2, %v679_v8  ;;  %v10474_v20 = vpack.c.bf16 %v673_v13, %v671_v52  ;;  %8093 = vmatpush3.bf16.msra.mxu0 %v9759_v62  ;;  %v887_v22 = vadd.f32 %v8932_v16, %v10278_v58  ;;  %v878_v25 = vpop.f32.mrb[17].mxu0  ;;  %v9770_v60 = vld [vmem:[%s12283_s3 + $0x100] sm:$0xff]  }
 0x142   : > { %8014 = vmatprep.subr.bf16.mxu1 %v9741_v3  ;;  %8094 = vmatprep.subr.bf16.mxu0 %v9761_v4  ;;  %v879_v29 = vadd.f32 %v10278_v58, %v878_v25  ;;  %v8933_v30 = vpop.f32.mrb[18].mxu0 }
 0x143   : > { %7261 = vmatmul.mubr.msk.bf16.gmra.mrb[44].mxu0 %vm10287_vm4, %v10359_v55  ;;  %8974 = vmatprep.mubr.msk.bf16.mxu1 %vm10294_vm5, %v10469_v17  ;;  %v966_v33 = vrot.slane %v887_v22, 7  ;;  %v972_v35 = vrot.slane %v887_v22, 1  ;;  %v890_v36 = vadd.f32 %v8933_v30, %v10278_v58  ;;  %v881_v38 = vpop.f32.mrb[19].mxu0 }
 0x144   : > { %1441 = vmatprep.mubr.bf16.mxu0 %v10399_v19  ;;  %8975 = vmatmul.mubr.msk.bf16.gmra.mrb[12].mxu1 %vm10294_vm5, %v10464_v10  ;;  %v945_v41 = vrot.slane %v879_v29, 7  ;;  %v951_v42 = vrot.slane %v879_v29, 1  ;;  %v882_v43 = vadd.f32 %v10278_v58, %v881_v38 }
 0x145   : > { %8015 = vmatpush3.bf16.msra.mxu1 %v9742_v18  ;;  %1747 = vmatprep.mubr.bf16.mxu1 %v12290_v46  ;;  %v10503_v47 = vpack.c.bf16 %v890_v36, %v887_v22  ;;  %v967_v48 = vrot.slane %v890_v36, 7  ;;  %v973_v49 = vrot.slane %v890_v36, 1  ;;  %v9750_v18 = vld [vmem:[%s12283_s3 + $0x88] sm:$0xff]  }
 0x146   : > { %8016 = vmatprep.subr.bf16.mxu1 %v9743_v26  ;;  %8095 = vmatpush3.bf16.msra.mxu0 %v9762_v28  ;;  %v10511_v52 = vpack.c.bf16 %v882_v43, %v879_v29  ;;  %v946_v56 = vrot.slane %v882_v43, 7  ;;  %v952_v57 = vrot.slane %v882_v43, 1 }
 0x147   : > { %12329 = vst [vmem:[#allocation12_spill] sm:$0xff] %v10503_v47  ;;  %8096 = vmatprep.subr.bf16.mxu0 %v9763_v31  ;;  %v974_v62 = vsel %vm550_vm2, %v972_v35, %v973_v49  ;;  %v968_v63 = vsel %vm543_vm0, %v966_v33, %v967_v48 }
 0x148   : > { %12330 = vst [vmem:[#allocation13_spill] sm:$0xff] %v10511_v52  ;;  %v10518_v1 = vpack.c.bf16 %v973_v49, %v974_v62  ;;  %v953_v2 = vsel %vm550_vm2, %v951_v42, %v952_v57  ;;  %v947_v3 = vsel %vm543_vm0, %v945_v41, %v946_v56  ;;  %v8936_v4 = vpop.f32.mrb[20].mxu0  ;;  %v10522_v5 = vpack.c.bf16 %v968_v63, %v966_v33  ;;  %v9755_v42 = vld [vmem:[%s12283_s3 + $0x90] sm:$0xff]  }
 0x149   : > { %8017 = vmatpush3.bf16.msra.mxu1 %v9744_v45  ;;  %v10524_v7 = vpack.c.bf16 %v952_v57, %v953_v2  ;;  %v10526_v8 = vpack.c.bf16 %v947_v3, %v945_v41  ;;  %v903_v13 = vadd.f32 %v8936_v4, %v10278_v58  ;;  %v894_v16 = vpop.f32.mrb[21].mxu0 }
 0x14a   : > { %8978 = vmatprep.subr.bf16.mxu1 %v9745_v50  ;;  %8097 = vmatpush3.bf16.msra.mxu0 %v9764_v51  ;;  %v895_v22 = vadd.f32 %v10278_v58, %v894_v16  ;;  %v8937_v25 = vpop.f32.mrb[22].mxu0 }
 0x14b   : > { %7265 = vmatmul.mubr.msk.bf16.gmra.mrb[48].mxu0 %vm10287_vm4, %v10421_v40  ;;  %8162 = vmatprep.subr.bf16.mxu0 %v9770_v60  ;;  %v1008_v26 = vrot.slane %v903_v13, 7  ;;  %v1014_v28 = vrot.slane %v903_v13, 1  ;;  %v906_v29 = vadd.f32 %v8937_v25, %v10278_v58  ;;  %v897_v30 = vpop.f32.mrb[23].mxu0 }
 0x14c   : > { %1449 = vmatprep.mubr.bf16.mxu0 %v10391_v12  ;;  %1748 = vmatmul.mubr.bf16.vlgmr.msra.gmra.mrb[16].mxu1 %v12290_v46  ;;  %v987_v31 = vrot.slane %v895_v22, 7  ;;  %v993_v33 = vrot.slane %v895_v22, 1  ;;  %v898_v35 = vadd.f32 %v10278_v58, %v897_v30 }
 0x14d   : > { %8979 = vmatpush3.bf16.msra.mxu1 %v9745_v50  ;;  %1755 = vmatprep.mubr.bf16.mxu1 %v10291_v11  ;;  %v10541_v36 = vpack.c.bf16 %v906_v29, %v903_v13  ;;  %v1009_v38 = vrot.slane %v906_v29, 7  ;;  %v1015_v41 = vrot.slane %v906_v29, 1  ;;  %v9760_v13 = vld [vmem:[%s12283_s3 + $0x98] sm:$0xff]  }
 0x14e   : > { %8980 = vmatprep.subr.bf16.mxu1 %v9750_v18  ;;  %v10546_v43 = vpack.c.bf16 %v898_v35, %v895_v22  ;;  %v988_v45 = vrot.slane %v898_v35, 7  ;;  %v994_v48 = vrot.slane %v898_v35, 1 }
 0x14f   : > { %12331 = vst [vmem:[#allocation14_spill] sm:$0xff] %v10541_v36  ;;  %v1016_v49 = vsel %vm550_vm2, %v1014_v28, %v1015_v41  ;;  %v1010_v51 = vsel %vm543_vm0, %v1008_v26, %v1009_v38 }
 0x150   : > { %12332 = vst [vmem:[#allocation15_spill] sm:$0xff] %v10546_v43  ;;  %v10550_v50 = vpack.c.bf16 %v1015_v41, %v1016_v49  ;;  %v995_v56 = vsel %vm550_vm2, %v993_v33, %v994_v48  ;;  %v989_v57 = vsel %vm543_vm0, %v987_v31, %v988_v45  ;;  %v8940_v60 = vpop.f32.mrb[24].mxu0  ;;  %v10554_v62 = vpack.c.bf16 %v1010_v51, %v1008_v26  ;;  %v9765_v41 = vld [vmem:[%s12283_s3 + $0xa0] sm:$0xff]  }
 0x151   : > { %8981 = vmatpush3.bf16.msra.mxu1 %v9750_v18  ;;  %v10556_v63 = vpack.c.bf16 %v994_v48, %v995_v56  ;;  %v10558_v2 = vpack.c.bf16 %v989_v57, %v987_v31  ;;  %v919_v3 = vadd.f32 %v8940_v60, %v10278_v58  ;;  %v910_v4 = vpop.f32.mrb[25].mxu0 }
 0x152   : > { %8982 = vmatprep.subr.bf16.mxu1 %v9755_v42  ;;  %v911_v16 = vadd.f32 %v10278_v58, %v910_v4  ;;  %v8941_v22 = vpop.f32.mrb[26].mxu0 }
 0x153   : > { %7269 = vmatmul.mubr.msk.bf16.gmra.mrb[52].mxu0 %vm10287_vm4, %v10413_v34  ;;  %v1050_v18 = vrot.slane %v919_v3, 7  ;;  %v1056_v25 = vrot.slane %v919_v3, 1  ;;  %v922_v26 = vadd.f32 %v8941_v22, %v10278_v58  ;;  %v913_v28 = vpop.f32.mrb[27].mxu0 }
 0x154   : > { %1457 = vmatprep.mubr.bf16.mxu0 %v10453_v0  ;;  %7305 = vmatmul.mubr.msk.bf16.gmra.mrb[20].mxu1 %vm10287_vm4, %v10313_v24  ;;  %v1029_v29 = vrot.slane %v911_v16, 7  ;;  %v1035_v30 = vrot.slane %v911_v16, 1  ;;  %v914_v31 = vadd.f32 %v10278_v58, %v913_v28 }
 0x155   : > { %1763 = vmatprep.mubr.bf16.mxu1 %v10285_v6  ;;  %8983 = vmatpush3.bf16.msra.mxu1 %v9755_v42  ;;  %v10575_v33 = vpack.c.bf16 %v922_v26, %v919_v3  ;;  %v1051_v35 = vrot.slane %v922_v26, 7  ;;  %v1057_v38 = vrot.slane %v922_v26, 1 }
 0x156   : > { %8984 = vmatprep.subr.bf16.mxu1 %v9760_v13  ;;  %v10580_v45 = vpack.c.bf16 %v914_v31, %v911_v16  ;;  %v1030_v48 = vrot.slane %v914_v31, 7  ;;  %v1036_v24 = vrot.slane %v914_v31, 1 }
 0x157   : > { %12333 = vst [vmem:[#allocation16_spill] sm:$0xff] %v10575_v33  ;;  %v1058_v49 = vsel %vm550_vm2, %v1056_v25, %v1057_v38  ;;  %v1052_v51 = vsel %vm543_vm0, %v1050_v18, %v1051_v35  ;;  %v9766_v25 = vld [vmem:[%s12283_s3 + $0xa8] sm:$0xff]  }
 0x158   : > { %12334 = vst [vmem:[#allocation17_spill] sm:$0xff] %v10580_v45  ;;  %v10584_v56 = vpack.c.bf16 %v1057_v38, %v1058_v49  ;;  %v1037_v42 = vsel %vm550_vm2, %v1035_v30, %v1036_v24  ;;  %v1031_v57 = vsel %vm543_vm0, %v1029_v29, %v1030_v48  ;;  %v8944_v60 = vpop.f32.mrb[28].mxu0  ;;  %v10588_v3 = vpack.c.bf16 %v1052_v51, %v1050_v18 }
 0x159   : > { %8985 = vmatpush3.bf16.msra.mxu1 %v9760_v13  ;;  %v10590_v4 = vpack.c.bf16 %v1036_v24, %v1037_v42  ;;  %v10592_v16 = vpack.c.bf16 %v1031_v57, %v1029_v29  ;;  %v935_v22 = vadd.f32 %v8944_v60, %v10278_v58  ;;  %v926_v26 = vpop.f32.mrb[29].mxu0  ;;  %v9767_v42 = vld [vmem:[%s12283_s3 + $0xb0] sm:$0xff]  }
 0x15a   : > { %8986 = vmatprep.subr.bf16.mxu1 %v9765_v41  ;;  %v927_v28 = vadd.f32 %v10278_v58, %v926_v26  ;;  %v8945_v30 = vpop.f32.mrb[30].mxu0 }
 0x15b   : > { %7273 = vmatmul.mubr.msk.bf16.gmra.mrb[56].mxu0 %vm10287_vm4, %v10474_v20  ;;  %v1092_v13 = vrot.slane %v935_v22, 7  ;;  %v1098_v18 = vrot.slane %v935_v22, 1  ;;  %v938_v29 = vadd.f32 %v8945_v30, %v10278_v58  ;;  %v929_v31 = vpop.f32.mrb[31].mxu0 }
 0x15c   : > { %1465 = vmatprep.mubr.bf16.mxu0 %v10445_v54  ;;  %7309 = vmatmul.mubr.msk.bf16.gmra.mrb[24].mxu1 %vm10287_vm4, %v10311_v23  ;;  %v1071_v35 = vrot.slane %v927_v28, 7  ;;  %v1077_v38 = vrot.slane %v927_v28, 1  ;;  %v930_v48 = vadd.f32 %v10278_v58, %v929_v31 }
 0x15d   : > { %1771 = vmatprep.mubr.bf16.mxu1 %v10345_v44  ;;  %8987 = vmatpush3.bf16.msra.mxu1 %v9765_v41  ;;  %v10609_v24 = vpack.c.bf16 %v938_v29, %v935_v22  ;;  %v1093_v49 = vrot.slane %v938_v29, 7  ;;  %v1099_v51 = vrot.slane %v938_v29, 1 }
 0x15e   : > { %8988 = vmatprep.subr.bf16.mxu1 %v9766_v25  ;;  %v10614_v57 = vpack.c.bf16 %v930_v48, %v927_v28  ;;  %v1072_v60 = vrot.slane %v930_v48, 7  ;;  %v1078_v26 = vrot.slane %v930_v48, 1  ;;  %v9768_v28 = vld [vmem:[%s12283_s3 + $0xb8] sm:$0xff]  }
 0x15f   : > { %12335 = vst [vmem:[#allocation18_spill] sm:$0xff] %v10609_v24  ;;  %v1100_v30 = vsel %vm550_vm2, %v1098_v18, %v1099_v51  ;;  %v1094_v58 = vsel %vm543_vm0, %v1092_v13, %v1093_v49  ;;  %v9773_v18 = vld [vmem:[%s12283_s3 + $0x108] sm:$0xff]   ;;  %v9779_v48 = vld [vmem:[%s12283_s3 + $0x118] sm:$0xff]  }
 0x160   : > { %12336 = vst [vmem:[#allocation19_spill] sm:$0xff] %v10614_v57  ;;  %v10618_v31 = vpack.c.bf16 %v1099_v51, %v1100_v30  ;;  %v1079_v41 = vsel %vm550_vm2, %v1077_v38, %v1078_v26  ;;  %v1073_v22 = vsel %vm543_vm0, %v1071_v35, %v1072_v60  ;;  %v10622_v29 = vpack.c.bf16 %v1094_v58, %v1092_v13  ;;  %v9771_v13 = vld [vmem:[%s12283_s3 + $0xc0] sm:$0xff]   ;;  %v9776_v38 = vld [vmem:[%s12283_s3 + $0x110] sm:$0xff]   ;;  %v9780_v49 = vld [vmem:[%s12283_s3 + $0xd8] sm:$0xff]  }
 0x161   : > { %8989 = vmatpush3.bf16.msra.mxu1 %v9766_v25  ;;  %v10624_v46 = vpack.c.bf16 %v1078_v26, %v1079_v41  ;;  %v10626_v11 = vpack.c.bf16 %v1073_v22, %v1071_v35  ;;  %v9769_v25 = vld [vmem:[%s12283_s3 + $0x200] sm:$0xff]   ;;  %v9774_v35 = vld [vmem:[%s12283_s3 + $0xc8] sm:$0xff]   ;;  %v9788_v26 = vld [vmem:[%s12283_s3 + $0x130] sm:$0xff]   ;;  %v12337_v58 = vmov 0  }
 0x162   : > { %8990 = vmatprep.subr.bf16.mxu1 %v9767_v42  ;;  %v9782_v51 = vld [vmem:[%s12283_s3 + $0x120] sm:$0xff]   ;;  %v9786_v60 = vld [vmem:[%s12283_s3 + $0xe8] sm:$0xff]   ;;  %v9791_v30 = vld [vmem:[%s12283_s3 + $0x138] sm:$0xff]  }
 0x163   : > { %7277 = vmatmul.mubr.msk.bf16.gmra.mrb[60].mxu0 %vm10287_vm4, %v10467_v15  ;;  %v9792_v41 = vld [vmem:[%s12283_s3 + $0xf8] sm:$0xff]   ;;  %v9801_v22 = vld [vmem:[%s12283_s3 + $0x40] sm:$0xff]  }
 0x164   : > { %7313 = vmatmul.mubr.msk.bf16.gmra.mrb[28].mxu1 %vm10287_vm4, %v10367_v61  ;;  %2158 = vmatprep.mubr.bf16.mxu0 %v10285_v6 }
 0x165   : > { %1779 = vmatprep.mubr.bf16.mxu1 %v10340_v39  ;;  %8991 = vmatpush3.bf16.msra.mxu1 %v9767_v42  ;;  %v9785_v42 = vld [vmem:[%s12283_s3 + $0x128] sm:$0xff]  }
 0x166   : > { %8992 = vmatprep.subr.bf16.mxu1 %v9768_v28 }
 0x169   : > { %8993 = vmatpush3.bf16.msra.mxu1 %v9768_v28  ;;  %v9775_v28 = vld [vmem:[%s12283_s3 + $0x210] sm:$0xff]  }
 0x16a   : > { %9010 = vmatprep.subr.bf16.mxu1 %v9769_v25 }
 0x16b   : > { %7354 = vmatmul.mubr.msk.bf16.vlgmr.msra.gmra.mrb[64].mxu0 %vm10287_vm4, %v10311_v23  ;;  %v9777_v23 = vld [vmem:[%s12283_s3 + $0xd0] sm:$0xff]  }
 0x16c   : > { %7317 = vmatmul.mubr.msk.bf16.gmra.mrb[32].mxu1 %vm10287_vm4, %v10359_v55  ;;  %2166 = vmatprep.mubr.bf16.mxu0 %v10345_v44 }
 0x16d   : > { %1787 = vmatprep.mubr.bf16.mxu1 %v10399_v19  ;;  %8163 = vmatpush3.bf16.msra.mxu0 %v9771_v13  ;;  %v9790_v13 = vld [vmem:[%s12283_s3 + $0x238] sm:$0xff]  }
 0x16e   : > { %8164 = vmatprep.subr.bf16.mxu0 %v9773_v18  ;;  %v9793_v18 = vld [vmem:[%s12283_s3 + $0x140] sm:$0xff]  }
 0x171   : > { %8165 = vmatpush3.bf16.msra.mxu0 %v9774_v35  ;;  %v9794_v35 = vld [vmem:[%s12283_s3 + $0x148] sm:$0xff]  }
 0x172   : > { %8166 = vmatprep.subr.bf16.mxu0 %v9776_v38  ;;  %v9803_v38 = vld [vmem:[%s12283_s3] sm:$0xff]  }
 0x173   : > { %7358 = vmatmul.mubr.msk.bf16.gmra.mrb[68].mxu0 %vm10287_vm4, %v10367_v61  ;;  %v9783_v61 = vld [vmem:[%s12283_s3 + $0xe0] sm:$0xff]  }
 0x174   : > { %7321 = vmatmul.mubr.msk.bf16.gmra.mrb[36].mxu1 %vm10287_vm4, %v10421_v40  ;;  %2174 = vmatprep.mubr.bf16.mxu0 %v10340_v39 }
 0x175   : > { %1795 = vmatprep.mubr.bf16.mxu1 %v10391_v12  ;;  %8167 = vmatpush3.bf16.msra.mxu0 %v9777_v23  ;;  %v9795_v23 = vld [vmem:[%s12283_s3 + $0x150] sm:$0xff]  }
 0x176   : > { %8168 = vmatprep.subr.bf16.mxu0 %v9779_v48  ;;  %v9806_v48 = vld [vmem:[%s12283_s3 + $0x8] sm:$0xff]  }
 0x179   : > { %8169 = vmatpush3.bf16.msra.mxu0 %v9780_v49  ;;  %v9809_v49 = vld [vmem:[%s12283_s3 + $0x10] sm:$0xff]  }
 0x17a   : > { %8170 = vmatprep.subr.bf16.mxu0 %v9782_v51  ;;  %v9810_v51 = vld [vmem:[%s12283_s3 + $0x58] sm:$0xff]  }
 0x17b   : > { %7362 = vmatmul.mubr.msk.bf16.gmra.mrb[72].mxu0 %vm10287_vm4, %v10359_v55  ;;  %v9789_v55 = vld [vmem:[%s12283_s3 + $0xf0] sm:$0xff]  }
 0x17c   : > { %7325 = vmatmul.mubr.msk.bf16.gmra.mrb[40].mxu1 %vm10287_vm4, %v10413_v34  ;;  %2182 = vmatprep.mubr.bf16.mxu0 %v10399_v19 }
 0x17d   : > { %1803 = vmatprep.mubr.bf16.mxu1 %v10453_v0  ;;  %8171 = vmatpush3.bf16.msra.mxu0 %v9783_v61  ;;  %v9797_v61 = vld [vmem:[%s12283_s3 + $0x160] sm:$0xff]  }
 0x17e   : > { %8172 = vmatprep.subr.bf16.mxu0 %v9785_v42  ;;  %v9812_v42 = vld [vmem:[%s12283_s3 + $0x18] sm:$0xff]  }
 0x181   : > { %8173 = vmatpush3.bf16.msra.mxu0 %v9786_v60  ;;  %v9815_v60 = vld [vmem:[%s12283_s3 + $0x20] sm:$0xff]  }
 0x182   : > { %8174 = vmatprep.subr.bf16.mxu0 %v9788_v26  ;;  %v9816_v26 = vld [vmem:[%s12283_s3 + $0x68] sm:$0xff]  }
 0x183   : > { %7366 = vmatmul.mubr.msk.bf16.gmra.mrb[76].mxu0 %vm10287_vm4, %v10421_v40  ;;  %v9772_v40 = vld [vmem:[%s12283_s3 + $0x208] sm:$0xff]  }
 0x184   : > { %7329 = vmatmul.mubr.msk.bf16.gmra.mrb[44].mxu1 %vm10287_vm4, %v10474_v20  ;;  %2190 = vmatprep.mubr.bf16.mxu0 %v10391_v12 }
 0x185   : > { %8994 = vmatprep.mubr.bf16.mxu1 %v12337_v58  ;;  %8175 = vmatpush3.bf16.msra.mxu0 %v9789_v55  ;;  %v9799_v55 = vld [vmem:[%s12283_s3 + $0x170] sm:$0xff]  }
 0x186   : > { %8176 = vmatprep.subr.bf16.mxu0 %v9791_v30  ;;  %v9818_v30 = vld [vmem:[%s12283_s3 + $0x28] sm:$0xff]  }
 0x189   : > { %8177 = vmatpush3.bf16.msra.mxu0 %v9792_v41  ;;  %v9800_v41 = vld [vmem:[%s12283_s3 + $0x178] sm:$0xff]  }
 0x18a   : > { %8242 = vmatprep.subr.bf16.mxu0 %v9801_v22  ;;  %v9821_v22 = vld [vmem:[%s12283_s3 + $0x30] sm:$0xff]  }
 0x18b   : > { %7370 = vmatmul.mubr.msk.bf16.gmra.mrb[80].mxu0 %vm10287_vm4, %v10413_v34  ;;  %v9778_v34 = vld [vmem:[%s12283_s3 + $0x218] sm:$0xff]  }
 0x18c   : > { %8995 = vmatmul.mubr.msk.bf16.vlgmr.msra.gmra.mrb[0].mxu1 %vm10294_vm5, %v10316_v27  ;;  %2198 = vmatprep.mubr.bf16.mxu0 %v10453_v0  ;;  %v9781_v27 = vld [vmem:[%s12283_s3 + $0x220] sm:$0xff]  }
 0x18d   : > { %9011 = vmatpush3.bf16.msra.mxu1 %v9769_v25  ;;  %8998 = vmatprep.mubr.msk.bf16.mxu1 %vm10294_vm5, %v10306_v21  ;;  %v9787_v25 = vld [vmem:[%s12283_s3 + $0x230] sm:$0xff]  }
 0x18e   : > { %9012 = vmatprep.subr.bf16.mxu1 %v9772_v40 }
 0x191   : > { %9013 = vmatpush3.bf16.msra.mxu1 %v9772_v40  ;;  %v9822_v40 = vld [vmem:[%s12283_s3 + $0x78] sm:$0xff]  }
 0x192   : > { %9014 = vmatprep.subr.bf16.mxu1 %v9775_v28 }
 0x193   : > { %7374 = vmatmul.mubr.msk.bf16.gmra.mrb[84].mxu0 %vm10287_vm4, %v10474_v20  ;;  %v9784_v20 = vld [vmem:[%s12283_s3 + $0x228] sm:$0xff]  }
 0x194   : > { %8999 = vmatmul.mubr.msk.bf16.gmra.mrb[4].mxu1 %vm10294_vm5, %v10362_v59  ;;  %2206 = vmatprep.mubr.bf16.mxu0 %v10445_v54 }
 0x195   : > { %9015 = vmatpush3.bf16.msra.mxu1 %v9775_v28  ;;  %9002 = vmatprep.mubr.msk.bf16.mxu1 %vm10294_vm5, %v10356_v53  ;;  %v9802_v28 = vld [vmem:[%s12283_s3 + $0x80] sm:$0xff]  }
 0x196   : > { %9016 = vmatprep.subr.bf16.mxu1 %v9778_v34 }
 0x199   : > { %9017 = vmatpush3.bf16.msra.mxu1 %v9778_v34  ;;  %v9824_v34 = vld [vmem:[%s12283_s3 + $0x38] sm:$0xff]  }
 0x19a   : > { %9018 = vmatprep.subr.bf16.mxu1 %v9781_v27 }
 0x19b   : > { %7378 = vmatmul.mubr.msk.bf16.gmra.mrb[88].mxu0 %vm10287_vm4, %v10467_v15 }
 0x19c   : > { %9003 = vmatmul.mubr.msk.bf16.gmra.mrb[8].mxu1 %vm10294_vm5, %v10416_v37  ;;  %2214 = vmatprep.mubr.bf16.mxu0 %v10511_v52 }
 0x19d   : > { %9019 = vmatpush3.bf16.msra.mxu1 %v9781_v27  ;;  %9006 = vmatprep.mubr.msk.bf16.mxu1 %vm10294_vm5, %v10410_v32  ;;  %v9805_v27 = vld [vmem:[%s12283_s3 + $0x88] sm:$0xff]  }
 0x19e   : > { %9020 = vmatprep.subr.bf16.mxu1 %v9784_v20 }
 0x1a1   : > { %9021 = vmatpush3.bf16.msra.mxu1 %v9784_v20  ;;  %v9808_v20 = vld [vmem:[%s12283_s3 + $0x90] sm:$0xff]  }
 0x1a2   : > { %9022 = vmatprep.subr.bf16.mxu1 %v9787_v25 }
 0x1a3   : > { %7382 = vmatmul.mubr.msk.bf16.gmra.mrb[92].mxu0 %vm10287_vm4, %v10526_v8 }
 0x1a4   : > { %9007 = vmatmul.mubr.msk.bf16.gmra.mrb[12].mxu1 %vm10294_vm5, %v10469_v17  ;;  %2834 = vmatprep.mubr.bf16.mxu0 %v10511_v52 }
 0x1a5   : > { %9023 = vmatpush3.bf16.msra.mxu1 %v9787_v25  ;;  %9026 = vmatprep.mubr.msk.bf16.mxu1 %vm10294_vm5, %v10306_v21  ;;  %v9804_v21 = vld [vmem:[%s12283_s3 + $0x48] sm:$0xff]   ;;  %v9811_v25 = vld [vmem:[%s12283_s3 + $0x98] sm:$0xff]  }
 0x1a6   : > { %9024 = vmatprep.subr.bf16.mxu1 %v9790_v13 }
 0x1a9   : > { %9025 = vmatpush3.bf16.msra.mxu1 %v9790_v13  ;;  %v9814_v13 = vld [vmem:[%s12283_s3 + $0xa0] sm:$0xff]  }
 0x1aa   : > { %9042 = vmatprep.subr.bf16.mxu1 %v9793_v18 }
 0x1ab   : > { %7410 = vmatmul.mubr.msk.bf16.vlgmr.msra.gmra.mrb[96].mxu0 %vm10287_vm4, %v10526_v8 }
 0x1ac   : > { %9027 = vmatmul.mubr.msk.bf16.vlgmr.msra.gmra.mrb[0].mxu1 %vm10294_vm5, %v10362_v59  ;;  %2842 = vmatprep.mubr.bf16.mxu0 %v10503_v47  ;;  %v9807_v59 = vld [vmem:[%s12283_s3 + $0x50] sm:$0xff]  }
 0x1ad   : > { %9043 = vmatpush3.bf16.msra.mxu1 %v9793_v18  ;;  %9030 = vmatprep.mubr.msk.bf16.mxu1 %vm10294_vm5, %v10356_v53  ;;  %v9796_v53 = vld [vmem:[%s12283_s3 + $0x158] sm:$0xff]   ;;  %v9817_v18 = vld [vmem:[%s12283_s3 + $0xa8] sm:$0xff]  }
 0x1ae   : > { %9044 = vmatprep.subr.bf16.mxu1 %v9794_v35  ;;  %8243 = vmatpush3.bf16.msra.mxu0 %v9803_v38  ;;  %v9823_v38 = vld [vmem:[%s12283_s3 + $0xb8] sm:$0xff]  }
 0x1af   : > { %8244 = vmatprep.subr.bf16.mxu0 %v9804_v21  ;;  %v9825_v21 = vld [vmem:[%s12283_s3 + $0x1c0] sm:$0xff]  }
 0x1b1   : > { %9045 = vmatpush3.bf16.msra.mxu1 %v9794_v35  ;;  %v9820_v35 = vld [vmem:[%s12283_s3 + $0xb0] sm:$0xff]  }
 0x1b2   : > { %9046 = vmatprep.subr.bf16.mxu1 %v9795_v23  ;;  %8245 = vmatpush3.bf16.msra.mxu0 %v9806_v48  ;;  %v9827_v48 = vld [vmem:[%s12283_s3 + $0x1c8] sm:$0xff]  }
 0x1b3   : > { %7414 = vmatmul.mubr.msk.bf16.gmra.mrb[100].mxu0 %vm10287_vm4, %v10522_v5  ;;  %8246 = vmatprep.subr.bf16.mxu0 %v9807_v59  ;;  %v9828_v59 = vld [vmem:[%s12283_s3 + $0x188] sm:$0xff]  }
 0x1b4   : > { %9031 = vmatmul.mubr.msk.bf16.gmra.mrb[4].mxu1 %vm10294_vm5, %v10416_v37  ;;  %2850 = vmatprep.mubr.bf16.mxu0 %v10546_v43  ;;  %v9813_v37 = vld [vmem:[%s12283_s3 + $0x60] sm:$0xff]  }
 0x1b5   : > { %9047 = vmatpush3.bf16.msra.mxu1 %v9795_v23  ;;  %9034 = vmatprep.mubr.msk.bf16.mxu1 %vm10294_vm5, %v10410_v32  ;;  %v9798_v32 = vld [vmem:[%s12283_s3 + $0x168] sm:$0xff]   ;;  %v9826_v23 = vld [vmem:[%s12283_s3 + $0x180] sm:$0xff]  }
 0x1b6   : > { %9048 = vmatprep.subr.bf16.mxu1 %v9796_v53  ;;  %8247 = vmatpush3.bf16.msra.mxu0 %v9809_v49  ;;  %v9857_v49 = vld [vmem:[#allocation5 + $0x108] sm:$0xff]  }
 0x1b7   : > { %8248 = vmatprep.subr.bf16.mxu0 %v9810_v51  ;;  %v9831_v51 = vld [vmem:[%s12283_s3 + $0x1d8] sm:$0xff]  }
 0x1b9   : > { %9049 = vmatpush3.bf16.msra.mxu1 %v9796_v53  ;;  %v9855_v53 = vld [vmem:[#allocation5 + $0xc0] sm:$0xff]  }
 0x1ba   : > { %9050 = vmatprep.subr.bf16.mxu1 %v9797_v61  ;;  %8249 = vmatpush3.bf16.msra.mxu0 %v9812_v42  ;;  %v9861_v42 = vld [vmem:[#allocation5 + $0x110] sm:$0xff]  }
 0x1bb   : > { %7418 = vmatmul.mubr.msk.bf16.gmra.mrb[104].mxu0 %vm10287_vm4, %v10558_v2  ;;  %8250 = vmatprep.subr.bf16.mxu0 %v9813_v37  ;;  %v9832_v37 = vld [vmem:[%s12283_s3 + $0x198] sm:$0xff]  }
 0x1bc   : > { %9035 = vmatmul.mubr.msk.bf16.gmra.mrb[8].mxu1 %vm10294_vm5, %v10469_v17  ;;  %2858 = vmatprep.mubr.bf16.mxu0 %v10541_v36  ;;  %v9819_v17 = vld [vmem:[%s12283_s3 + $0x70] sm:$0xff]  }
 0x1bd   : > { %9051 = vmatpush3.bf16.msra.mxu1 %v9797_v61  ;;  %9038 = vmatprep.mubr.msk.bf16.mxu1 %vm10294_vm5, %v10464_v10  ;;  %v9859_v61 = vld [vmem:[#allocation5 + $0xc8] sm:$0xff]  }
 0x1be   : > { %9052 = vmatprep.subr.bf16.mxu1 %v9798_v32  ;;  %8251 = vmatpush3.bf16.msra.mxu0 %v9815_v60  ;;  %v9865_v60 = vld [vmem:[#allocation5 + $0x118] sm:$0xff]  }
 0x1bf   : > { %8252 = vmatprep.subr.bf16.mxu0 %v9816_v26  ;;  %v9834_v26 = vld [vmem:[%s12283_s3 + $0x1a0] sm:$0xff]  }
 0x1c1   : > { %9053 = vmatpush3.bf16.msra.mxu1 %v9798_v32  ;;  %v9863_v32 = vld [vmem:[#allocation5 + $0xd0] sm:$0xff]  }
 0x1c2   : > { %9054 = vmatprep.subr.bf16.mxu1 %v9799_v55  ;;  %8253 = vmatpush3.bf16.msra.mxu0 %v9818_v30  ;;  %v9867_v30 = vld [vmem:[#allocation5 + $0xd8] sm:$0xff]  }
 0x1c3   : > { %7422 = vmatmul.mubr.msk.bf16.gmra.mrb[108].mxu0 %vm10287_vm4, %v10554_v62  ;;  %8254 = vmatprep.subr.bf16.mxu0 %v9819_v17  ;;  %v9869_v17 = vld [vmem:[#allocation5 + $0x120] sm:$0xff]  }
 0x1c4   : > { %9039 = vmatmul.mubr.msk.bf16.gmra.mrb[12].mxu1 %vm10294_vm5, %v10524_v7  ;;  %2866 = vmatprep.mubr.bf16.mxu0 %v10580_v45 }
 0x1c5   : > { %9055 = vmatpush3.bf16.msra.mxu1 %v9799_v55  ;;  %9058 = vmatprep.mubr.msk.bf16.mxu1 %vm10294_vm5, %v10524_v7  ;;  %v9835_v55 = vld [vmem:[%s12283_s3 + $0x1e8] sm:$0xff]  }
 0x1c6   : > { %9056 = vmatprep.subr.bf16.mxu1 %v9800_v41  ;;  %8255 = vmatpush3.bf16.msra.mxu0 %v9821_v22 }
 0x1c7   : > { %8256 = vmatprep.subr.bf16.mxu0 %v9822_v40  ;;  %v9837_v40 = vld [vmem:[%s12283_s3 + $0x1f0] sm:$0xff]  }
 0x1c9   : > { %9057 = vmatpush3.bf16.msra.mxu1 %v9800_v41  ;;  %v9836_v41 = vld [vmem:[%s12283_s3 + $0x1a8] sm:$0xff]  }
 0x1ca   : > { %9074 = vmatprep.subr.bf16.mxu1 %v9802_v28  ;;  %8257 = vmatpush3.bf16.msra.mxu0 %v9824_v34 }
 0x1cb   : > { %7426 = vmatmul.mubr.msk.bf16.gmra.mrb[112].mxu0 %vm10287_vm4, %v10592_v16 }
 0x1cc   : > { %9059 = vmatmul.mubr.msk.bf16.vlgmr.msra.gmra.mrb[48].mxu1 %vm10294_vm5, %v10518_v1  ;;  %2874 = vmatprep.mubr.bf16.mxu0 %v10575_v33 }
 0x1cd   : > { %9075 = vmatpush3.bf16.msra.mxu1 %v9802_v28  ;;  %9062 = vmatprep.mubr.msk.bf16.mxu1 %vm10294_vm5, %v10556_v63  ;;  %v9871_v28 = vld [vmem:[#allocation5 + $0xe0] sm:$0xff]  }
 0x1ce   : > { %9076 = vmatprep.subr.bf16.mxu1 %v9805_v27 }
 0x1d1   : > { %9077 = vmatpush3.bf16.msra.mxu1 %v9805_v27 }
 0x1d2   : > { %9078 = vmatprep.subr.bf16.mxu1 %v9808_v20 }
 0x1d3   : > { %7430 = vmatmul.mubr.msk.bf16.gmra.mrb[116].mxu0 %vm10287_vm4, %v10588_v3 }
 0x1d4   : > { %9063 = vmatmul.mubr.msk.bf16.gmra.mrb[52].mxu1 %vm10294_vm5, %v10550_v50  ;;  %2882 = vmatprep.mubr.bf16.mxu0 %v10614_v57 }
 0x1d5   : > { %9079 = vmatpush3.bf16.msra.mxu1 %v9808_v20  ;;  %9066 = vmatprep.mubr.msk.bf16.mxu1 %vm10294_vm5, %v10590_v4 }
 0x1d6   : > { %9080 = vmatprep.subr.bf16.mxu1 %v9811_v25 }
 0x1d9   : > { %9081 = vmatpush3.bf16.msra.mxu1 %v9811_v25  ;;  %v9873_v25 = vld [vmem:[#allocation5 + $0x128] sm:$0xff]  }
 0x1da   : > { %9082 = vmatprep.subr.bf16.mxu1 %v9814_v13 }
 0x1db   : > { %7434 = vmatmul.mubr.msk.bf16.gmra.mrb[120].mxu0 %vm10287_vm4, %v10626_v11 }
 0x1dc   : > { %9067 = vmatmul.mubr.msk.bf16.gmra.mrb[56].mxu1 %vm10294_vm5, %v10584_v56  ;;  %2890 = vmatprep.mubr.bf16.mxu0 %v10609_v24 }
 0x1dd   : > { %9083 = vmatpush3.bf16.msra.mxu1 %v9814_v13  ;;  %9070 = vmatprep.mubr.msk.bf16.mxu1 %vm10294_vm5, %v10624_v46 }
 0x1de   : > { %9084 = vmatprep.subr.bf16.mxu1 %v9817_v18 }
 0x1e1   : > { %9085 = vmatpush3.bf16.msra.mxu1 %v9817_v18  ;;  %v9838_v18 = vld [vmem:[%s12283_s3 + $0x1b0] sm:$0xff]  }
 0x1e2   : > { %9086 = vmatprep.subr.bf16.mxu1 %v9820_v35 }
 0x1e3   : > { %7438 = vmatmul.mubr.msk.bf16.gmra.mrb[124].mxu0 %vm10287_vm4, %v10622_v29 }
 0x1e4   : > { %9071 = vmatmul.mubr.msk.bf16.gmra.mrb[60].mxu1 %vm10294_vm5, %v10618_v31  ;;  %3172 = vmatprep.mubr.bf16.mxu0 %v10445_v54 }
 0x1e5   : > { %9087 = vmatpush3.bf16.msra.mxu1 %v9820_v35  ;;  %9090 = vmatprep.mubr.msk.bf16.mxu1 %vm10294_vm5, %v10464_v10  ;;  %v9853_v10 = vld [vmem:[#allocation5 + $0x100] sm:$0xff]  }
 0x1e6   : > { %9088 = vmatprep.subr.bf16.mxu1 %v9823_v38  ;;  %8402 = vmatprep.subr.bf16.mxu0 %v9853_v10 }
 0x1e9   : > { %9089 = vmatpush3.bf16.msra.mxu1 %v9823_v38  ;;  %v9839_v38 = vld [vmem:[%s12283_s3 + $0x1f8] sm:$0xff]  }
 0x1ea   : > { %8322 = vmatprep.subr.bf16.mxu1 %v9825_v21  ;;  %v9875_v21 = vld [vmem:[#allocation5 + $0xe8] sm:$0xff]  }
 0x1eb   : > { %7466 = vmatmul.mubr.msk.bf16.vlgmr.msra.gmra.mrb[128].mxu0 %vm10287_vm4, %v10467_v15  ;;  %v9829_v15 = vld [vmem:[%s12283_s3 + $0x1d0] sm:$0xff]  }
 0x1ec   : > { %3180 = vmatprep.mubr.bf16.mxu0 %v10511_v52  ;;  %9091 = vmatmul.mubr.msk.bf16.vlgmr.msra.gmra.mrb[48].mxu1 %vm10294_vm5, %v10524_v7  ;;  %v9830_v7 = vld [vmem:[%s12283_s3 + $0x190] sm:$0xff]  }
 0x1ed   : > { %8323 = vmatpush3.bf16.msra.mxu1 %v9826_v23  ;;  %9094 = vmatprep.mubr.msk.bf16.mxu1 %vm10294_vm5, %v10518_v1  ;;  %v9877_v23 = vld [vmem:[#allocation5 + $0x130] sm:$0xff]  }
 0x1ee   : > { %8324 = vmatprep.subr.bf16.mxu1 %v9827_v48  ;;  %8403 = vmatpush3.bf16.msra.mxu0 %v9855_v53  ;;  %v9840_v48 = vld [vmem:[%s12283_s3 + $0x1b8] sm:$0xff]   ;;  %v9878_v53 = vld [vmem:[#allocation5 + $0xf0] sm:$0xff]  }
 0x1ef   : > { %8404 = vmatprep.subr.bf16.mxu0 %v9857_v49 }
 0x1f1   : > { %8325 = vmatpush3.bf16.msra.mxu1 %v9828_v59  ;;  %v9841_v59 = vld [vmem:[%s12283_s3 + $0x200] sm:$0xff]  }
 0x1f2   : > { %8326 = vmatprep.subr.bf16.mxu1 %v9829_v15  ;;  %8405 = vmatpush3.bf16.msra.mxu0 %v9859_v61 }
 0x1f3   : > { %7470 = vmatmul.mubr.msk.bf16.gmra.mrb[132].mxu0 %vm10287_vm4, %v10526_v8  ;;  %v9833_v8 = vld [vmem:[%s12283_s3 + $0x1e0] sm:$0xff]   ;;  %8406 = vmatprep.subr.bf16.mxu0 %v9861_v42 }
 0x1f4   : > { %3188 = vmatprep.mubr.bf16.mxu0 %v10503_v47  ;;  %9095 = vmatmul.mubr.msk.bf16.gmra.mrb[52].mxu1 %vm10294_vm5, %v10556_v63 }
 0x1f5   : > { %8327 = vmatpush3.bf16.msra.mxu1 %v9830_v7  ;;  %9098 = vmatprep.mubr.msk.bf16.mxu1 %vm10294_vm5, %v10550_v50 }
 0x1f6   : > { %8328 = vmatprep.subr.bf16.mxu1 %v9831_v51  ;;  %8407 = vmatpush3.bf16.msra.mxu0 %v9863_v32  ;;  %v9879_v51 = vld [vmem:[#allocation5 + $0x138] sm:$0xff]  }
 0x1f7   : > { %8408 = vmatprep.subr.bf16.mxu0 %v9865_v60  ;;  %v9843_v60 = vld [vmem:[%s12283_s3 + $0x210] sm:$0xff]  }
 0x1f9   : > { %8329 = vmatpush3.bf16.msra.mxu1 %v9832_v37  ;;  %v9842_v37 = vld [vmem:[%s12283_s3 + $0x208] sm:$0xff]  }
 0x1fa   : > { %8330 = vmatprep.subr.bf16.mxu1 %v9833_v8  ;;  %8409 = vmatpush3.bf16.msra.mxu0 %v9867_v30  ;;  %v9880_v8 = vld [vmem:[#allocation5 + $0xf8] sm:$0xff]  }
 0x1fb   : > { %7474 = vmatmul.mubr.msk.bf16.gmra.mrb[136].mxu0 %vm10287_vm4, %v10522_v5  ;;  %8410 = vmatprep.subr.bf16.mxu0 %v9869_v17 }
 0x1fc   : > { %3196 = vmatprep.mubr.bf16.mxu0 %v10546_v43  ;;  %9099 = vmatmul.mubr.msk.bf16.gmra.mrb[56].mxu1 %vm10294_vm5, %v10590_v4 }
 0x1fd   : > { %8331 = vmatpush3.bf16.msra.mxu1 %v9834_v26  ;;  %9102 = vmatprep.mubr.msk.bf16.mxu1 %vm10294_vm5, %v10584_v56 }
 0x1fe   : > { %v7938_v22 = vpop.f32.mrb[32].mxu0  ;;  %8332 = vmatprep.subr.bf16.mxu1 %v9835_v55  ;;  %8411 = vmatpush3.bf16.msra.mxu0 %v9871_v28 }
 0x1ff   : > { %v7939_v34 = vpop.f32.mrb[33].mxu0  ;;  %8412 = vmatprep.subr.bf16.mxu0 %v9873_v25 }
 0x200   : > { %v11025_v27 = vadd.f32 %v7939_v34, %v7938_v22  ;;  %v7941_v20 = vpop.f32.mrb[34].mxu0 }
 0x201   : > { %8333 = vmatpush3.bf16.msra.mxu1 %v9836_v41  ;;  %v7942_v13 = vpop.f32.mrb[35].mxu0 }
 0x202   : > { %v11030_v35 = vadd.f32 %v7942_v13, %v7941_v20  ;;  %8334 = vmatprep.subr.bf16.mxu1 %v9837_v40  ;;  %8413 = vmatpush3.bf16.msra.mxu0 %v9875_v21  ;;  %v9845_v40 = vld [vmem:[%s12283_s3 + $0x220] sm:$0xff]  }
 0x203   : > { %7478 = vmatmul.mubr.msk.bf16.gmra.mrb[140].mxu0 %vm10287_vm4, %v10558_v2  ;;  %8414 = vmatprep.subr.bf16.mxu0 %v9877_v23 }
 0x204   : > { %3204 = vmatprep.mubr.bf16.mxu0 %v10541_v36  ;;  %9103 = vmatmul.mubr.msk.bf16.gmra.mrb[60].mxu1 %vm10294_vm5, %v10624_v46 }
 0x205   : > { %8335 = vmatpush3.bf16.msra.mxu1 %v9838_v18  ;;  %3582 = vmatprep.mubr.bf16.mxu1 %v10503_v47 }
 0x206   : > { %v7944_v10 = vpop.f32.mrb[36].mxu0  ;;  %8336 = vmatprep.subr.bf16.mxu1 %v9839_v38  ;;  %8415 = vmatpush3.bf16.msra.mxu0 %v9878_v53  ;;  %v9847_v38 = vld [vmem:[%s12283_s3 + $0x230] sm:$0xff]  }
 0x207   : > { %v7945_v15 = vpop.f32.mrb[37].mxu0  ;;  %8416 = vmatprep.subr.bf16.mxu0 %v9879_v51 }
 0x208   : > { %v11049_v49 = vadd.f32 %v7945_v15, %v7944_v10  ;;  %v7947_v7 = vpop.f32.mrb[38].mxu0 }
 0x209   : > { %8337 = vmatpush3.bf16.msra.mxu1 %v9840_v48  ;;  %v7948_v61 = vpop.f32.mrb[39].mxu0 }
 0x20a   : > { %v11051_v42 = vadd.f32 %v7948_v61, %v7947_v7  ;;  %9106 = vmatprep.subr.bf16.mxu1 %v9841_v59  ;;  %8417 = vmatpush3.bf16.msra.mxu0 %v9880_v8  ;;  %v9848_v61 = vld [vmem:[%s12283_s3 + $0x238] sm:$0xff]  }
 0x20b   : > { %7482 = vmatmul.mubr.msk.bf16.gmra.mrb[144].mxu0 %vm10287_vm4, %v10554_v62 }
 0x20c   : > { %3212 = vmatprep.mubr.bf16.mxu0 %v10580_v45  ;;  %7522 = vmatmul.mubr.msk.bf16.vlgmr.msra.gmra.mrb[64].mxu1 %vm10287_vm4, %v10522_v5  ;;  %v9844_v5 = vld [vmem:[%s12283_s3 + $0x218] sm:$0xff]  }
 0x20d   : > { %9107 = vmatpush3.bf16.msra.mxu1 %v9841_v59  ;;  %3590 = vmatprep.mubr.bf16.mxu1 %v10546_v43 }
 0x20e   : > { %v7950_v32 = vpop.f32.mrb[40].mxu0  ;;  %9108 = vmatprep.subr.bf16.mxu1 %v9842_v37 }
 0x20f   : > { %v7951_v26 = vpop.f32.mrb[41].mxu0 }
 0x210   : > { %v11067_v55 = vadd.f32 %v7951_v26, %v7950_v32  ;;  %v7953_v30 = vpop.f32.mrb[42].mxu0  ;;  %v9849_v26 = vld [vmem:[#allocation5 + $0x40] sm:$0xff]  }
 0x211   : > { %v7954_v17 = vpop.f32.mrb[43].mxu0  ;;  %9109 = vmatpush3.bf16.msra.mxu1 %v9842_v37 }
 0x212   : > { %v11069_v41 = vadd.f32 %v7954_v17, %v7953_v30  ;;  %9110 = vmatprep.subr.bf16.mxu1 %v9843_v60 }
 0x213   : > { %7486 = vmatmul.mubr.msk.bf16.gmra.mrb[148].mxu0 %vm10287_vm4, %v10592_v16 }
 0x214   : > { %3220 = vmatprep.mubr.bf16.mxu0 %v10575_v33  ;;  %7526 = vmatmul.mubr.msk.bf16.gmra.mrb[68].mxu1 %vm10287_vm4, %v10558_v2  ;;  %v9846_v2 = vld [vmem:[%s12283_s3 + $0x228] sm:$0xff]  }
 0x215   : > { %3598 = vmatprep.mubr.bf16.mxu1 %v10541_v36  ;;  %9111 = vmatpush3.bf16.msra.mxu1 %v9843_v60 }
 0x216   : > { %v7956_v22 = vpop.f32.mrb[44].mxu0  ;;  %9112 = vmatprep.subr.bf16.mxu1 %v9844_v5 }
 0x217   : > { %v7957_v28 = vpop.f32.mrb[45].mxu0 }
 0x218   : > { %v11085_v34 = vadd.f32 %v7957_v28, %v7956_v22  ;;  %v7959_v20 = vpop.f32.mrb[46].mxu0 }
 0x219   : > { %v7960_v25 = vpop.f32.mrb[47].mxu0  ;;  %9113 = vmatpush3.bf16.msra.mxu1 %v9844_v5 }
 0x21a   : > { %v11087_v13 = vadd.f32 %v7960_v25, %v7959_v20  ;;  %9114 = vmatprep.subr.bf16.mxu1 %v9845_v40 }
 0x21b   : > { %7490 = vmatmul.mubr.msk.bf16.gmra.mrb[152].mxu0 %vm10287_vm4, %v10588_v3 }
 0x21c   : > { %3228 = vmatprep.mubr.bf16.mxu0 %v10614_v57  ;;  %7530 = vmatmul.mubr.msk.bf16.gmra.mrb[72].mxu1 %vm10287_vm4, %v10554_v62 }
 0x21d   : > { %3606 = vmatprep.mubr.bf16.mxu1 %v10580_v45  ;;  %9115 = vmatpush3.bf16.msra.mxu1 %v9845_v40 }
 0x21e   : > { %v7962_v18 = vpop.f32.mrb[48].mxu0  ;;  %9116 = vmatprep.subr.bf16.mxu1 %v9846_v2 }
 0x21f   : > { %v7963_v21 = vpop.f32.mrb[49].mxu0  ;;  %v8018_v23 = vpop.f32.mrb[16].mxu1 }
 0x220   : > { %v11103_v48 = vadd.f32 %v7963_v21, %v7962_v18  ;;  %v7965_v10 = vpop.f32.mrb[50].mxu0  ;;  %v8019_v59 = vpop.f32.mrb[17].mxu1  ;;  %v11137_v21 = vld [vmem:[#allocation5 + $0x140] sm:$0xff]  }
 0x221   : > { %v8020_v53 = vadd.f32 %v8019_v59, %v8018_v23  ;;  %v7966_v15 = vpop.f32.mrb[51].mxu0  ;;  %v8021_v7 = vpop.f32.mrb[18].mxu1  ;;  %9117 = vmatpush3.bf16.msra.mxu1 %v9846_v2  ;;  %9138 = vmatprep.subr.bf16.mxu0 %v11137_v21 }
 0x222   : > { %v11105_v62 = vadd.f32 %v7966_v15, %v7965_v10  ;;  %v8022_v51 = vpop.f32.mrb[19].mxu1  ;;  %9118 = vmatprep.subr.bf16.mxu1 %v9847_v38 }
 0x223   : > { %v11111_v37 = vadd.f32 %v8020_v53, %v11025_v27  ;;  %v8023_v8 = vadd.f32 %v8022_v51, %v8021_v7  ;;  %7494 = vmatmul.mubr.msk.bf16.gmra.mrb[156].mxu0 %vm10287_vm4, %v10626_v11 }
 0x224   : > { %7534 = vmatmul.mubr.msk.bf16.gmra.mrb[76].mxu1 %vm10287_vm4, %v10592_v16 }
 0x225   : > { %v11120_v32 = vadd.f32 %v8023_v8, %v11030_v35  ;;  %3614 = vmatprep.mubr.bf16.mxu1 %v10575_v33  ;;  %9119 = vmatpush3.bf16.msra.mxu1 %v9847_v38 }
 0x226   : > { %v7968_v60 = vpop.f32.mrb[52].mxu0  ;;  %9120 = vmatprep.subr.bf16.mxu1 %v9848_v61 }
 0x227   : > { %v7969_v27 = vpop.f32.mrb[53].mxu0  ;;  %v8024_v30 = vpop.f32.mrb[20].mxu1 }
 0x228   : > { %v11123_v17 = vadd.f32 %v7969_v27, %v7968_v60  ;;  %v7971_v5 = vpop.f32.mrb[54].mxu0  ;;  %v8025_v22 = vpop.f32.mrb[21].mxu1 }
 0x229   : > { %v8026_v40 = vadd.f32 %v8025_v22, %v8024_v30  ;;  %v7972_v28 = vpop.f32.mrb[55].mxu0  ;;  %v8027_v20 = vpop.f32.mrb[22].mxu1  ;;  %9121 = vmatpush3.bf16.msra.mxu1 %v9848_v61 }
 0x22a   : > { %v11125_v16 = vadd.f32 %v7972_v28, %v7971_v5  ;;  %v8028_v35 = vpop.f32.mrb[23].mxu1  ;;  %8482 = vmatprep.subr.bf16.mxu1 %v9849_v26 }
 0x22b   : > { %v11128_v25 = vadd.f32 %v8026_v40, %v11049_v49  ;;  %v8029_v2 = vadd.f32 %v8028_v35, %v8027_v20 }
 0x22c   : > { %7538 = vmatmul.mubr.msk.bf16.gmra.mrb[80].mxu1 %vm10287_vm4, %v10588_v3 }
 0x22d   : > { %v11134_v18 = vadd.f32 %v8029_v2, %v11051_v42  ;;  %3622 = vmatprep.mubr.bf16.mxu1 %v10614_v57 }
 0x22e   : > { %v7974_v38 = vpop.f32.mrb[56].mxu0 }
 0x22f   : > { %v7975_v23 = vpop.f32.mrb[57].mxu0  ;;  %v8030_v10 = vpop.f32.mrb[24].mxu1 }
 0x230   : > { %v11139_v59 = vadd.f32 %v7975_v23, %v7974_v38  ;;  %v7977_v53 = vpop.f32.mrb[58].mxu0  ;;  %v8031_v49 = vpop.f32.mrb[25].mxu1 }
 0x231   : > { %v8032_v15 = vadd.f32 %v8031_v49, %v8030_v10  ;;  %v7978_v7 = vpop.f32.mrb[59].mxu0  ;;  %v8033_v51 = vpop.f32.mrb[26].mxu1 }
 0x232   : > { %v11142_v3 = vadd.f32 %v7978_v7, %v7977_v53  ;;  %v8034_v42 = vpop.f32.mrb[27].mxu1 }
 0x233   : > { %v11145_v61 = vadd.f32 %v8032_v15, %v11067_v55  ;;  %v8035_v8 = vadd.f32 %v8034_v42, %v8033_v51 }
 0x234   : > { %7542 = vmatmul.mubr.msk.bf16.gmra.mrb[84].mxu1 %vm10287_vm4, %v10626_v11 }
 0x235   : > { %v11151_v60 = vadd.f32 %v8035_v8, %v11069_v41  ;;  %3630 = vmatprep.mubr.bf16.mxu1 %v10609_v24 }
 0x236   : > { %v7980_v26 = vpop.f32.mrb[60].mxu0 }
 0x237   : > { %v7981_v27 = vpop.f32.mrb[61].mxu0  ;;  %v8036_v30 = vpop.f32.mrb[28].mxu1 }
 0x238   : > { %v11154_v5 = vadd.f32 %v7981_v27, %v7980_v26  ;;  %v7983_v22 = vpop.f32.mrb[62].mxu0  ;;  %v8037_v40 = vpop.f32.mrb[29].mxu1 }
 0x239   : > { %v8038_v28 = vadd.f32 %v8037_v40, %v8036_v30  ;;  %v7984_v55 = vpop.f32.mrb[63].mxu0  ;;  %v8039_v20 = vpop.f32.mrb[30].mxu1 }
 0x23a   : > { %v11156_v35 = vadd.f32 %v7984_v55, %v7983_v22  ;;  %v8040_v2 = vpop.f32.mrb[31].mxu1 }
 0x23b   : > { %v11159_v11 = vadd.f32 %v8038_v28, %v11085_v34  ;;  %v8041_v41 = vadd.f32 %v8040_v2, %v8039_v20 }
 0x23c   : > { %7546 = vmatmul.mubr.msk.bf16.gmra.mrb[88].mxu1 %vm10287_vm4, %v10622_v29 }
 0x23d   : > { %v11165_v38 = vadd.f32 %v8041_v41, %v11087_v13  ;;  %3638 = vmatprep.mubr.bf16.mxu1 %v12337_v58 }
 0x23e   : > { %v8098_v23 = vpop.f32.mrb[64].mxu0 }
 0x23f   : > { %v8042_v10 = vpop.f32.mrb[32].mxu1  ;;  %v8099_v53 = vpop.f32.mrb[65].mxu0 }
 0x240   : > { %v8100_v49 = vadd.f32 %v8099_v53, %v8098_v23  ;;  %v8043_v15 = vpop.f32.mrb[33].mxu1  ;;  %v8101_v7 = vpop.f32.mrb[66].mxu0 }
 0x241   : > { %v8044_v51 = vadd.f32 %v8043_v15, %v8042_v10  ;;  %v8045_v42 = vpop.f32.mrb[34].mxu1  ;;  %v8102_v34 = vpop.f32.mrb[67].mxu0  ;;  %v9850_v10 = vld [vmem:[#allocation5] sm:$0xff]  }
 0x242   : > { %v8103_v8 = vadd.f32 %v8102_v34, %v8101_v7  ;;  %v8046_v26 = vpop.f32.mrb[35].mxu1  ;;  %v11169_v27 = vadd.f32 %v11111_v37, %v8100_v49  ;;  %v9851_v49 = vld [vmem:[#allocation5 + $0x48] sm:$0xff]  }
 0x243   : > { %v11172_v29 = vadd.f32 %v8044_v51, %v11103_v48  ;;  %v8047_v13 = vadd.f32 %v8046_v26, %v8045_v42 }
 0x244   : > { %3639 = vmatmul.mubr.bf16.gmra.mrb[92].mxu1 %v12337_v58  ;;  %v11176_v30 = vadd.f32 %v11120_v32, %v8103_v8 }
 0x245   : > { %v11179_v22 = vadd.f32 %v8047_v13, %v11105_v62  ;;  %9122 = vmatprep.mubr.msk.bf16.mxu1 %vm10294_vm5, %v10518_v1 }
 0x246   : > { %v8104_v40 = vpop.f32.mrb[68].mxu0 }
 0x247   : > { %v8048_v28 = vpop.f32.mrb[36].mxu1  ;;  %v8105_v37 = vpop.f32.mrb[69].mxu0 }
 0x248   : > { %v8106_v55 = vadd.f32 %v8105_v37, %v8104_v40  ;;  %v8049_v20 = vpop.f32.mrb[37].mxu1  ;;  %v8107_v48 = vpop.f32.mrb[70].mxu0 }
 0x249   : > { %v8050_v2 = vadd.f32 %v8049_v20, %v8048_v28  ;;  %v8051_v41 = vpop.f32.mrb[38].mxu1  ;;  %v8108_v23 = vpop.f32.mrb[71].mxu0  ;;  %v9858_v20 = vld [vmem:[#allocation5 + $0x58] sm:$0xff]  }
 0x24a   : > { %v8109_v53 = vadd.f32 %v8108_v23, %v8107_v48  ;;  %v8052_v32 = vpop.f32.mrb[39].mxu1  ;;  %v11185_v62 = vadd.f32 %v11128_v25, %v8106_v55  ;;  %v9852_v25 = vld [vmem:[#allocation5 + $0x8] sm:$0xff]  }
 0x24b   : > { %v11188_v15 = vadd.f32 %v8050_v2, %v11123_v17  ;;  %v8053_v1 = vadd.f32 %v8052_v32, %v8051_v41  ;;  %v9854_v17 = vld [vmem:[#allocation5 + $0x50] sm:$0xff]  }
 0x24c   : > { %9123 = vmatmul.mubr.msk.bf16.vlgmr.msra.gmra.mrb[48].mxu1 %vm10294_vm5, %v10556_v63  ;;  %v11194_v7 = vadd.f32 %v11134_v18, %v8109_v53 }
 0x24d   : > { %v11197_v51 = vadd.f32 %v8053_v1, %v11125_v16  ;;  %9126 = vmatprep.mubr.msk.bf16.mxu1 %vm10294_vm5, %v10550_v50  ;;  %8483 = vmatpush3.bf16.msra.mxu1 %v9850_v10  ;;  %v9856_v16 = vld [vmem:[#allocation5 + $0x10] sm:$0xff]  }
 0x24e   : > { %v8110_v42 = vpop.f32.mrb[72].mxu0  ;;  %8484 = vmatprep.subr.bf16.mxu1 %v9851_v49 }
 0x24f   : > { %v8054_v34 = vpop.f32.mrb[40].mxu1  ;;  %v8111_v8 = vpop.f32.mrb[73].mxu0 }
 0x250   : > { %v8112_v26 = vadd.f32 %v8111_v8, %v8110_v42  ;;  %v8055_v13 = vpop.f32.mrb[41].mxu1  ;;  %v8113_v63 = vpop.f32.mrb[74].mxu0  ;;  %v9866_v8 = vld [vmem:[#allocation5 + $0x68] sm:$0xff]  }
 0x251   : > { %v8056_v40 = vadd.f32 %v8055_v13, %v8054_v34  ;;  %v8057_v18 = vpop.f32.mrb[42].mxu1  ;;  %v8114_v28 = vpop.f32.mrb[75].mxu0  ;;  %8485 = vmatpush3.bf16.msra.mxu1 %v9852_v25 }
 0x252   : > { %v8115_v37 = vadd.f32 %v8114_v28, %v8113_v63  ;;  %v8058_v55 = vpop.f32.mrb[43].mxu1  ;;  %8486 = vmatprep.subr.bf16.mxu1 %v9854_v17  ;;  %v11203_v50 = vadd.f32 %v11145_v61, %v8112_v26  ;;  %v9860_v61 = vld [vmem:[#allocation5 + $0x18] sm:$0xff]   ;;  %v9870_v28 = vld [vmem:[#allocation5 + $0x70] sm:$0xff]  }
 0x253   : > { %v11206_v48 = vadd.f32 %v8056_v40, %v11139_v59  ;;  %v8059_v2 = vadd.f32 %v8058_v55, %v8057_v18  ;;  %v9862_v59 = vld [vmem:[#allocation5 + $0x60] sm:$0xff]   ;;  %v9868_v18 = vld [vmem:[#allocation5 + $0x28] sm:$0xff]  }
 0x254   : > { %9127 = vmatmul.mubr.msk.bf16.gmra.mrb[52].mxu1 %vm10294_vm5, %v10590_v4  ;;  %v11212_v41 = vadd.f32 %v11151_v60, %v8115_v37 }
 0x255   : > { %v11215_v23 = vadd.f32 %v8059_v2, %v11142_v3  ;;  %9130 = vmatprep.mubr.msk.bf16.mxu1 %vm10294_vm5, %v10584_v56  ;;  %8487 = vmatpush3.bf16.msra.mxu1 %v9856_v16  ;;  %v9864_v3 = vld [vmem:[#allocation5 + $0x20] sm:$0xff]   ;;  %v9876_v2 = vld [vmem:[#allocation5 + $0x38] sm:$0xff]  }
 0x256   : > { %v8116_v10 = vpop.f32.mrb[76].mxu0  ;;  %8488 = vmatprep.subr.bf16.mxu1 %v9858_v20 }
 0x257   : > { %v8060_v53 = vpop.f32.mrb[44].mxu1  ;;  %v8117_v32 = vpop.f32.mrb[77].mxu0 }
 0x258   : > { %v8118_v49 = vadd.f32 %v8117_v32, %v8116_v10  ;;  %v8061_v1 = vpop.f32.mrb[45].mxu1  ;;  %v8119_v4 = vpop.f32.mrb[78].mxu0 }
 0x259   : > { %v8062_v25 = vadd.f32 %v8061_v1, %v8060_v53  ;;  %v8063_v60 = vpop.f32.mrb[46].mxu1  ;;  %v8120_v42 = vpop.f32.mrb[79].mxu0  ;;  %8489 = vmatpush3.bf16.msra.mxu1 %v9860_v61  ;;  %v9897_v1 = vld [vmem:[#allocation5 + $0x100] sm:$0xff]  }
 0x25a   : > { %v8121_v17 = vadd.f32 %v8120_v42, %v8119_v4  ;;  %v8064_v34 = vpop.f32.mrb[47].mxu1  ;;  %8490 = vmatprep.subr.bf16.mxu1 %v9862_v59  ;;  %v11221_v56 = vadd.f32 %v11159_v11, %v8118_v49 }
 0x25b   : > { %v9366_v26 = vadd.f32 %v8062_v25, %v11154_v5  ;;  %v8065_v13 = vadd.f32 %v8064_v34, %v8063_v60  ;;  %v9899_v25 = vld [vmem:[#allocation5 + $0xc0] sm:$0xff]  }
 0x25c   : > { %9131 = vmatmul.mubr.msk.bf16.gmra.mrb[56].mxu1 %vm10294_vm5, %v10624_v46  ;;  %v11228_v63 = vadd.f32 %v11165_v38, %v8121_v17  ;;  %v9872_v46 = vld [vmem:[#allocation5 + $0x30] sm:$0xff]   ;;  %v9874_v38 = vld [vmem:[#allocation5 + $0x78] sm:$0xff]  }
 0x25d   : > { %v9372_v40 = vadd.f32 %v8065_v13, %v11156_v35  ;;  %9134 = vmatprep.mubr.msk.bf16.mxu1 %vm10294_vm5, %v10618_v31  ;;  %8491 = vmatpush3.bf16.msra.mxu1 %v9864_v3  ;;  %v9903_v13 = vld [vmem:[#allocation5 + $0x108] sm:$0xff]  }
 0x25e   : > { %v8122_v11 = vpop.f32.mrb[80].mxu0  ;;  %8492 = vmatprep.subr.bf16.mxu1 %v9866_v8 }
 0x25f   : > { %v8123_v5 = vpop.f32.mrb[81].mxu0 }
 0x260   : > { %v8124_v16 = vadd.f32 %v8123_v5, %v8122_v11  ;;  %v8125_v37 = vpop.f32.mrb[82].mxu0 }
 0x261   : > { %v8126_v55 = vpop.f32.mrb[83].mxu0  ;;  %8493 = vmatpush3.bf16.msra.mxu1 %v9868_v18 }
 0x262   : > { %v8127_v20 = vadd.f32 %v8126_v55, %v8125_v37  ;;  %8494 = vmatprep.subr.bf16.mxu1 %v9870_v28  ;;  %v11235_v35 = vadd.f32 %v11172_v29, %v8124_v16 }
 0x264   : > { %9135 = vmatmul.mubr.bf16.gmra.mrb[60].mxu1 %v12337_v58  ;;  %v11239_v31 = vadd.f32 %v11179_v22, %v8127_v20  ;;  %v9909_v20 = vld [vmem:[#allocation5 + $0x110] sm:$0xff]  }
 0x265   : > { %8495 = vmatpush3.bf16.msra.mxu1 %v9872_v46  ;;  %4597 = vmatprep.mubr.bf16.mxu1 %v12337_v58 }
 0x266   : > { %v8128_v61 = vpop.f32.mrb[84].mxu0  ;;  %8496 = vmatprep.subr.bf16.mxu1 %v9874_v38  ;;  %v9911_v38 = vld [vmem:[#allocation5 + $0xd0] sm:$0xff]  }
 0x267   : > { %v8129_v10 = vpop.f32.mrb[85].mxu0 }
 0x268   : > { %v8130_v59 = vadd.f32 %v8129_v10, %v8128_v61  ;;  %v8131_v53 = vpop.f32.mrb[86].mxu0 }
 0x269   : > { %v8132_v32 = vpop.f32.mrb[87].mxu0  ;;  %8497 = vmatpush3.bf16.msra.mxu1 %v9876_v2  ;;  %v11262_v2 = vld [vmem:[%s12284_s4] ss:$0 sm:$0xff] }
 0x26a   : > { %v8133_v49 = vadd.f32 %v8132_v32, %v8131_v53  ;;  %v11243_v29 = vadd.f32 %v11188_v15, %v8130_v59  ;;  %8642 = vmatprep.subr.bf16.mxu1 %v9897_v1 }
 0x26c   : > { %4598 = vmatmul.mubr.bf16.vlgmr.msra.gmra.mrb[96].mxu1 %v12337_v58  ;;  %v11247_v22 = vadd.f32 %v11197_v51, %v8133_v49  ;;  %v9905_v51 = vld [vmem:[#allocation5 + $0xc8] sm:$0xff]  }
 0x26d   : > { %8643 = vmatpush3.bf16.msra.mxu1 %v9899_v25 }
 0x26e   : > { %v8134_v4 = vpop.f32.mrb[88].mxu0  ;;  %8644 = vmatprep.subr.bf16.mxu1 %v9903_v13 }
 0x26f   : > { %v8135_v60 = vpop.f32.mrb[89].mxu0 }
 0x270   : > { %v8136_v42 = vadd.f32 %v8135_v60, %v8134_v4  ;;  %v8137_v3 = vpop.f32.mrb[90].mxu0 }
 0x271   : > { %v8138_v17 = vpop.f32.mrb[91].mxu0  ;;  %8645 = vmatpush3.bf16.msra.mxu1 %v9905_v51 }
 0x272   : > { %v8139_v34 = vadd.f32 %v8138_v17, %v8137_v3  ;;  %v11250_v8 = vadd.f32 %v11206_v48, %v8136_v42  ;;  %8646 = vmatprep.subr.bf16.mxu1 %v9909_v20  ;;  %v9915_v3 = vld [vmem:[#allocation5 + $0x118] sm:$0xff]  }
 0x274   : > { %v11253_v15 = vadd.f32 %v11215_v23, %v8139_v34 }
 0x275   : > { %8647 = vmatpush3.bf16.msra.mxu1 %v9911_v38 }
 0x276   : > { %v8140_v18 = vpop.f32.mrb[92].mxu0  ;;  %8648 = vmatprep.subr.bf16.mxu1 %v9915_v3 }
 0x277   : > { %v8141_v11 = vpop.f32.mrb[93].mxu0 }
 0x278   : > { %v8142_v28 = vadd.f32 %v8141_v11, %v8140_v18  ;;  %v8143_v5 = vpop.f32.mrb[94].mxu0 }
 0x279   : > { %v8144_v16 = vpop.f32.mrb[95].mxu0 }
 0x27a   : > { %v8145_v37 = vadd.f32 %v8144_v16, %v8143_v5  ;;  %v11255_v55 = vadd.f32 %v9366_v26, %v8142_v28  ;;  %v9917_v28 = vld [vmem:[#allocation5 + $0xd8] sm:$0xff]  }
 0x27b   : > { %8649 = vmatpush3.bf16.msra.mxu1 %v9917_v28 }
 0x27c   : > { %v11257_v46 = vadd.f32 %v9372_v40, %v8145_v37 }
 0x27e   : > { %v8178_v48 = vpop.f32.mrb[96].mxu0 }
 0x27f   : > { %v9028_v23 = vpop.f32.mrb[0].mxu1  ;;  %v8179_v61 = vpop.f32.mrb[97].mxu0 }
 0x280   : > { %v9332_v10 = vadd.f32 %v11185_v62, %v9028_v23  ;;  %v2257_v59 = vpop.f32.mrb[1].mxu1  ;;  %v11265_v53 = vadd.f32 %v8179_v61, %v8178_v48  ;;  %v8181_v26 = vpop.f32.mrb[98].mxu0 }
 0x281   : > { %v9335_v40 = vadd.f32 %v11169_v27, %v2257_v59  ;;  %v9029_v32 = vpop.f32.mrb[2].mxu1  ;;  %v8182_v49 = vpop.f32.mrb[99].mxu0 }
 0x282   : > { %v2345_v1 = vadd.f32 %v9332_v10, %v11262_v2  ;;  %v9338_v4 = vadd.f32 %v11194_v7, %v9029_v32  ;;  %v2260_v25 = vpop.f32.mrb[3].mxu1  ;;  %v11270_v60 = vadd.f32 %v8182_v49, %v8181_v26 }
 0x283   : > { %v2343_v42 = vadd.f32 %v9335_v40, %v11262_v2  ;;  %v9341_v62 = vadd.f32 %v11176_v30, %v2260_v25 }
 0x284   : > { %v2381_v17 = vmax.f32 %v2345_v1, 0.0  ;;  %v2346_v34 = vadd.f32 %v9338_v4, %v11262_v2 }
 0x285   : > { %v2359_v13 = vmax.f32 %v2343_v42, 0.0  ;;  %v2344_v27 = vadd.f32 %v9341_v62, %v11262_v2 }
 0x286   : > { %v2385_v18 = vrot.slane %v2381_v17, 7  ;;  %v2382_v51 = vmax.f32 %v2346_v34, 0.0  ;;  %v8184_v11 = vpop.f32.mrb[100].mxu0  ;;  %v2391_v7 = vrot.slane %v2381_v17, 1 }
 0x287   : > { %v2363_v5 = vrot.slane %v2359_v13, 7  ;;  %v2369_v16 = vrot.slane %v2359_v13, 1  ;;  %v2360_v37 = vmax.f32 %v2344_v27, 0.0  ;;  %v9032_v20 = vpop.f32.mrb[4].mxu1  ;;  %v8185_v48 = vpop.f32.mrb[101].mxu0 }
 0x288   : > { %v2386_v38 = vrot.slane %v2382_v51, 7  ;;  %v2392_v30 = vrot.slane %v2382_v51, 1  ;;  %v9344_v23 = vadd.f32 %v11221_v56, %v9032_v20  ;;  %v2273_v61 = vpop.f32.mrb[5].mxu1  ;;  %v11277_v10 = vpack.c.bf16 %v2382_v51, %v2381_v17  ;;  %v8187_v59 = vpop.f32.mrb[102].mxu0 }
 0x289   : > { %v2364_v26 = vrot.slane %v2360_v37, 7  ;;  %v2370_v40 = vrot.slane %v2360_v37, 1  ;;  %v9347_v32 = vadd.f32 %v11203_v50, %v2273_v61  ;;  %v9033_v49 = vpop.f32.mrb[6].mxu1  ;;  %v2376_v1 = vpack.c.bf16 %v2360_v37, %v2359_v13  ;;  %v8188_v4 = vpop.f32.mrb[103].mxu0  ;;  %v9921_v13 = vld [vmem:[#allocation5 + $0x120] sm:$0xff]  }
 0x28a   : > { %v2393_v25 = vsel %vm550_vm2, %v2391_v7, %v2392_v30  ;;  %v2349_v42 = vadd.f32 %v9344_v23, %v11262_v2  ;;  %v9350_v62 = vadd.f32 %v11228_v63, %v9033_v49  ;;  %v2276_v3 = vpop.f32.mrb[7].mxu1  ;;  %v11283_v56 = vadd.f32 %v8185_v48, %v8184_v11  ;;  %v9882_v48 = vld [vmem:[#allocation5 + $0x148] sm:$0xff]   ;;  %8650 = vmatprep.subr.bf16.mxu1 %v9921_v13 }
 0x28b   : > { %v11285_v17 = vpack.c.bf16 %v2392_v30, %v2393_v25  ;;  %v2365_v34 = vsel %vm543_vm0, %v2363_v5, %v2364_v26  ;;  %v2347_v27 = vadd.f32 %v9347_v32, %v11262_v2  ;;  %v9353_v50 = vadd.f32 %v11212_v41, %v2276_v3  ;;  %4259 = vmatprep.mubr.bf16.mxu0 %v2376_v1 }
 0x28c   : > { %v7570_v51 = vpack.c.bf16 %v2365_v34, %v2363_v5  ;;  %v11290_v28 = vmax.f32 %v2349_v42, 0.0  ;;  %v2350_v7 = vadd.f32 %v9350_v62, %v11262_v2  ;;  %4605 = vmatprep.mubr.bf16.mxu1 %v2376_v1  ;;  %v11293_v63 = vadd.f32 %v8188_v4, %v8187_v59 }
 0x28d   : > { %v2403_v11 = vmax.f32 %v2347_v27, 0.0  ;;  %v2348_v37 = vadd.f32 %v9353_v50, %v11262_v2  ;;  %v2387_v20 = vsel %vm543_vm0, %v2385_v18, %v2386_v38  ;;  %v2371_v30 = vsel %vm550_vm2, %v2369_v16, %v2370_v40  ;;  %v9922_v38 = vld [vmem:[#allocation5 + $0xe0] sm:$0xff]  }
 0x28e   : > { %v2429_v41 = vrot.slane %v11290_v28, 7  ;;  %v2435_v5 = vrot.slane %v11290_v28, 1  ;;  %v11300_v23 = vmax.f32 %v2350_v7, 0.0  ;;  %7571 = vmatmul.mubr.msk.bf16.vlgmr.msra.gmra.mrb[160].mxu0 %vm10287_vm4, %v7570_v51  ;;  %7627 = vmatmul.mubr.msk.bf16.gmra.mrb[100].mxu1 %vm10287_vm4, %v7570_v51  ;;  %v11306_v61 = vpack.c.bf16 %v2387_v20, %v2385_v18  ;;  %v8190_v59 = vpop.f32.mrb[104].mxu0 }
 0x28f   : > { %v2407_v26 = vrot.slane %v2403_v11, 7  ;;  %v2413_v32 = vrot.slane %v2403_v11, 1  ;;  %v2404_v16 = vmax.f32 %v2348_v37, 0.0  ;;  %v9036_v49 = vpop.f32.mrb[8].mxu1  ;;  %4267 = vmatprep.mubr.bf16.mxu0 %v11277_v10  ;;  %4613 = vmatprep.mubr.bf16.mxu1 %v11277_v10  ;;  %v8191_v1 = vpop.f32.mrb[105].mxu0  ;;  %v11310_v4 = vpack.c.bf16 %v2370_v40, %v2371_v30  ;;  %v9883_v37 = vld [vmem:[#allocation5 + $0x150] sm:$0xff]  }
 0x290   : > { %v2430_v25 = vrot.slane %v11300_v23, 7  ;;  %v2436_v42 = vrot.slane %v11300_v23, 1  ;;  %v9356_v18 = vadd.f32 %v11243_v29, %v9036_v49  ;;  %v2289_v62 = vpop.f32.mrb[9].mxu1  ;;  %v11315_v3 = vadd.f32 %v8191_v1, %v8190_v59  ;;  %v8193_v34 = vpop.f32.mrb[106].mxu0  ;;  %9139 = vmatpush3.bf16.msra.mxu0 %v11137_v21  ;;  %8651 = vmatpush3.bf16.msra.mxu1 %v9922_v38  ;;  %v9923_v49 = vld [vmem:[#allocation5 + $0x128] sm:$0xff]  }
 0x291   : > { %v2408_v27 = vrot.slane %v2404_v16, 7  ;;  %v2414_v50 = vrot.slane %v2404_v16, 1  ;;  %v9359_v13 = vadd.f32 %v11235_v35, %v2289_v62  ;;  %v9037_v51 = vpop.f32.mrb[10].mxu1  ;;  %v11319_v40 = vpack.c.bf16 %v2404_v16, %v2403_v11  ;;  %v8194_v7 = vpop.f32.mrb[107].mxu0  ;;  %9140 = vmatprep.subr.bf16.mxu0 %v9882_v48  ;;  %8652 = vmatprep.subr.bf16.mxu1 %v9923_v49 }
 0x292   : > { %v2353_v20 = vadd.f32 %v9356_v18, %v11262_v2  ;;  %v9362_v29 = vadd.f32 %v11247_v22, %v9037_v51  ;;  %v2292_v30 = vpop.f32.mrb[11].mxu1  ;;  %v11323_v59 = vadd.f32 %v8194_v7, %v8193_v34  ;;  %v11327_v21 = vpack.c.bf16 %v11300_v23, %v11290_v28  ;;  %v9884_v34 = vld [vmem:[#allocation5 + $0x158] sm:$0xff]  }
 0x293   : > { %v2351_v38 = vadd.f32 %v9359_v13, %v11262_v2  ;;  %v9365_v35 = vadd.f32 %v11239_v31, %v2292_v30  ;;  %v2409_v11 = vsel %vm543_vm0, %v2407_v26, %v2408_v27  ;;  %v2431_v16 = vsel %vm543_vm0, %v2429_v41, %v2430_v25 }
 0x294   : > { %v11333_v1 = vmax.f32 %v2353_v20, 0.0  ;;  %v2354_v22 = vadd.f32 %v9362_v29, %v11262_v2  ;;  %v11336_v18 = vpack.c.bf16 %v2409_v11, %v2407_v26  ;;  %v11338_v62 = vpack.c.bf16 %v2431_v16, %v2429_v41  ;;  %9141 = vmatpush3.bf16.msra.mxu0 %v9882_v48  ;;  %v9924_v26 = vld [vmem:[#allocation5 + $0xe8] sm:$0xff]  }
 0x295   : > { %v2447_v28 = vmax.f32 %v2351_v38, 0.0  ;;  %v2352_v23 = vadd.f32 %v9365_v35, %v11262_v2  ;;  %9142 = vmatprep.subr.bf16.mxu0 %v9883_v37  ;;  %v2415_v31 = vsel %vm550_vm2, %v2413_v32, %v2414_v50  ;;  %v2437_v27 = vsel %vm550_vm2, %v2435_v5, %v2436_v42  ;;  %8653 = vmatpush3.bf16.msra.mxu1 %v9924_v26 }
 0x296   : > { %v2473_v25 = vrot.slane %v11333_v1, 7  ;;  %v2479_v13 = vrot.slane %v11333_v1, 1  ;;  %v11345_v51 = vmax.f32 %v2354_v22, 0.0  ;;  %7575 = vmatmul.mubr.msk.bf16.gmra.mrb[164].mxu0 %vm10287_vm4, %v11306_v61  ;;  %7631 = vmatmul.mubr.msk.bf16.gmra.mrb[104].mxu1 %vm10287_vm4, %v11306_v61  ;;  %v8196_v48 = vpop.f32.mrb[108].mxu0  ;;  %v11353_v41 = vpack.c.bf16 %v2414_v50, %v2415_v31 }
 0x297   : > { %v2451_v5 = vrot.slane %v2447_v28, 7  ;;  %v2457_v32 = vrot.slane %v2447_v28, 1  ;;  %v2448_v7 = vmax.f32 %v2352_v23, 0.0  ;;  %v9040_v20 = vpop.f32.mrb[12].mxu1  ;;  %4275 = vmatprep.mubr.bf16.mxu0 %v11319_v40  ;;  %4621 = vmatprep.mubr.bf16.mxu1 %v11319_v40  ;;  %v8197_v29 = vpop.f32.mrb[109].mxu0  ;;  %v11357_v30 = vpack.c.bf16 %v2436_v42, %v2437_v27  ;;  %v9885_v27 = vld [vmem:[#allocation5 + $0x160] sm:$0xff]  }
 0x298   : > { %v2474_v38 = vrot.slane %v11345_v51, 7  ;;  %v2480_v35 = vrot.slane %v11345_v51, 1  ;;  %v9368_v11 = vadd.f32 %v11255_v55, %v9040_v20  ;;  %v2305_v50 = vpop.f32.mrb[13].mxu1  ;;  %v11362_v16 = vadd.f32 %v8197_v29, %v8196_v48  ;;  %v8199_v49 = vpop.f32.mrb[110].mxu0  ;;  %9143 = vmatpush3.bf16.msra.mxu0 %v9883_v37  ;;  %v9925_v29 = vld [vmem:[#allocation5 + $0x130] sm:$0xff]  }
 0x299   : > { %v2452_v22 = vrot.slane %v2448_v7, 7  ;;  %v2458_v23 = vrot.slane %v2448_v7, 1  ;;  %v9371_v31 = vadd.f32 %v11250_v8, %v2305_v50  ;;  %v9041_v57 = vpop.f32.mrb[14].mxu1  ;;  %v8200_v24 = vpop.f32.mrb[111].mxu0  ;;  %v11365_v42 = vpack.c.bf16 %v2448_v7, %v2447_v28  ;;  %9144 = vmatprep.subr.bf16.mxu0 %v9884_v34  ;;  %8654 = vmatprep.subr.bf16.mxu1 %v9925_v29 }
 0x29a   : > { %v2357_v45 = vadd.f32 %v9368_v11, %v11262_v2  ;;  %v9374_v55 = vadd.f32 %v11257_v46, %v9041_v57  ;;  %v2308_v20 = vpop.f32.mrb[15].mxu1  ;;  %v11369_v48 = vadd.f32 %v8200_v24, %v8199_v49  ;;  %v11373_v37 = vpack.c.bf16 %v11345_v51, %v11333_v1  ;;  %v9886_v51 = vld [vmem:[#allocation5 + $0x168] sm:$0xff]  }
 0x29b   : > { %v2355_v26 = vadd.f32 %v9371_v31, %v11262_v2  ;;  %v9377_v8 = vadd.f32 %v11253_v15, %v2308_v20  ;;  %v2453_v28 = vsel %vm543_vm0, %v2451_v5, %v2452_v22  ;;  %v2475_v7 = vsel %vm543_vm0, %v2473_v25, %v2474_v38 }
 0x29c   : > { %v2513_v50 = vmax.f32 %v2357_v45, 0.0  ;;  %v2358_v11 = vadd.f32 %v9374_v55, %v11262_v2  ;;  %v11380_v57 = vpack.c.bf16 %v2453_v28, %v2451_v5  ;;  %v11382_v24 = vpack.c.bf16 %v2475_v7, %v2473_v25  ;;  %9145 = vmatpush3.bf16.msra.mxu0 %v9884_v34 }
 0x29d   : > { %v2491_v46 = vmax.f32 %v2355_v26, 0.0  ;;  %v2356_v1 = vadd.f32 %v9377_v8, %v11262_v2  ;;  %9146 = vmatprep.subr.bf16.mxu0 %v9885_v27  ;;  %v2459_v15 = vsel %vm550_vm2, %v2457_v32, %v2458_v23  ;;  %v2481_v49 = vsel %vm550_vm2, %v2479_v13, %v2480_v35  ;;  %v9926_v2 = vld [vmem:[#allocation5 + $0xf0] sm:$0xff]  }
 0x29e   : > { %v2517_v38 = vrot.slane %v2513_v50, 7  ;;  %v2514_v22 = vmax.f32 %v2358_v11, 0.0  ;;  %7579 = vmatmul.mubr.msk.bf16.gmra.mrb[168].mxu0 %vm10287_vm4, %v11336_v18  ;;  %7635 = vmatmul.mubr.msk.bf16.gmra.mrb[108].mxu1 %vm10287_vm4, %v11336_v18  ;;  %v8202_v45 = vpop.f32.mrb[112].mxu0  ;;  %v11393_v34 = vpack.c.bf16 %v2458_v23, %v2459_v15  ;;  %v2523_v25 = vrot.slane %v2513_v50, 1  ;;  %v9887_v15 = vld [vmem:[#allocation5 + $0x170] sm:$0xff]  }
 0x29f   : > { %v2495_v5 = vrot.slane %v2491_v46, 7  ;;  %v2492_v32 = vmax.f32 %v2356_v1, 0.0  ;;  %4283 = vmatprep.mubr.bf16.mxu0 %v11327_v21  ;;  %4629 = vmatprep.mubr.bf16.mxu1 %v11327_v21  ;;  %v8203_v13 = vpop.f32.mrb[113].mxu0  ;;  %v11397_v31 = vpack.c.bf16 %v2480_v35, %v2481_v49  ;;  %v2501_v23 = vrot.slane %v2491_v46, 1 }
 0x2a0   : > { %v2518_v55 = vrot.slane %v2514_v22, 7  ;;  %v2524_v20 = vrot.slane %v2514_v22, 1  ;;  %v11399_v26 = vadd.f32 %v8203_v13, %v8202_v45  ;;  %v8205_v8 = vpop.f32.mrb[114].mxu0  ;;  %v11401_v28 = vpack.c.bf16 %v2514_v22, %v2513_v50  ;;  %9147 = vmatpush3.bf16.msra.mxu0 %v9885_v27  ;;  %8655 = vmatpush3.bf16.msra.mxu1 %v9926_v2 }
 0x2a1   : > { %v2496_v7 = vrot.slane %v2492_v32, 7  ;;  %v2502_v29 = vrot.slane %v2492_v32, 1  ;;  %v8206_v11 = vpop.f32.mrb[115].mxu0  ;;  %v11403_v1 = vpack.c.bf16 %v2492_v32, %v2491_v46  ;;  %9148 = vmatprep.subr.bf16.mxu0 %v9886_v51  ;;  %v9888_v32 = vld [vmem:[#allocation5 + $0x178] sm:$0xff]  }
 0x2a2   : > { %v11405_v33 = vadd.f32 %v8206_v11, %v8205_v8  ;;  %v2519_v35 = vsel %vm543_vm0, %v2517_v38, %v2518_v55  ;;  %v2525_v49 = vsel %vm550_vm2, %v2523_v25, %v2524_v20  ;;  %v9889_v55 = vld [vmem:[#allocation5 + $0x80] sm:$0xff]   ;;  %v9927_v8 = vld [vmem:[#allocation5 + $0x138] sm:$0xff]  }
 0x2a3   : > { %v2497_v45 = vsel %vm543_vm0, %v2495_v5, %v2496_v7  ;;  %v11410_v50 = vpack.c.bf16 %v2519_v35, %v2517_v38  ;;  %v2503_v27 = vsel %vm550_vm2, %v2501_v23, %v2502_v29  ;;  %v11413_v22 = vpack.c.bf16 %v2524_v20, %v2525_v49  ;;  %v9928_v23 = vld [vmem:[#allocation5 + $0xf8] sm:$0xff]   ;;  %8656 = vmatprep.subr.bf16.mxu1 %v9927_v8  ;;  %v11441_v49 = vld [vmem:[#allocation5 + $0x140] sm:$0xff]  }
 0x2a4   : > { %v11415_v2 = vpack.c.bf16 %v2497_v45, %v2495_v5  ;;  %9149 = vmatpush3.bf16.msra.mxu0 %v9886_v51  ;;  %v11417_v46 = vpack.c.bf16 %v2502_v29, %v2503_v27  ;;  %8657 = vmatpush3.bf16.msra.mxu1 %v9928_v23 }
 0x2a5   : > { %9150 = vmatprep.subr.bf16.mxu0 %v9887_v15  ;;  %9234 = vmatprep.subr.bf16.mxu1 %v11441_v49 }
 0x2a6   : > { %7583 = vmatmul.mubr.msk.bf16.gmra.mrb[172].mxu0 %vm10287_vm4, %v11338_v62  ;;  %7639 = vmatmul.mubr.msk.bf16.gmra.mrb[112].mxu1 %vm10287_vm4, %v11338_v62  ;;  %v8208_v38 = vpop.f32.mrb[116].mxu0 }
 0x2a7   : > { %4291 = vmatprep.mubr.bf16.mxu0 %v11365_v42  ;;  %4637 = vmatprep.mubr.bf16.mxu1 %v11365_v42  ;;  %v8209_v25 = vpop.f32.mrb[117].mxu0 }
 0x2a8   : > { %v11427_v5 = vadd.f32 %v8209_v25, %v8208_v38  ;;  %v8211_v51 = vpop.f32.mrb[118].mxu0  ;;  %9151 = vmatpush3.bf16.msra.mxu0 %v9887_v15 }
 0x2a9   : > { %v8212_v13 = vpop.f32.mrb[119].mxu0  ;;  %9152 = vmatprep.subr.bf16.mxu0 %v9888_v32 }
 0x2aa   : > { %v11429_v20 = vadd.f32 %v8212_v13, %v8211_v51 }
 0x2ac   : > { %9153 = vmatpush3.bf16.msra.mxu0 %v9888_v32 }
 0x2ad   : > { %9170 = vmatprep.subr.bf16.mxu0 %v9889_v55 }
 0x2ae   : > { %7587 = vmatmul.mubr.msk.bf16.gmra.mrb[176].mxu0 %vm10287_vm4, %v11380_v57  ;;  %7643 = vmatmul.mubr.msk.bf16.gmra.mrb[116].mxu1 %vm10287_vm4, %v11380_v57  ;;  %v8214_v7 = vpop.f32.mrb[120].mxu0 }
 0x2af   : > { %4299 = vmatprep.mubr.bf16.mxu0 %v11373_v37  ;;  %4645 = vmatprep.mubr.bf16.mxu1 %v11373_v37  ;;  %v8215_v29 = vpop.f32.mrb[121].mxu0 }
 0x2b0   : > { %v11439_v11 = vadd.f32 %v8215_v29, %v8214_v7  ;;  %v8217_v15 = vpop.f32.mrb[122].mxu0 }
 0x2b1   : > { %v8218_v35 = vpop.f32.mrb[123].mxu0 }
 0x2b2   : > { %v11443_v45 = vadd.f32 %v8218_v35, %v8217_v15 }
 0x2b6   : > { %v8220_v27 = vpop.f32.mrb[124].mxu0  ;;  %7591 = vmatmul.mubr.msk.bf16.gmra.mrb[180].mxu0 %vm10287_vm4, %v11382_v24  ;;  %7647 = vmatmul.mubr.msk.bf16.gmra.mrb[120].mxu1 %vm10287_vm4, %v11382_v24 }
 0x2b7   : > { %v8221_v32 = vpop.f32.mrb[125].mxu0  ;;  %4307 = vmatprep.mubr.bf16.mxu0 %v11403_v1  ;;  %4653 = vmatprep.mubr.bf16.mxu1 %v11403_v1 }
 0x2b8   : > { %v11454_v38 = vadd.f32 %v8221_v32, %v8220_v27  ;;  %v8223_v25 = vpop.f32.mrb[126].mxu0 }
 0x2b9   : > { %v8224_v51 = vpop.f32.mrb[127].mxu0 }
 0x2ba   : > { %v11456_v13 = vadd.f32 %v8224_v51, %v8223_v25 }
 0x2be   : > { %v8258_v8 = vpop.f32.mrb[128].mxu0  ;;  %7595 = vmatmul.mubr.msk.bf16.gmra.mrb[184].mxu0 %vm10287_vm4, %v11415_v2  ;;  %7651 = vmatmul.mubr.msk.bf16.gmra.mrb[124].mxu1 %vm10287_vm4, %v11415_v2 }
 0x2bf   : > { %v8259_v23 = vpop.f32.mrb[129].mxu0  ;;  %4315 = vmatprep.mubr.bf16.mxu0 %v11401_v28 }
 0x2c0   : > { %v8260_v7 = vadd.f32 %v8259_v23, %v8258_v8  ;;  %v8261_v29 = vpop.f32.mrb[130].mxu0 }
 0x2c1   : > { %v8262_v15 = vpop.f32.mrb[131].mxu0 }
 0x2c2   : > { %v11466_v35 = vadd.f32 %v8260_v7, %v11265_v53  ;;  %v8263_v27 = vadd.f32 %v8262_v15, %v8261_v29  ;;  %v9890_v29 = vld [vmem:[#allocation5 + $0x88] sm:$0xff]  }
 0x2c4   : > { %v11469_v32 = vadd.f32 %v8263_v27, %v11270_v60 }
 0x2c6   : > { %v8264_v25 = vpop.f32.mrb[132].mxu0  ;;  %7599 = vmatmul.mubr.msk.bf16.gmra.mrb[188].mxu0 %vm10287_vm4, %v11410_v50 }
 0x2c7   : > { %v8265_v51 = vpop.f32.mrb[133].mxu0  ;;  %9154 = vmatprep.mubr.msk.bf16.mxu0 %vm10294_vm5, %v11310_v4 }
 0x2c8   : > { %v8266_v8 = vadd.f32 %v8265_v51, %v8264_v25  ;;  %v8267_v23 = vpop.f32.mrb[134].mxu0 }
 0x2c9   : > { %v8268_v43 = vpop.f32.mrb[135].mxu0 }
 0x2ca   : > { %v11478_v53 = vadd.f32 %v8266_v8, %v11283_v56  ;;  %v8269_v7 = vadd.f32 %v8268_v43, %v8267_v23  ;;  %v9891_v56 = vld [vmem:[#allocation5 + $0x90] sm:$0xff]  }
 0x2cc   : > { %v11481_v60 = vadd.f32 %v8269_v7, %v11293_v63  ;;  %v9892_v7 = vld [vmem:[#allocation5 + $0x98] sm:$0xff]  }
 0x2ce   : > { %v8270_v15 = vpop.f32.mrb[136].mxu0  ;;  %9155 = vmatmul.mubr.msk.bf16.vlgmr.msra.gmra.mrb[192].mxu0 %vm10294_vm5, %v11285_v17 }
 0x2cf   : > { %v8271_v27 = vpop.f32.mrb[137].mxu0  ;;  %9158 = vmatprep.mubr.msk.bf16.mxu0 %vm10294_vm5, %v11353_v41  ;;  %9171 = vmatpush3.bf16.msra.mxu0 %v9889_v55 }
 0x2d0   : > { %v8272_v25 = vadd.f32 %v8271_v27, %v8270_v15  ;;  %v8273_v51 = vpop.f32.mrb[138].mxu0  ;;  %9172 = vmatprep.subr.bf16.mxu0 %v9890_v29 }
 0x2d1   : > { %v8274_v43 = vpop.f32.mrb[139].mxu0 }
 0x2d2   : > { %v11490_v63 = vadd.f32 %v8272_v25, %v11315_v3  ;;  %v8275_v8 = vadd.f32 %v8274_v43, %v8273_v51  ;;  %v9894_v43 = vld [vmem:[#allocation5 + $0xa8] sm:$0xff]  }
 0x2d3   : > { %9173 = vmatpush3.bf16.msra.mxu0 %v9890_v29  ;;  %v9893_v29 = vld [vmem:[#allocation5 + $0xa0] sm:$0xff]  }
 0x2d4   : > { %v11493_v23 = vadd.f32 %v8275_v8, %v11323_v59  ;;  %9174 = vmatprep.subr.bf16.mxu0 %v9891_v56 }
 0x2d6   : > { %v8276_v36 = vpop.f32.mrb[140].mxu0  ;;  %9159 = vmatmul.mubr.msk.bf16.gmra.mrb[196].mxu0 %vm10294_vm5, %v11357_v30 }
 0x2d7   : > { %v8277_v55 = vpop.f32.mrb[141].mxu0  ;;  %9162 = vmatprep.mubr.msk.bf16.mxu0 %vm10294_vm5, %v11393_v34  ;;  %9175 = vmatpush3.bf16.msra.mxu0 %v9891_v56 }
 0x2d8   : > { %v8278_v3 = vadd.f32 %v8277_v55, %v8276_v36  ;;  %v8279_v15 = vpop.f32.mrb[142].mxu0  ;;  %9176 = vmatprep.subr.bf16.mxu0 %v9892_v7 }
 0x2d9   : > { %v8280_v27 = vpop.f32.mrb[143].mxu0 }
 0x2da   : > { %v11502_v59 = vadd.f32 %v8278_v3, %v11362_v16  ;;  %v8281_v25 = vadd.f32 %v8280_v27, %v8279_v15 }
 0x2db   : > { %9177 = vmatpush3.bf16.msra.mxu0 %v9892_v7 }
 0x2dc   : > { %v11505_v51 = vadd.f32 %v8281_v25, %v11369_v48  ;;  %9178 = vmatprep.subr.bf16.mxu0 %v9893_v29  ;;  %v9895_v48 = vld [vmem:[#allocation5 + $0xb0] sm:$0xff]  }
 0x2de   : > { %v8282_v8 = vpop.f32.mrb[144].mxu0  ;;  %9163 = vmatmul.mubr.msk.bf16.gmra.mrb[200].mxu0 %vm10294_vm5, %v11397_v31 }
 0x2df   : > { %v8283_v36 = vpop.f32.mrb[145].mxu0  ;;  %v8338_v56 = vpop.f32.mrb[64].mxu1  ;;  %9166 = vmatprep.mubr.msk.bf16.mxu0 %vm10294_vm5, %v11417_v46  ;;  %9179 = vmatpush3.bf16.msra.mxu0 %v9893_v29 }
 0x2e0   : > { %v8284_v16 = vadd.f32 %v8283_v36, %v8282_v8  ;;  %v8285_v55 = vpop.f32.mrb[146].mxu0  ;;  %v8339_v7 = vpop.f32.mrb[65].mxu1  ;;  %9180 = vmatprep.subr.bf16.mxu0 %v9894_v43  ;;  %v9896_v8 = vld [vmem:[#allocation5 + $0xb8] sm:$0xff]  }
 0x2e1   : > { %v8340_v3 = vadd.f32 %v8339_v7, %v8338_v56  ;;  %v8286_v15 = vpop.f32.mrb[147].mxu0  ;;  %v8341_v27 = vpop.f32.mrb[66].mxu1 }
 0x2e2   : > { %v11514_v25 = vadd.f32 %v8284_v16, %v11399_v26  ;;  %v8287_v52 = vadd.f32 %v8286_v15, %v8285_v55  ;;  %v8342_v47 = vpop.f32.mrb[67].mxu1 }
 0x2e3   : > { %v8343_v0 = vadd.f32 %v8342_v47, %v8341_v27  ;;  %9181 = vmatpush3.bf16.msra.mxu0 %v9894_v43  ;;  %v11517_v54 = vadd.f32 %v11466_v35, %v8340_v3  ;;  %v9900_v27 = vld [vmem:[#allocation5 + $0x180] sm:$0xff]  }
 0x2e4   : > { %v11520_v29 = vadd.f32 %v8287_v52, %v11405_v33  ;;  %9182 = vmatprep.subr.bf16.mxu0 %v9895_v48  ;;  %v9898_v52 = vld [vmem:[#allocation5 + $0x1c0] sm:$0xff]  }
 0x2e5   : > { %v11523_v36 = vadd.f32 %v11469_v32, %v8343_v0 }
 0x2e6   : > { %v8288_v56 = vpop.f32.mrb[148].mxu0  ;;  %9167 = vmatmul.mubr.msk.bf16.gmra.mrb[204].mxu0 %vm10294_vm5, %v11413_v22 }
 0x2e7   : > { %v8289_v26 = vpop.f32.mrb[149].mxu0  ;;  %v8344_v16 = vpop.f32.mrb[68].mxu1  ;;  %9183 = vmatpush3.bf16.msra.mxu0 %v9895_v48  ;;  %9186 = vmatprep.mubr.bf16.mxu0 %v12337_v58 }
 0x2e8   : > { %v8290_v47 = vadd.f32 %v8289_v26, %v8288_v56  ;;  %v8291_v35 = vpop.f32.mrb[150].mxu0  ;;  %v8345_v43 = vpop.f32.mrb[69].mxu1  ;;  %9184 = vmatprep.subr.bf16.mxu0 %v9896_v8  ;;  %v9901_v26 = vld [vmem:[#allocation5 + $0x1c8] sm:$0xff]  }
 0x2e9   : > { %v8346_v33 = vadd.f32 %v8345_v43, %v8344_v16  ;;  %v8292_v55 = vpop.f32.mrb[151].mxu0  ;;  %v8347_v7 = vpop.f32.mrb[70].mxu1 }
 0x2ea   : > { %v11530_v0 = vadd.f32 %v8290_v47, %v11427_v5  ;;  %v8293_v32 = vadd.f32 %v8292_v55, %v8291_v35  ;;  %v8348_v3 = vpop.f32.mrb[71].mxu1 }
 0x2eb   : > { %v8349_v15 = vadd.f32 %v8348_v3, %v8347_v7  ;;  %9185 = vmatpush3.bf16.msra.mxu0 %v9896_v8  ;;  %v11533_v48 = vadd.f32 %v11478_v53, %v8346_v33  ;;  %v9902_v53 = vld [vmem:[#allocation5 + $0x188] sm:$0xff]  }
 0x2ec   : > { %v11536_v56 = vadd.f32 %v8293_v32, %v11429_v20  ;;  %8562 = vmatprep.subr.bf16.mxu0 %v9898_v52  ;;  %v9904_v52 = vld [vmem:[#allocation5 + $0x1d0] sm:$0xff]  }
 0x2ed   : > { %v11539_v16 = vadd.f32 %v11481_v60, %v8349_v15  ;;  %v9906_v15 = vld [vmem:[#allocation5 + $0x190] sm:$0xff]  }
 0x2ee   : > { %v8294_v43 = vpop.f32.mrb[152].mxu0  ;;  %9187 = vmatmul.mubr.msk.bf16.vlgmr.msra.gmra.mrb[192].mxu0 %vm10294_vm5, %v11310_v4 }
 0x2ef   : > { %v8295_v5 = vpop.f32.mrb[153].mxu0  ;;  %v8350_v47 = vpop.f32.mrb[72].mxu1  ;;  %9190 = vmatprep.mubr.msk.bf16.mxu0 %vm10294_vm5, %v11285_v17  ;;  %8563 = vmatpush3.bf16.msra.mxu0 %v9900_v27 }
 0x2f0   : > { %v8296_v20 = vadd.f32 %v8295_v5, %v8294_v43  ;;  %v8297_v8 = vpop.f32.mrb[154].mxu0  ;;  %v8351_v35 = vpop.f32.mrb[73].mxu1  ;;  %8564 = vmatprep.subr.bf16.mxu0 %v9901_v26  ;;  %v9907_v26 = vld [vmem:[#allocation5 + $0x1d8] sm:$0xff]  }
 0x2f1   : > { %v8352_v60 = vadd.f32 %v8351_v35, %v8350_v47  ;;  %v8298_v33 = vpop.f32.mrb[155].mxu0  ;;  %v8353_v55 = vpop.f32.mrb[74].mxu1 }
 0x2f2   : > { %v11548_v7 = vadd.f32 %v8296_v20, %v11439_v11  ;;  %v8299_v4 = vadd.f32 %v8298_v33, %v8297_v8  ;;  %v8354_v32 = vpop.f32.mrb[75].mxu1  ;;  %v9910_v8 = vld [vmem:[#allocation5 + $0x1e0] sm:$0xff]  }
 0x2f3   : > { %v8355_v3 = vadd.f32 %v8354_v32, %v8353_v55  ;;  %8565 = vmatpush3.bf16.msra.mxu0 %v9902_v53  ;;  %v11551_v19 = vadd.f32 %v11490_v63, %v8352_v60  ;;  %v9908_v63 = vld [vmem:[#allocation5 + $0x198] sm:$0xff]   ;;  %v9912_v32 = vld [vmem:[#allocation5 + $0x1a0] sm:$0xff]  }
 0x2f4   : > { %v11554_v27 = vadd.f32 %v8299_v4, %v11443_v45  ;;  %8566 = vmatprep.subr.bf16.mxu0 %v9904_v52 }
 0x2f5   : > { %v11557_v43 = vadd.f32 %v11493_v23, %v8355_v3 }
 0x2f6   : > { %v8300_v5 = vpop.f32.mrb[156].mxu0  ;;  %9191 = vmatmul.mubr.msk.bf16.gmra.mrb[196].mxu0 %vm10294_vm5, %v11353_v41 }
 0x2f7   : > { %v8301_v11 = vpop.f32.mrb[157].mxu0  ;;  %v8356_v47 = vpop.f32.mrb[76].mxu1  ;;  %9194 = vmatprep.mubr.msk.bf16.mxu0 %vm10294_vm5, %v11357_v30  ;;  %8567 = vmatpush3.bf16.msra.mxu0 %v9906_v15 }
 0x2f8   : > { %v8302_v45 = vadd.f32 %v8301_v11, %v8300_v5  ;;  %v8303_v53 = vpop.f32.mrb[158].mxu0  ;;  %v8357_v20 = vpop.f32.mrb[77].mxu1  ;;  %8568 = vmatprep.subr.bf16.mxu0 %v9907_v26  ;;  %v9913_v26 = vld [vmem:[#allocation5 + $0x1e8] sm:$0xff]  }
 0x2f9   : > { %v8358_v23 = vadd.f32 %v8357_v20, %v8356_v47  ;;  %v8304_v35 = vpop.f32.mrb[159].mxu0  ;;  %v8359_v52 = vpop.f32.mrb[78].mxu1 }
 0x2fa   : > { %v11566_v60 = vadd.f32 %v8302_v45, %v11454_v38  ;;  %v8305_v33 = vadd.f32 %v8304_v35, %v8303_v53  ;;  %v8360_v55 = vpop.f32.mrb[79].mxu1 }
 0x2fb   : > { %v8361_v4 = vadd.f32 %v8360_v55, %v8359_v52  ;;  %8569 = vmatpush3.bf16.msra.mxu0 %v9908_v63  ;;  %v11569_v3 = vadd.f32 %v11502_v59, %v8358_v23  ;;  %v9914_v59 = vld [vmem:[#allocation5 + $0x1a8] sm:$0xff]   ;;  %v9920_v52 = vld [vmem:[#allocation5 + $0x1b8] sm:$0xff]   ;;  %v9930_v55 = vld [vmem:[#allocation5 + $0x200] sm:$0xff]  }
 0x2fc   : > { %v11572_v15 = vadd.f32 %v8305_v33, %v11456_v13  ;;  %8570 = vmatprep.subr.bf16.mxu0 %v9910_v8  ;;  %v9916_v13 = vld [vmem:[#allocation5 + $0x1f0] sm:$0xff]   ;;  %v9919_v8 = vld [vmem:[#allocation5 + $0x1f8] sm:$0xff]  }
 0x2fd   : > { %v11575_v5 = vadd.f32 %v11505_v51, %v8361_v4  ;;  %v9918_v51 = vld [vmem:[#allocation5 + $0x1b0] sm:$0xff]  }
 0x2fe   : > { %9195 = vmatmul.mubr.msk.bf16.gmra.mrb[200].mxu0 %vm10294_vm5, %v11393_v34 }
 0x2ff   : > { %v8362_v38 = vpop.f32.mrb[80].mxu1  ;;  %9198 = vmatprep.mubr.msk.bf16.mxu0 %vm10294_vm5, %v11397_v31  ;;  %8571 = vmatpush3.bf16.msra.mxu0 %v9912_v32 }
 0x300   : > { %v8363_v11 = vpop.f32.mrb[81].mxu1  ;;  %8572 = vmatprep.subr.bf16.mxu0 %v9913_v26 }
 0x301   : > { %v8364_v47 = vadd.f32 %v8363_v11, %v8362_v38  ;;  %v8365_v63 = vpop.f32.mrb[82].mxu1  ;;  %v9931_v38 = vld [vmem:[#allocation5 + $0x208] sm:$0xff]  }
 0x302   : > { %v8366_v45 = vpop.f32.mrb[83].mxu1 }
 0x303   : > { %v8367_v53 = vadd.f32 %v8366_v45, %v8365_v63  ;;  %8573 = vmatpush3.bf16.msra.mxu0 %v9914_v59  ;;  %v11584_v20 = vadd.f32 %v11514_v25, %v8364_v47 }
 0x304   : > { %8574 = vmatprep.subr.bf16.mxu0 %v9916_v13  ;;  %v9933_v13 = vld [vmem:[#allocation5 + $0x210] sm:$0xff]  }
 0x305   : > { %v11587_v23 = vadd.f32 %v11520_v29, %v8367_v53 }
 0x306   : > { %9199 = vmatmul.mubr.msk.bf16.gmra.mrb[204].mxu0 %vm10294_vm5, %v11417_v46 }
 0x307   : > { %v8368_v35 = vpop.f32.mrb[84].mxu1  ;;  %8575 = vmatpush3.bf16.msra.mxu0 %v9918_v51  ;;  %5008 = vmatprep.mubr.bf16.mxu0 %v11277_v10 }
 0x308   : > { %v8369_v33 = vpop.f32.mrb[85].mxu1  ;;  %8576 = vmatprep.subr.bf16.mxu0 %v9919_v8  ;;  %v9936_v8 = vld [vmem:[#allocation5 + $0x220] sm:$0xff]  }
 0x309   : > { %v8370_v4 = vadd.f32 %v8369_v33, %v8368_v35  ;;  %v8371_v25 = vpop.f32.mrb[86].mxu1 }
 0x30a   : > { %v8372_v32 = vpop.f32.mrb[87].mxu1 }
 0x30b   : > { %v8373_v26 = vadd.f32 %v8372_v32, %v8371_v25  ;;  %8577 = vmatpush3.bf16.msra.mxu0 %v9920_v52  ;;  %v11594_v29 = vadd.f32 %v11530_v0, %v8370_v4  ;;  %v9939_v32 = vld [vmem:[#allocation5 + $0x230] sm:$0xff]  }
 0x30c   : > { %9202 = vmatprep.subr.bf16.mxu0 %v9930_v55 }
 0x30d   : > { %v11597_v59 = vadd.f32 %v11536_v56, %v8373_v26  ;;  %v9934_v56 = vld [vmem:[#allocation5 + $0x218] sm:$0xff]  }
 0x30e   : > { %7676 = vmatmul.mubr.msk.bf16.vlgmr.msra.gmra.mrb[208].mxu0 %vm10287_vm4, %v11306_v61 }
 0x30f   : > { %v8374_v10 = vpop.f32.mrb[88].mxu1  ;;  %5016 = vmatprep.mubr.bf16.mxu0 %v11319_v40  ;;  %9203 = vmatpush3.bf16.msra.mxu0 %v9930_v55 }
 0x310   : > { %v8375_v11 = vpop.f32.mrb[89].mxu1  ;;  %9204 = vmatprep.subr.bf16.mxu0 %v9931_v38 }
 0x311   : > { %v8376_v47 = vadd.f32 %v8375_v11, %v8374_v10  ;;  %v8377_v63 = vpop.f32.mrb[90].mxu1 }
 0x312   : > { %v8378_v0 = vpop.f32.mrb[91].mxu1 }
 0x313   : > { %v8379_v45 = vadd.f32 %v8378_v0, %v8377_v63  ;;  %9205 = vmatpush3.bf16.msra.mxu0 %v9931_v38  ;;  %v11604_v53 = vadd.f32 %v11548_v7, %v8376_v47 }
 0x314   : > { %9206 = vmatprep.subr.bf16.mxu0 %v9933_v13 }
 0x315   : > { %v11607_v51 = vadd.f32 %v11554_v27, %v8379_v45  ;;  %v9937_v27 = vld [vmem:[#allocation5 + $0x228] sm:$0xff]  }
 0x316   : > { %7680 = vmatmul.mubr.msk.bf16.gmra.mrb[212].mxu0 %vm10287_vm4, %v11336_v18  ;;  %v11625_v18 = vld [vmem:[%s12284_s4] ss:$0 sm:$0xff] }
 0x317   : > { %v8380_v61 = vpop.f32.mrb[92].mxu1  ;;  %5024 = vmatprep.mubr.bf16.mxu0 %v11327_v21  ;;  %9207 = vmatpush3.bf16.msra.mxu0 %v9933_v13 }
 0x318   : > { %v8381_v40 = vpop.f32.mrb[93].mxu1  ;;  %9208 = vmatprep.subr.bf16.mxu0 %v9934_v56 }
 0x319   : > { %v8382_v35 = vadd.f32 %v8381_v40, %v8380_v61  ;;  %v8383_v52 = vpop.f32.mrb[94].mxu1 }
 0x31a   : > { %v8384_v7 = vpop.f32.mrb[95].mxu1 }
 0x31b   : > { %v8385_v33 = vadd.f32 %v8384_v7, %v8383_v52  ;;  %v11614_v55 = vadd.f32 %v11566_v60, %v8382_v35  ;;  %9209 = vmatpush3.bf16.msra.mxu0 %v9934_v56 }
 0x31c   : > { %9210 = vmatprep.subr.bf16.mxu0 %v9936_v8 }
 0x31d   : > { %v11617_v4 = vadd.f32 %v11572_v15, %v8385_v33 }
 0x31e   : > { %7684 = vmatmul.mubr.msk.bf16.gmra.mrb[216].mxu0 %vm10287_vm4, %v11338_v62 }
 0x31f   : > { %v9124_v21 = vpop.f32.mrb[48].mxu1  ;;  %5032 = vmatprep.mubr.bf16.mxu0 %v11365_v42  ;;  %9211 = vmatpush3.bf16.msra.mxu0 %v9936_v8 }
 0x320   : > { %v9380_v60 = vadd.f32 %v11533_v48, %v9124_v21  ;;  %v3681_v25 = vpop.f32.mrb[49].mxu1  ;;  %9212 = vmatprep.subr.bf16.mxu0 %v9937_v27  ;;  %v9940_v48 = vld [vmem:[#allocation5 + $0x238] sm:$0xff]  }
 0x321   : > { %v9383_v15 = vadd.f32 %v11517_v54, %v3681_v25  ;;  %v9125_v26 = vpop.f32.mrb[50].mxu1 }
 0x322   : > { %v3769_v38 = vadd.f32 %v9380_v60, %v11625_v18  ;;  %v9386_v62 = vadd.f32 %v11539_v16, %v9125_v26  ;;  %v3684_v10 = vpop.f32.mrb[51].mxu1 }
 0x323   : > { %v3767_v11 = vadd.f32 %v9383_v15, %v11625_v18  ;;  %v9389_v13 = vadd.f32 %v11523_v36, %v3684_v10  ;;  %9213 = vmatpush3.bf16.msra.mxu0 %v9937_v27  ;;  %v9942_v15 = vld [vmem:[#allocation5 + $0x40] sm:$0xff]  }
 0x324   : > { %v3805_v42 = vmax.f32 %v3769_v38, 0.0  ;;  %v3770_v47 = vadd.f32 %v9386_v62, %v11625_v18  ;;  %9214 = vmatprep.subr.bf16.mxu0 %v9939_v32 }
 0x325   : > { %v3783_v63 = vmax.f32 %v3767_v11, 0.0  ;;  %v3768_v0 = vadd.f32 %v9389_v13, %v11625_v18 }
 0x326   : > { %v3809_v54 = vrot.slane %v3805_v42, 7  ;;  %v3806_v45 = vmax.f32 %v3770_v47, 0.0  ;;  %7688 = vmatmul.mubr.msk.bf16.gmra.mrb[220].mxu0 %vm10287_vm4, %v11380_v57  ;;  %v3815_v16 = vrot.slane %v3805_v42, 1 }
 0x327   : > { %v3787_v56 = vrot.slane %v3783_v63, 7  ;;  %v3793_v61 = vrot.slane %v3783_v63, 1  ;;  %v3784_v40 = vmax.f32 %v3768_v0, 0.0  ;;  %v9128_v36 = vpop.f32.mrb[52].mxu1  ;;  %5040 = vmatprep.mubr.bf16.mxu0 %v11373_v37  ;;  %9215 = vmatpush3.bf16.msra.mxu0 %v9939_v32 }
 0x328   : > { %v3810_v8 = vrot.slane %v3806_v45, 7  ;;  %v3816_v35 = vrot.slane %v3806_v45, 1  ;;  %v9392_v52 = vadd.f32 %v11569_v3, %v9128_v36  ;;  %v3697_v7 = vpop.f32.mrb[53].mxu1  ;;  %v11641_v33 = vpack.c.bf16 %v3806_v45, %v3805_v42  ;;  %9216 = vmatprep.subr.bf16.mxu0 %v9940_v48 }
 0x329   : > { %v3788_v27 = vrot.slane %v3784_v40, 7  ;;  %v3794_v21 = vrot.slane %v3784_v40, 1  ;;  %v9395_v57 = vadd.f32 %v11551_v19, %v3697_v7  ;;  %v9129_v60 = vpop.f32.mrb[54].mxu1  ;;  %v11644_v25 = vpack.c.bf16 %v3784_v40, %v3783_v63  ;;  %v9932_v63 = vld [vmem:[#allocation5 + $0x148] sm:$0xff]  }
 0x32a   : > { %v3817_v26 = vsel %vm550_vm2, %v3815_v16, %v3816_v35  ;;  %v3773_v37 = vadd.f32 %v9392_v52, %v11625_v18  ;;  %v9398_v32 = vadd.f32 %v11575_v5, %v9129_v60  ;;  %v3700_v38 = vpop.f32.mrb[55].mxu1  ;;  %v3811_v3 = vsel %vm543_vm0, %v3809_v54, %v3810_v8 }
 0x32b   : > { %v11650_v62 = vpack.c.bf16 %v3816_v35, %v3817_v26  ;;  %v3789_v10 = vsel %vm543_vm0, %v3787_v56, %v3788_v27  ;;  %v3771_v11 = vadd.f32 %v9395_v57, %v11625_v18  ;;  %v9401_v19 = vadd.f32 %v11557_v43, %v3700_v38  ;;  %5587 = vmatprep.mubr.bf16.mxu1 %v11644_v25  ;;  %v9935_v27 = vld [vmem:[#allocation5 + $0x150] sm:$0xff]  }
 0x32c   : > { %v11656_v13 = vpack.c.bf16 %v3789_v10, %v3787_v56  ;;  %v3849_v42 = vmax.f32 %v3773_v37, 0.0  ;;  %v3774_v47 = vadd.f32 %v9398_v32, %v11625_v18  ;;  %v11659_v5 = vpack.c.bf16 %v3811_v3, %v3809_v54  ;;  %9217 = vmatpush3.bf16.msra.mxu0 %v9940_v48 }
 0x32d   : > { %v3827_v0 = vmax.f32 %v3771_v11, 0.0  ;;  %v3772_v45 = vadd.f32 %v9401_v19, %v11625_v18  ;;  %8722 = vmatprep.subr.bf16.mxu0 %v9942_v15  ;;  %v3795_v16 = vsel %vm550_vm2, %v3793_v61, %v3794_v21 }
 0x32e   : > { %v3853_v40 = vrot.slane %v3849_v42, 7  ;;  %v3850_v36 = vmax.f32 %v3774_v47, 0.0  ;;  %7692 = vmatmul.mubr.msk.bf16.gmra.mrb[224].mxu0 %vm10287_vm4, %v11382_v24  ;;  %7732 = vmatmul.mubr.msk.bf16.vlgmr.msra.gmra.mrb[128].mxu1 %vm10287_vm4, %v11656_v13  ;;  %v11669_v43 = vpack.c.bf16 %v3794_v21, %v3795_v16  ;;  %v3859_v54 = vrot.slane %v3849_v42, 1  ;;  %v9938_v16 = vld [vmem:[#allocation5 + $0x158] sm:$0xff]  }
 0x32f   : > { %v3831_v48 = vrot.slane %v3827_v0, 7  ;;  %v3837_v56 = vrot.slane %v3827_v0, 1  ;;  %v3828_v8 = vmax.f32 %v3772_v45, 0.0  ;;  %9235 = vmatpush3.bf16.msra.mxu1 %v11441_v49  ;;  %v9132_v35 = vpop.f32.mrb[56].mxu1  ;;  %5048 = vmatprep.mubr.bf16.mxu0 %v11403_v1 }
 0x330   : > { %v3854_v61 = vrot.slane %v3850_v36, 7  ;;  %v3860_v52 = vrot.slane %v3850_v36, 1  ;;  %v9404_v7 = vadd.f32 %v11594_v29, %v9132_v35  ;;  %5595 = vmatprep.mubr.bf16.mxu1 %v11641_v33  ;;  %v3713_v24 = vpop.f32.mrb[57].mxu1  ;;  %9236 = vmatprep.subr.bf16.mxu1 %v9932_v63  ;;  %v11675_v21 = vpack.c.bf16 %v3850_v36, %v3849_v42 }
 0x331   : > { %v3832_v57 = vrot.slane %v3828_v8, 7  ;;  %v3838_v60 = vrot.slane %v3828_v8, 1  ;;  %v9407_v15 = vadd.f32 %v11584_v20, %v3713_v24  ;;  %v9133_v26 = vpop.f32.mrb[58].mxu1  ;;  %v11678_v49 = vpack.c.bf16 %v3828_v8, %v3827_v0 }
 0x332   : > { %v3777_v1 = vadd.f32 %v9404_v7, %v11625_v18  ;;  %v9410_v37 = vadd.f32 %v11597_v59, %v9133_v26  ;;  %v3716_v32 = vpop.f32.mrb[59].mxu1  ;;  %v3855_v29 = vsel %vm543_vm0, %v3853_v40, %v3854_v61  ;;  %v3861_v38 = vsel %vm550_vm2, %v3859_v54, %v3860_v52 }
 0x333   : > { %v3775_v3 = vadd.f32 %v9407_v15, %v11625_v18  ;;  %v9413_v10 = vadd.f32 %v11587_v23, %v3716_v32  ;;  %9237 = vmatpush3.bf16.msra.mxu1 %v9932_v63  ;;  %v3833_v11 = vsel %vm543_vm0, %v3831_v48, %v3832_v57  ;;  %v11687_v20 = vpack.c.bf16 %v3855_v29, %v3853_v40 }
 0x334   : > { %v3893_v19 = vmax.f32 %v3777_v1, 0.0  ;;  %v3778_v42 = vadd.f32 %v9410_v37, %v11625_v18  ;;  %9238 = vmatprep.subr.bf16.mxu1 %v9935_v27  ;;  %v11690_v47 = vpack.c.bf16 %v3833_v11, %v3831_v48  ;;  %v3839_v59 = vsel %vm550_vm2, %v3837_v56, %v3838_v60  ;;  %v9941_v37 = vld [vmem:[#allocation5 + $0x160] sm:$0xff]  }
 0x335   : > { %v3871_v0 = vmax.f32 %v3775_v3, 0.0  ;;  %v3776_v45 = vadd.f32 %v9413_v10, %v11625_v18  ;;  %v11694_v36 = vpack.c.bf16 %v3838_v60, %v3839_v59  ;;  %v11696_v23 = vpack.c.bf16 %v3860_v52, %v3861_v38 }
 0x336   : > { %v3897_v63 = vrot.slane %v3893_v19, 7  ;;  %v3894_v54 = vmax.f32 %v3778_v42, 0.0  ;;  %7696 = vmatmul.mubr.msk.bf16.gmra.mrb[228].mxu0 %vm10287_vm4, %v11415_v2  ;;  %7736 = vmatmul.mubr.msk.bf16.gmra.mrb[132].mxu1 %vm10287_vm4, %v11659_v5  ;;  %v3903_v40 = vrot.slane %v3893_v19, 1 }
 0x337   : > { %v3875_v48 = vrot.slane %v3871_v0, 7  ;;  %v3881_v56 = vrot.slane %v3871_v0, 1  ;;  %v3872_v8 = vmax.f32 %v3776_v45, 0.0  ;;  %v9136_v35 = vpop.f32.mrb[60].mxu1  ;;  %5056 = vmatprep.mubr.bf16.mxu0 %v11401_v28  ;;  %5603 = vmatprep.mubr.bf16.mxu1 %v11678_v49 }
 0x338   : > { %v3898_v61 = vrot.slane %v3894_v54, 7  ;;  %v3904_v52 = vrot.slane %v3894_v54, 1  ;;  %v9416_v7 = vadd.f32 %v11614_v55, %v9136_v35  ;;  %v3729_v24 = vpop.f32.mrb[61].mxu1  ;;  %9239 = vmatpush3.bf16.msra.mxu1 %v9935_v27  ;;  %v11707_v2 = vpack.c.bf16 %v3894_v54, %v3893_v19  ;;  %v9946_v54 = vld [vmem:[#allocation5 + $0x168] sm:$0xff]  }
 0x339   : > { %v3876_v57 = vrot.slane %v3872_v8, 7  ;;  %v3882_v60 = vrot.slane %v3872_v8, 1  ;;  %v9419_v15 = vadd.f32 %v11604_v53, %v3729_v24  ;;  %v9137_v26 = vpop.f32.mrb[62].mxu1  ;;  %9240 = vmatprep.subr.bf16.mxu1 %v9938_v16  ;;  %v11710_v1 = vpack.c.bf16 %v3872_v8, %v3871_v0 }
 0x33a   : > { %v3781_v32 = vadd.f32 %v9416_v7, %v11625_v18  ;;  %v9422_v29 = vadd.f32 %v11617_v4, %v9137_v26  ;;  %v3732_v38 = vpop.f32.mrb[63].mxu1  ;;  %v3899_v55 = vsel %vm543_vm0, %v3897_v63, %v3898_v61  ;;  %v3905_v27 = vsel %vm550_vm2, %v3903_v40, %v3904_v52  ;;  %v9951_v26 = vld [vmem:[#allocation5 + $0x170] sm:$0xff]  }
 0x33b   : > { %v3779_v3 = vadd.f32 %v9419_v15, %v11625_v18  ;;  %v9425_v10 = vadd.f32 %v11607_v51, %v3732_v38  ;;  %v3877_v53 = vsel %vm543_vm0, %v3875_v48, %v3876_v57  ;;  %v11719_v11 = vpack.c.bf16 %v3899_v55, %v3897_v63 }
 0x33c   : > { %v3937_v19 = vmax.f32 %v3781_v32, 0.0  ;;  %v3782_v42 = vadd.f32 %v9422_v29, %v11625_v18  ;;  %9241 = vmatpush3.bf16.msra.mxu1 %v9938_v16  ;;  %v11722_v59 = vpack.c.bf16 %v3877_v53, %v3875_v48  ;;  %v3883_v4 = vsel %vm550_vm2, %v3881_v56, %v3882_v60 }
 0x33d   : > { %v3915_v0 = vmax.f32 %v3779_v3, 0.0  ;;  %v3780_v45 = vadd.f32 %v9425_v10, %v11625_v18  ;;  %9242 = vmatprep.subr.bf16.mxu1 %v9941_v37  ;;  %v11726_v40 = vpack.c.bf16 %v3882_v60, %v3883_v4  ;;  %v11728_v51 = vpack.c.bf16 %v3904_v52, %v3905_v27 }
 0x33e   : > { %v3938_v8 = vmax.f32 %v3782_v42, 0.0  ;;  %7700 = vmatmul.mubr.msk.bf16.gmra.mrb[232].mxu0 %vm10287_vm4, %v11410_v50  ;;  %7740 = vmatmul.mubr.msk.bf16.gmra.mrb[136].mxu1 %vm10287_vm4, %v11690_v47  ;;  %v3941_v16 = vrot.slane %v3937_v19, 7  ;;  %v3947_v63 = vrot.slane %v3937_v19, 1 }
 0x33f   : > { %v3919_v48 = vrot.slane %v3915_v0, 7  ;;  %v3916_v56 = vmax.f32 %v3780_v45, 0.0  ;;  %5064 = vmatprep.mubr.bf16.mxu0 %v11644_v25  ;;  %5611 = vmatprep.mubr.bf16.mxu1 %v11675_v21  ;;  %v8498_v18 = vpop.f32.mrb[96].mxu1  ;;  %v3925_v35 = vrot.slane %v3915_v0, 1  ;;  %v11768_v45 = vld [vmem:[#allocation5 + $0x80] sm:$0xff]  }
 0x340   : > { %v3942_v61 = vrot.slane %v3938_v8, 7  ;;  %v3948_v52 = vrot.slane %v3938_v8, 1  ;;  %9243 = vmatpush3.bf16.msra.mxu1 %v9941_v37  ;;  %v8499_v7 = vpop.f32.mrb[97].mxu1  ;;  %v11738_v24 = vpack.c.bf16 %v3938_v8, %v3937_v19  ;;  %v9944_v8 = vld [vmem:[#allocation5 + $0x48] sm:$0xff]  }
 0x341   : > { %v3920_v57 = vrot.slane %v3916_v56, 7  ;;  %v3926_v60 = vrot.slane %v3916_v56, 1  ;;  %9244 = vmatprep.subr.bf16.mxu1 %v9946_v54  ;;  %v11740_v15 = vpack.c.bf16 %v3916_v56, %v3915_v0  ;;  %v11742_v32 = vadd.f32 %v8499_v7, %v8498_v18  ;;  %v8501_v29 = vpop.f32.mrb[98].mxu1  ;;  %v9956_v0 = vld [vmem:[#allocation5 + $0x178] sm:$0xff]   ;;  %v9953_v56 = vld [vmem:[#allocation5 + $0x20] sm:$0xff]   ;;  %v9954_v18 = vld [vmem:[#allocation5 + $0x68] sm:$0xff]  }
 0x342   : > { %v8502_v38 = vpop.f32.mrb[99].mxu1  ;;  %v3943_v55 = vsel %vm543_vm0, %v3941_v16, %v3942_v61  ;;  %v3949_v27 = vsel %vm550_vm2, %v3947_v63, %v3948_v52  ;;  %v9948_v63 = vld [vmem:[#allocation5 + $0x10] sm:$0xff]  }
 0x343   : > { %v3921_v3 = vsel %vm543_vm0, %v3919_v48, %v3920_v57  ;;  %v11747_v37 = vadd.f32 %v8502_v38, %v8501_v29  ;;  %v11749_v10 = vpack.c.bf16 %v3943_v55, %v3941_v16  ;;  %v3927_v53 = vsel %vm550_vm2, %v3925_v35, %v3926_v60  ;;  %v9947_v16 = vld [vmem:[#allocation5 + $0x50] sm:$0xff]  }
 0x344   : > { %9245 = vmatpush3.bf16.msra.mxu1 %v9946_v54  ;;  %v11752_v19 = vpack.c.bf16 %v3921_v3, %v3919_v48  ;;  %v11754_v42 = vpack.c.bf16 %v3926_v60, %v3927_v53  ;;  %v11756_v4 = vpack.c.bf16 %v3948_v52, %v3949_v27  ;;  %v9943_v54 = vld [vmem:[#allocation5] sm:$0xff]   ;;  %v9949_v48 = vld [vmem:[#allocation5 + $0x58] sm:$0xff]   ;;  %v9957_v61 = vld [vmem:[#allocation5 + $0x70] sm:$0xff]  }
 0x345   : > { %9246 = vmatprep.subr.bf16.mxu1 %v9951_v26  ;;  %v9958_v55 = vld [vmem:[#allocation5 + $0x30] sm:$0xff]  }
 0x346   : > { %7704 = vmatmul.mubr.msk.bf16.gmra.mrb[236].mxu0 %vm10287_vm4, %v11656_v13  ;;  %7744 = vmatmul.mubr.msk.bf16.gmra.mrb[140].mxu1 %vm10287_vm4, %v11687_v20 }
 0x347   : > { %9218 = vmatprep.mubr.msk.bf16.mxu0 %vm10294_vm5, %v11285_v17  ;;  %5619 = vmatprep.mubr.bf16.mxu1 %v11710_v1  ;;  %v9945_v17 = vld [vmem:[#allocation5 + $0x8] sm:$0xff]  }
 0x348   : > { %9247 = vmatpush3.bf16.msra.mxu1 %v9951_v26 }
 0x349   : > { %9248 = vmatprep.subr.bf16.mxu1 %v9956_v0 }
 0x34c   : > { %9249 = vmatpush3.bf16.msra.mxu1 %v9956_v0  ;;  %v9959_v0 = vld [vmem:[#allocation5 + $0x78] sm:$0xff]  }
 0x34d   : > { %9266 = vmatprep.subr.bf16.mxu1 %v11768_v45 }
 0x34e   : > { %9219 = vmatmul.mubr.msk.bf16.vlgmr.msra.gmra.mrb[192].mxu0 %vm10294_vm5, %v11353_v41  ;;  %7748 = vmatmul.mubr.msk.bf16.gmra.mrb[144].mxu1 %vm10287_vm4, %v11722_v59  ;;  %v9950_v41 = vld [vmem:[#allocation5 + $0x18] sm:$0xff]  }
 0x34f   : > { %9222 = vmatprep.mubr.msk.bf16.mxu0 %vm10294_vm5, %v11357_v30  ;;  %5627 = vmatprep.mubr.bf16.mxu1 %v11707_v2  ;;  %v9952_v30 = vld [vmem:[#allocation5 + $0x60] sm:$0xff]  }
 0x350   : > { %8723 = vmatpush3.bf16.msra.mxu0 %v9943_v54 }
 0x351   : > { %8724 = vmatprep.subr.bf16.mxu0 %v9944_v8 }
 0x354   : > { %8725 = vmatpush3.bf16.msra.mxu0 %v9945_v17 }
 0x355   : > { %8726 = vmatprep.subr.bf16.mxu0 %v9947_v16 }
 0x356   : > { %9223 = vmatmul.mubr.msk.bf16.gmra.mrb[196].mxu0 %vm10294_vm5, %v11393_v34  ;;  %7752 = vmatmul.mubr.msk.bf16.gmra.mrb[148].mxu1 %vm10287_vm4, %v11719_v11  ;;  %v9955_v34 = vld [vmem:[#allocation5 + $0x28] sm:$0xff]  }
 0x357   : > { %9226 = vmatprep.mubr.msk.bf16.mxu0 %vm10294_vm5, %v11397_v31  ;;  %5635 = vmatprep.mubr.bf16.mxu1 %v11740_v15 }
 0x358   : > { %8727 = vmatpush3.bf16.msra.mxu0 %v9948_v63 }
 0x359   : > { %8728 = vmatprep.subr.bf16.mxu0 %v9949_v48 }
 0x35c   : > { %8729 = vmatpush3.bf16.msra.mxu0 %v9950_v41 }
 0x35d   : > { %8730 = vmatprep.subr.bf16.mxu0 %v9952_v30 }
 0x35e   : > { %9227 = vmatmul.mubr.msk.bf16.gmra.mrb[200].mxu0 %vm10294_vm5, %v11417_v46  ;;  %7756 = vmatmul.mubr.msk.bf16.gmra.mrb[152].mxu1 %vm10287_vm4, %v11752_v19 }
 0x35f   : > { %9230 = vmatprep.mubr.msk.bf16.mxu0 %vm10294_vm5, %v11413_v22  ;;  %5643 = vmatprep.mubr.bf16.mxu1 %v11738_v24 }
 0x360   : > { %8731 = vmatpush3.bf16.msra.mxu0 %v9953_v56 }
 0x361   : > { %v8418_v31 = vpop.f32.mrb[160].mxu0  ;;  %v8504_v35 = vpop.f32.mrb[100].mxu1  ;;  %8732 = vmatprep.subr.bf16.mxu0 %v9954_v18 }
 0x362   : > { %v8419_v52 = vpop.f32.mrb[161].mxu0  ;;  %v8505_v7 = vpop.f32.mrb[101].mxu1 }
 0x363   : > { %v8420_v57 = vadd.f32 %v8419_v52, %v8418_v31  ;;  %v8506_v46 = vadd.f32 %v8505_v7, %v8504_v35  ;;  %v8421_v60 = vpop.f32.mrb[162].mxu0  ;;  %v8507_v26 = vpop.f32.mrb[102].mxu1  ;;  %v9963_v52 = vld [vmem:[#allocation5 + $0x90] sm:$0xff]  }
 0x364   : > { %8733 = vmatpush3.bf16.msra.mxu0 %v9955_v34  ;;  %v8422_v29 = vpop.f32.mrb[163].mxu0  ;;  %v8508_v38 = vpop.f32.mrb[103].mxu1 }
 0x365   : > { %v11802_v27 = vadd.f32 %v11742_v32, %v8420_v57  ;;  %v8423_v3 = vadd.f32 %v8422_v29, %v8421_v60  ;;  %v8509_v53 = vadd.f32 %v8508_v38, %v8507_v26  ;;  %8734 = vmatprep.subr.bf16.mxu0 %v9957_v61  ;;  %v9960_v32 = vld [vmem:[#allocation5 + $0x38] sm:$0xff]   ;;  %v9962_v61 = vld [vmem:[#allocation5 + $0x88] sm:$0xff]  }
 0x366   : > { %9231 = vmatmul.mubr.msk.bf16.gmra.mrb[204].mxu0 %vm10294_vm5, %v11669_v43  ;;  %7760 = vmatmul.mubr.msk.bf16.gmra.mrb[156].mxu1 %vm10287_vm4, %v11749_v10 }
 0x367   : > { %v11811_v54 = vadd.f32 %v11747_v37, %v8423_v3  ;;  %9250 = vmatprep.mubr.msk.bf16.mxu1 %vm10294_vm5, %v11669_v43  ;;  %5925 = vmatprep.mubr.bf16.mxu0 %v11401_v28 }
 0x368   : > { %8735 = vmatpush3.bf16.msra.mxu0 %v9958_v55 }
 0x369   : > { %v8424_v8 = vpop.f32.mrb[164].mxu0  ;;  %v8510_v17 = vpop.f32.mrb[104].mxu1  ;;  %8736 = vmatprep.subr.bf16.mxu0 %v9959_v0 }
 0x36a   : > { %v8425_v16 = vpop.f32.mrb[165].mxu0  ;;  %v8511_v63 = vpop.f32.mrb[105].mxu1 }
 0x36b   : > { %v8426_v48 = vadd.f32 %v8425_v16, %v8424_v8  ;;  %v8512_v41 = vadd.f32 %v8511_v63, %v8510_v17  ;;  %v8427_v30 = vpop.f32.mrb[166].mxu0  ;;  %v8513_v56 = vpop.f32.mrb[106].mxu1  ;;  %v9965_v8 = vld [vmem:[#allocation5 + $0xa0] sm:$0xff]  }
 0x36c   : > { %8737 = vmatpush3.bf16.msra.mxu0 %v9960_v32  ;;  %v8428_v37 = vpop.f32.mrb[167].mxu0  ;;  %v8514_v18 = vpop.f32.mrb[107].mxu1  ;;  %v9964_v32 = vld [vmem:[#allocation5 + $0x98] sm:$0xff]  }
 0x36d   : > { %v11817_v34 = vadd.f32 %v8506_v46, %v8426_v48  ;;  %v8429_v31 = vadd.f32 %v8428_v37, %v8427_v30  ;;  %v8515_v35 = vadd.f32 %v8514_v18, %v8513_v56 }
 0x36e   : > { %9251 = vmatmul.mubr.msk.bf16.vlgmr.msra.gmra.mrb[160].mxu1 %vm10294_vm5, %v11650_v62 }
 0x36f   : > { %v11822_v28 = vadd.f32 %v8509_v53, %v8429_v31  ;;  %7788 = vmatmul.mubr.msk.bf16.vlgmr.msra.gmra.mrb[240].mxu0 %vm10287_vm4, %v11410_v50  ;;  %9267 = vmatpush3.bf16.msra.mxu1 %v11768_v45 }
 0x370   : > { %9254 = vmatprep.mubr.msk.bf16.mxu1 %vm10294_vm5, %v11694_v36  ;;  %5933 = vmatprep.mubr.bf16.mxu0 %v11644_v25 }
 0x371   : > { %v8430_v7 = vpop.f32.mrb[168].mxu0  ;;  %v8516_v57 = vpop.f32.mrb[108].mxu1  ;;  %9268 = vmatprep.subr.bf16.mxu1 %v9962_v61 }
 0x372   : > { %v8431_v46 = vpop.f32.mrb[169].mxu0  ;;  %v8517_v60 = vpop.f32.mrb[109].mxu1 }
 0x373   : > { %v8432_v26 = vadd.f32 %v8431_v46, %v8430_v7  ;;  %v8518_v29 = vadd.f32 %v8517_v60, %v8516_v57  ;;  %9269 = vmatpush3.bf16.msra.mxu1 %v9962_v61  ;;  %v8433_v38 = vpop.f32.mrb[170].mxu0  ;;  %v8519_v55 = vpop.f32.mrb[110].mxu1  ;;  %v9967_v57 = vld [vmem:[#allocation5 + $0xb0] sm:$0xff]  }
 0x374   : > { %v8434_v50 = vpop.f32.mrb[171].mxu0  ;;  %v8520_v3 = vpop.f32.mrb[111].mxu1  ;;  %9270 = vmatprep.subr.bf16.mxu1 %v9963_v52 }
 0x375   : > { %v11832_v45 = vadd.f32 %v8512_v41, %v8432_v26  ;;  %v8435_v53 = vadd.f32 %v8434_v50, %v8433_v38  ;;  %v8521_v0 = vadd.f32 %v8520_v3, %v8519_v55 }
 0x376   : > { %9255 = vmatmul.mubr.msk.bf16.gmra.mrb[164].mxu1 %vm10294_vm5, %v11696_v23 }
 0x377   : > { %v11837_v25 = vadd.f32 %v8515_v35, %v8435_v53  ;;  %7792 = vmatmul.mubr.msk.bf16.gmra.mrb[244].mxu0 %vm10287_vm4, %v11656_v13  ;;  %9271 = vmatpush3.bf16.msra.mxu1 %v9963_v52  ;;  %v9966_v52 = vld [vmem:[#allocation5 + $0xa8] sm:$0xff]  }
 0x378   : > { %9258 = vmatprep.mubr.msk.bf16.mxu1 %vm10294_vm5, %v11726_v40  ;;  %5941 = vmatprep.mubr.bf16.mxu0 %v11641_v33 }
 0x379   : > { %v8436_v17 = vpop.f32.mrb[172].mxu0  ;;  %v8522_v16 = vpop.f32.mrb[112].mxu1  ;;  %9272 = vmatprep.subr.bf16.mxu1 %v9964_v32 }
 0x37a   : > { %v8437_v63 = vpop.f32.mrb[173].mxu0  ;;  %v8523_v48 = vpop.f32.mrb[113].mxu1 }
 0x37b   : > { %v8438_v41 = vadd.f32 %v8437_v63, %v8436_v17  ;;  %v8524_v30 = vadd.f32 %v8523_v48, %v8522_v16  ;;  %9273 = vmatpush3.bf16.msra.mxu1 %v9964_v32  ;;  %v8439_v56 = vpop.f32.mrb[174].mxu0  ;;  %v8525_v37 = vpop.f32.mrb[114].mxu1  ;;  %v9968_v16 = vld [vmem:[#allocation5 + $0xb8] sm:$0xff]   ;;  %v9969_v48 = vld [vmem:[#allocation5 + $0x1c0] sm:$0xff]  }
 0x37c   : > { %v8440_v18 = vpop.f32.mrb[175].mxu0  ;;  %v8526_v13 = vpop.f32.mrb[115].mxu1  ;;  %9274 = vmatprep.subr.bf16.mxu1 %v9965_v8 }
 0x37d   : > { %v11846_v31 = vadd.f32 %v8518_v29, %v8438_v41  ;;  %v8441_v35 = vadd.f32 %v8440_v18, %v8439_v56  ;;  %v8527_v61 = vadd.f32 %v8526_v13, %v8525_v37 }
 0x37e   : > { %9259 = vmatmul.mubr.msk.bf16.gmra.mrb[168].mxu1 %vm10294_vm5, %v11728_v51 }
 0x37f   : > { %v11851_v7 = vadd.f32 %v8521_v0, %v8441_v35  ;;  %7796 = vmatmul.mubr.msk.bf16.gmra.mrb[248].mxu0 %vm10287_vm4, %v11659_v5  ;;  %9275 = vmatpush3.bf16.msra.mxu1 %v9965_v8 }
 0x380   : > { %9262 = vmatprep.mubr.msk.bf16.mxu1 %vm10294_vm5, %v11754_v42  ;;  %5949 = vmatprep.mubr.bf16.mxu0 %v11678_v49 }
 0x381   : > { %v8442_v46 = vpop.f32.mrb[176].mxu0  ;;  %v8528_v60 = vpop.f32.mrb[116].mxu1  ;;  %9276 = vmatprep.subr.bf16.mxu1 %v9966_v52 }
 0x382   : > { %v8443_v26 = vpop.f32.mrb[177].mxu0  ;;  %v8529_v29 = vpop.f32.mrb[117].mxu1 }
 0x383   : > { %v8444_v38 = vadd.f32 %v8443_v26, %v8442_v46  ;;  %v8530_v55 = vadd.f32 %v8529_v29, %v8528_v60  ;;  %9277 = vmatpush3.bf16.msra.mxu1 %v9966_v52  ;;  %v8445_v50 = vpop.f32.mrb[178].mxu0  ;;  %v8531_v3 = vpop.f32.mrb[118].mxu1  ;;  %v9970_v52 = vld [vmem:[#allocation5 + $0x180] sm:$0xff]  }
 0x384   : > { %v8446_v53 = vpop.f32.mrb[179].mxu0  ;;  %v8532_v0 = vpop.f32.mrb[119].mxu1  ;;  %9278 = vmatprep.subr.bf16.mxu1 %v9967_v57 }
 0x385   : > { %v11860_v32 = vadd.f32 %v8524_v30, %v8444_v38  ;;  %v8447_v8 = vadd.f32 %v8446_v53, %v8445_v50  ;;  %v8533_v17 = vadd.f32 %v8532_v0, %v8531_v3  ;;  %v9972_v50 = vld [vmem:[#allocation5 + $0x188] sm:$0xff]  }
 0x386   : > { %9263 = vmatmul.mubr.msk.bf16.gmra.mrb[172].mxu1 %vm10294_vm5, %v11756_v4 }
 0x387   : > { %v11865_v63 = vadd.f32 %v8527_v61, %v8447_v8  ;;  %7800 = vmatmul.mubr.msk.bf16.gmra.mrb[252].mxu0 %vm10287_vm4, %v11690_v47  ;;  %9279 = vmatpush3.bf16.msra.mxu1 %v9967_v57 }
 0x388   : > { %5957 = vmatprep.mubr.bf16.mxu0 %v11675_v21  ;;  %9282 = vmatprep.mubr.msk.bf16.mxu1 %vm10294_vm5, %v11413_v22  ;;  %v9971_v22 = vld [vmem:[#allocation5 + $0x1c8] sm:$0xff]  }
 0x389   : > { %v8448_v41 = vpop.f32.mrb[180].mxu0  ;;  %v8534_v30 = vpop.f32.mrb[120].mxu1  ;;  %9280 = vmatprep.subr.bf16.mxu1 %v9968_v16 }
 0x38a   : > { %v8449_v56 = vpop.f32.mrb[181].mxu0  ;;  %v8535_v37 = vpop.f32.mrb[121].mxu1 }
 0x38b   : > { %v8450_v18 = vadd.f32 %v8449_v56, %v8448_v41  ;;  %v8536_v13 = vadd.f32 %v8535_v37, %v8534_v30  ;;  %9281 = vmatpush3.bf16.msra.mxu1 %v9968_v16  ;;  %v8451_v35 = vpop.f32.mrb[182].mxu0  ;;  %v8537_v61 = vpop.f32.mrb[122].mxu1  ;;  %v9974_v41 = vld [vmem:[#allocation5 + $0x190] sm:$0xff]  }
 0x38c   : > { %v8452_v46 = vpop.f32.mrb[183].mxu0  ;;  %v8538_v57 = vpop.f32.mrb[123].mxu1  ;;  %8802 = vmatprep.subr.bf16.mxu1 %v9969_v48 }
 0x38d   : > { %v11874_v60 = vadd.f32 %v8530_v55, %v8450_v18  ;;  %v8453_v26 = vadd.f32 %v8452_v46, %v8451_v35  ;;  %v8539_v29 = vadd.f32 %v8538_v57, %v8537_v61  ;;  %v9973_v55 = vld [vmem:[#allocation5 + $0x1d0] sm:$0xff]   ;;  %v9975_v61 = vld [vmem:[#allocation5 + $0x1d8] sm:$0xff]  }
 0x38e   : > { %9283 = vmatmul.mubr.msk.bf16.vlgmr.msra.gmra.mrb[160].mxu1 %vm10294_vm5, %v11669_v43  ;;  %v9976_v46 = vld [vmem:[#allocation5 + $0x198] sm:$0xff]  }
 0x38f   : > { %v11879_v38 = vadd.f32 %v8533_v17, %v8453_v26  ;;  %7804 = vmatmul.mubr.msk.bf16.gmra.mrb[0].mxu0 %vm10287_vm4, %v11687_v20  ;;  %8803 = vmatpush3.bf16.msra.mxu1 %v9970_v52 }
 0x390   : > { %5965 = vmatprep.mubr.bf16.mxu0 %v11710_v1  ;;  %9286 = vmatprep.mubr.msk.bf16.mxu1 %vm10294_vm5, %v11650_v62 }
 0x391   : > { %v8454_v3 = vpop.f32.mrb[184].mxu0  ;;  %v8540_v53 = vpop.f32.mrb[124].mxu1  ;;  %8804 = vmatprep.subr.bf16.mxu1 %v9971_v22 }
 0x392   : > { %v8455_v0 = vpop.f32.mrb[185].mxu0  ;;  %v8541_v43 = vpop.f32.mrb[125].mxu1 }
 0x393   : > { %v8456_v8 = vadd.f32 %v8455_v0, %v8454_v3  ;;  %v8542_v17 = vadd.f32 %v8541_v43, %v8540_v53  ;;  %8805 = vmatpush3.bf16.msra.mxu1 %v9972_v50  ;;  %v8457_v16 = vpop.f32.mrb[186].mxu0  ;;  %v8543_v48 = vpop.f32.mrb[126].mxu1  ;;  %v9978_v50 = vld [vmem:[#allocation5 + $0x1a0] sm:$0xff]   ;;  %v9979_v0 = vld [vmem:[#allocation5 + $0x1e8] sm:$0xff]  }
 0x394   : > { %v8458_v30 = vpop.f32.mrb[187].mxu0  ;;  %v8544_v56 = vpop.f32.mrb[127].mxu1  ;;  %8806 = vmatprep.subr.bf16.mxu1 %v9973_v55 }
 0x395   : > { %v11888_v37 = vadd.f32 %v8536_v13, %v8456_v8  ;;  %v8459_v18 = vadd.f32 %v8458_v30, %v8457_v16  ;;  %v8545_v35 = vadd.f32 %v8544_v56, %v8543_v48  ;;  %v9977_v13 = vld [vmem:[#allocation5 + $0x1e0] sm:$0xff]   ;;  %v9980_v8 = vld [vmem:[#allocation5 + $0x1a8] sm:$0xff]   ;;  %v9982_v16 = vld [vmem:[#allocation5 + $0x1b0] sm:$0xff]  }
 0x396   : > { %9287 = vmatmul.mubr.msk.bf16.gmra.mrb[164].mxu1 %vm10294_vm5, %v11694_v36  ;;  %v9983_v48 = vld [vmem:[#allocation5 + $0x1f8] sm:$0xff]   ;;  %v9985_v30 = vld [vmem:[#allocation5 + $0x200] sm:$0xff]   ;;  %v9986_v56 = vld [vmem:[#allocation5 + $0x208] sm:$0xff]  }
 0x397   : > { %v11893_v52 = vadd.f32 %v8539_v29, %v8459_v18  ;;  %7808 = vmatmul.mubr.msk.bf16.gmra.mrb[4].mxu0 %vm10287_vm4, %v11722_v59  ;;  %8807 = vmatpush3.bf16.msra.mxu1 %v9974_v41  ;;  %v9984_v41 = vld [vmem:[#allocation5 + $0x1b8] sm:$0xff]   ;;  %v9987_v18 = vld [vmem:[#allocation5 + $0x210] sm:$0xff]  }
 0x398   : > { %5973 = vmatprep.mubr.bf16.mxu0 %v11707_v2  ;;  %9290 = vmatprep.mubr.msk.bf16.mxu1 %vm10294_vm5, %v11696_v23 }
 0x399   : > { %v8460_v57 = vpop.f32.mrb[188].mxu0  ;;  %8808 = vmatprep.subr.bf16.mxu1 %v9975_v61 }
 0x39a   : > { %v8461_v26 = vpop.f32.mrb[189].mxu0 }
 0x39b   : > { %v8462_v22 = vadd.f32 %v8461_v26, %v8460_v57  ;;  %8809 = vmatpush3.bf16.msra.mxu1 %v9976_v46  ;;  %v8463_v29 = vpop.f32.mrb[190].mxu0 }
 0x39c   : > { %v8464_v55 = vpop.f32.mrb[191].mxu0  ;;  %8810 = vmatprep.subr.bf16.mxu1 %v9977_v13 }
 0x39d   : > { %v11902_v3 = vadd.f32 %v8542_v17, %v8462_v22  ;;  %v8465_v53 = vadd.f32 %v8464_v55, %v8463_v29  ;;  %v9981_v17 = vld [vmem:[#allocation5 + $0x1f0] sm:$0xff]  }
 0x39e   : > { %9291 = vmatmul.mubr.msk.bf16.gmra.mrb[168].mxu1 %vm10294_vm5, %v11726_v40 }
 0x39f   : > { %v11907_v43 = vadd.f32 %v8545_v35, %v8465_v53  ;;  %7812 = vmatmul.mubr.msk.bf16.gmra.mrb[8].mxu0 %vm10287_vm4, %v11719_v11  ;;  %8811 = vmatpush3.bf16.msra.mxu1 %v9978_v50  ;;  %v9988_v35 = vld [vmem:[#allocation5 + $0x218] sm:$0xff]  }
 0x3a0   : > { %5981 = vmatprep.mubr.bf16.mxu0 %v11740_v15  ;;  %9294 = vmatprep.mubr.msk.bf16.mxu1 %vm10294_vm5, %v11728_v51 }
 0x3a1   : > { %8812 = vmatprep.subr.bf16.mxu1 %v9979_v0 }
 0x3a3   : > { %8813 = vmatpush3.bf16.msra.mxu1 %v9980_v8 }
 0x3a4   : > { %8814 = vmatprep.subr.bf16.mxu1 %v9981_v17 }
 0x3a6   : > { %9295 = vmatmul.mubr.msk.bf16.gmra.mrb[172].mxu1 %vm10294_vm5, %v11754_v42 }
 0x3a7   : > { %7816 = vmatmul.mubr.msk.bf16.gmra.mrb[12].mxu0 %vm10287_vm4, %v11752_v19  ;;  %8815 = vmatpush3.bf16.msra.mxu1 %v9982_v16 }
 0x3a8   : > { %6335 = vmatprep.mubr.bf16.mxu1 %v11641_v33  ;;  %8816 = vmatprep.subr.bf16.mxu1 %v9983_v48  ;;  %v9989_v33 = vld [vmem:[#allocation5 + $0x220] sm:$0xff]  }
 0x3ab   : > { %8817 = vmatpush3.bf16.msra.mxu1 %v9984_v41 }
 0x3ac   : > { %9298 = vmatprep.subr.bf16.mxu1 %v9985_v30 }
 0x3ae   : > { %7844 = vmatmul.mubr.msk.bf16.vlgmr.msra.gmra.mrb[176].mxu1 %vm10287_vm4, %v11659_v5  ;;  %v9990_v5 = vld [vmem:[#allocation5 + $0x228] sm:$0xff]  }
 0x3af   : > { %9299 = vmatpush3.bf16.msra.mxu1 %v9985_v30  ;;  %6343 = vmatprep.mubr.bf16.mxu1 %v11678_v49  ;;  %v9991_v49 = vld [vmem:[#allocation5 + $0x230] sm:$0xff]  }
 0x3b0   : > { %9300 = vmatprep.subr.bf16.mxu1 %v9986_v56 }
 0x3b3   : > { %9301 = vmatpush3.bf16.msra.mxu1 %v9986_v56 }
 0x3b4   : > { %9302 = vmatprep.subr.bf16.mxu1 %v9987_v18 }
 0x3b6   : > { %7848 = vmatmul.mubr.msk.bf16.gmra.mrb[180].mxu1 %vm10287_vm4, %v11690_v47  ;;  %v9992_v47 = vld [vmem:[#allocation5 + $0x238] sm:$0xff]  }
 0x3b7   : > { %6351 = vmatprep.mubr.bf16.mxu1 %v11675_v21  ;;  %9303 = vmatpush3.bf16.msra.mxu1 %v9987_v18 }
 0x3b8   : > { %9304 = vmatprep.subr.bf16.mxu1 %v9988_v35 }
 0x3bb   : > { %9305 = vmatpush3.bf16.msra.mxu1 %v9988_v35 }
 0x3bc   : > { %9306 = vmatprep.subr.bf16.mxu1 %v9989_v33 }
 0x3be   : > { %7852 = vmatmul.mubr.msk.bf16.gmra.mrb[184].mxu1 %vm10287_vm4, %v11687_v20 }
 0x3bf   : > { %6359 = vmatprep.mubr.bf16.mxu1 %v11710_v1  ;;  %9307 = vmatpush3.bf16.msra.mxu1 %v9989_v33 }
 0x3c0   : > { %9308 = vmatprep.subr.bf16.mxu1 %v9990_v5 }
 0x3c3   : > { %9309 = vmatpush3.bf16.msra.mxu1 %v9990_v5 }
 0x3c4   : > { %9310 = vmatprep.subr.bf16.mxu1 %v9991_v49 }
 0x3c6   : > { %7856 = vmatmul.mubr.msk.bf16.gmra.mrb[188].mxu1 %vm10287_vm4, %v11722_v59 }
 0x3c7   : > { %6367 = vmatprep.mubr.bf16.mxu1 %v11707_v2  ;;  %9311 = vmatpush3.bf16.msra.mxu1 %v9991_v49 }
 0x3c8   : > { %9312 = vmatprep.subr.bf16.mxu1 %v9992_v47 }
 0x3cb   : > { %9313 = vmatpush3.bf16.msra.mxu1 %v9992_v47 }
 0x3ce   : > { %7860 = vmatmul.mubr.msk.bf16.gmra.mrb[192].mxu1 %vm10287_vm4, %v11719_v11 }
 0x3cf   : > { %6375 = vmatprep.mubr.bf16.mxu1 %v11740_v15 }
 0x3d6   : > { %7864 = vmatmul.mubr.msk.bf16.gmra.mrb[196].mxu1 %vm10287_vm4, %v11752_v19 }
 0x3d7   : > { %6383 = vmatprep.mubr.bf16.mxu1 %v11738_v24 }
 0x3de   : > { %7868 = vmatmul.mubr.msk.bf16.gmra.mrb[200].mxu1 %vm10287_vm4, %v11749_v10 }
 0x3df   : > { %6391 = vmatprep.mubr.bf16.mxu1 %v12337_v58 }
 0x3e1   : > { %v8578_v21 = vpop.f32.mrb[208].mxu0 }
 0x3e2   : > { %v8579_v20 = vpop.f32.mrb[209].mxu0 }
 0x3e3   : > { %v8580_v2 = vadd.f32 %v8579_v20, %v8578_v21  ;;  %v8581_v1 = vpop.f32.mrb[210].mxu0 }
 0x3e4   : > { %v8582_v59 = vpop.f32.mrb[211].mxu0 }
 0x3e5   : > { %v8583_v11 = vadd.f32 %v8582_v59, %v8581_v1  ;;  %v11952_v15 = vadd.f32 %v11802_v27, %v8580_v2 }
 0x3e6   : > { %6392 = vmatmul.mubr.bf16.gmra.mrb[204].mxu1 %v12337_v58 }
 0x3e7   : > { %9314 = vmatprep.mubr.msk.bf16.mxu1 %vm10294_vm5, %v11650_v62  ;;  %v11959_v9 = vadd.f32 %v11811_v54, %v8583_v11 }
 0x3e9   : > { %v8584_v24 = vpop.f32.mrb[212].mxu0 }
 0x3ea   : > { %v8585_v10 = vpop.f32.mrb[213].mxu0 }
 0x3eb   : > { %v8586_v19 = vadd.f32 %v8585_v10, %v8584_v24  ;;  %v8587_v61 = vpop.f32.mrb[214].mxu0 }
 0x3ec   : > { %v8588_v46 = vpop.f32.mrb[215].mxu0 }
 0x3ed   : > { %v8589_v13 = vadd.f32 %v8588_v46, %v8587_v61  ;;  %v11962_v57 = vadd.f32 %v11817_v34, %v8586_v19 }
 0x3ee   : > { %9315 = vmatmul.mubr.msk.bf16.vlgmr.msra.gmra.mrb[160].mxu1 %vm10294_vm5, %v11694_v36 }
 0x3ef   : > { %9318 = vmatprep.mubr.msk.bf16.mxu1 %vm10294_vm5, %v11696_v23  ;;  %v11971_v62 = vadd.f32 %v11822_v28, %v8589_v13 }
 0x3f1   : > { %v8590_v27 = vpop.f32.mrb[216].mxu0 }
 0x3f2   : > { %v8591_v54 = vpop.f32.mrb[217].mxu0 }
 0x3f3   : > { %v8592_v26 = vadd.f32 %v8591_v54, %v8590_v27  ;;  %v8593_v22 = vpop.f32.mrb[218].mxu0 }
 0x3f4   : > { %v8594_v29 = vpop.f32.mrb[219].mxu0 }
 0x3f5   : > { %v8595_v50 = vadd.f32 %v8594_v29, %v8593_v22  ;;  %v11974_v34 = vadd.f32 %v11832_v45, %v8592_v26 }
 0x3f6   : > { %9319 = vmatmul.mubr.msk.bf16.gmra.mrb[164].mxu1 %vm10294_vm5, %v11726_v40 }
 0x3f7   : > { %9322 = vmatprep.mubr.msk.bf16.mxu1 %vm10294_vm5, %v11728_v51  ;;  %v11983_v36 = vadd.f32 %v11837_v25, %v8595_v50 }
 0x3f9   : > { %v8596_v23 = vpop.f32.mrb[220].mxu0 }
 0x3fa   : > { %v8597_v28 = vpop.f32.mrb[221].mxu0 }
 0x3fb   : > { %v8598_v55 = vadd.f32 %v8597_v28, %v8596_v23  ;;  %v8599_v53 = vpop.f32.mrb[222].mxu0 }
 0x3fc   : > { %v8600_v0 = vpop.f32.mrb[223].mxu0 }
 0x3fd   : > { %v8601_v8 = vadd.f32 %v8600_v0, %v8599_v53  ;;  %v11986_v45 = vadd.f32 %v11846_v31, %v8598_v55 }
 0x3fe   : > { %9323 = vmatmul.mubr.msk.bf16.gmra.mrb[168].mxu1 %vm10294_vm5, %v11754_v42 }
 0x3ff   : > { %9326 = vmatprep.mubr.msk.bf16.mxu1 %vm10294_vm5, %v11756_v4  ;;  %v11995_v40 = vadd.f32 %v11851_v7, %v8601_v8 }
 0x401   : > { %v8602_v51 = vpop.f32.mrb[224].mxu0  ;;  %v8658_v25 = vpop.f32.mrb[128].mxu1 }
 0x402   : > { %v8603_v17 = vpop.f32.mrb[225].mxu0  ;;  %v8659_v16 = vpop.f32.mrb[129].mxu1 }
 0x403   : > { %v8604_v48 = vadd.f32 %v8603_v17, %v8602_v51  ;;  %v11997_v41 = vadd.f32 %v8659_v16, %v8658_v25  ;;  %v8605_v31 = vpop.f32.mrb[226].mxu0  ;;  %v8661_v30 = vpop.f32.mrb[130].mxu1 }
 0x404   : > { %v8606_v56 = vpop.f32.mrb[227].mxu0  ;;  %v8662_v18 = vpop.f32.mrb[131].mxu1 }
 0x405   : > { %v8607_v35 = vadd.f32 %v8606_v56, %v8605_v31  ;;  %v11999_v42 = vadd.f32 %v8662_v18, %v8661_v30  ;;  %v12002_v14 = vadd.f32 %v11860_v32, %v8604_v48  ;;  %v12041_v56 = vld [vmem:[%s12286_s6] ss:$0 sm:$0xff] }
 0x406   : > { %9327 = vmatmul.mubr.bf16.gmra.mrb[172].mxu1 %v12337_v58 }
 0x407   : > { %v12006_v4 = vadd.f32 %v11865_v63, %v8607_v35 }
 0x409   : > { %v8608_v7 = vpop.f32.mrb[228].mxu0  ;;  %v8664_v33 = vpop.f32.mrb[132].mxu1 }
 0x40a   : > { %v8609_v5 = vpop.f32.mrb[229].mxu0  ;;  %v8665_v49 = vpop.f32.mrb[133].mxu1 }
 0x40b   : > { %v8610_v47 = vadd.f32 %v8609_v5, %v8608_v7  ;;  %v12008_v21 = vadd.f32 %v8665_v49, %v8664_v33  ;;  %v8611_v20 = vpop.f32.mrb[230].mxu0  ;;  %v8667_v2 = vpop.f32.mrb[134].mxu1 }
 0x40c   : > { %v8612_v1 = vpop.f32.mrb[231].mxu0  ;;  %v8668_v59 = vpop.f32.mrb[135].mxu1 }
 0x40d   : > { %v8613_v11 = vadd.f32 %v8612_v1, %v8611_v20  ;;  %v12010_v24 = vadd.f32 %v8668_v59, %v8667_v2  ;;  %v12013_v32 = vadd.f32 %v11874_v60, %v8610_v47  ;;  %v5219_v20 = vunpack.c.l.bf16 %v10285_v6 }
 0x40f   : > { %v12016_v58 = vadd.f32 %v11879_v38, %v8613_v11 }
 0x411   : > { %v8614_v63 = vpop.f32.mrb[232].mxu0  ;;  %v8670_v10 = vpop.f32.mrb[136].mxu1 }
 0x412   : > { %v8615_v19 = vpop.f32.mrb[233].mxu0  ;;  %v8671_v61 = vpop.f32.mrb[137].mxu1 }
 0x413   : > { %v8616_v46 = vadd.f32 %v8615_v19, %v8614_v63  ;;  %v12018_v13 = vadd.f32 %v8671_v61, %v8670_v10  ;;  %v8617_v27 = vpop.f32.mrb[234].mxu0  ;;  %v8673_v54 = vpop.f32.mrb[138].mxu1 }
 0x414   : > { %v8618_v26 = vpop.f32.mrb[235].mxu0  ;;  %v8674_v22 = vpop.f32.mrb[139].mxu1 }
 0x415   : > { %v8619_v29 = vadd.f32 %v8618_v26, %v8617_v27  ;;  %v12020_v50 = vadd.f32 %v8674_v22, %v8673_v54  ;;  %v12023_v60 = vadd.f32 %v11888_v37, %v8616_v46  ;;  %v5220_v46 = vunpack.c.h.bf16 %v10285_v6 }
 0x417   : > { %v12026_v38 = vadd.f32 %v11893_v52, %v8619_v29 }
 0x419   : > { %v8620_v23 = vpop.f32.mrb[236].mxu0  ;;  %v8676_v28 = vpop.f32.mrb[140].mxu1 }
 0x41a   : > { %v8621_v55 = vpop.f32.mrb[237].mxu0  ;;  %v8677_v53 = vpop.f32.mrb[141].mxu1 }
 0x41b   : > { %v8622_v0 = vadd.f32 %v8621_v55, %v8620_v23  ;;  %v12028_v8 = vadd.f32 %v8677_v53, %v8676_v28  ;;  %v8623_v51 = vpop.f32.mrb[238].mxu0  ;;  %v8679_v25 = vpop.f32.mrb[142].mxu1 }
 0x41c   : > { %v8624_v17 = vpop.f32.mrb[239].mxu0  ;;  %v8680_v16 = vpop.f32.mrb[143].mxu1 }
 0x41d   : > { %v8625_v48 = vadd.f32 %v8624_v17, %v8623_v51  ;;  %v12030_v31 = vadd.f32 %v8680_v16, %v8679_v25  ;;  %v12033_v37 = vadd.f32 %v11902_v3, %v8622_v0 }
 0x41f   : > { %v12036_v52 = vadd.f32 %v11907_v43, %v8625_v48 }
 0x421   : > { %v9220_v30 = vpop.f32.mrb[192].mxu0  ;;  %v8682_v18 = vpop.f32.mrb[144].mxu1 }
 0x422   : > { %v9428_v35 = vadd.f32 %v11962_v57, %v9220_v30  ;;  %v5107_v7 = vpop.f32.mrb[193].mxu0  ;;  %v8683_v33 = vpop.f32.mrb[145].mxu1  ;;  %v12338_v57 = vld [vmem:[#allocation8_spill] sm:$0xff] }
 0x423   : > { %v9431_v5 = vadd.f32 %v11952_v15, %v5107_v7  ;;  %v12045_v49 = vadd.f32 %v8683_v33, %v8682_v18  ;;  %v9221_v3 = vpop.f32.mrb[194].mxu0  ;;  %v8685_v47 = vpop.f32.mrb[146].mxu1  ;;  %v5210_v63 = vunpack.c.l.bf16 %v12338_v57  ;;  %v5211_v54 = vunpack.c.h.bf16 %v12338_v57 }
 0x424   : > { %v5195_v43 = vadd.f32 %v9428_v35, %v12041_v56  ;;  %v9434_v2 = vadd.f32 %v11971_v62, %v9221_v3  ;;  %v5110_v1 = vpop.f32.mrb[195].mxu0  ;;  %v8686_v59 = vpop.f32.mrb[147].mxu1  ;;  %v5239_v18 = vunpack.c.l.bf16 %v10340_v39 }
 0x425   : > { %v5193_v11 = vadd.f32 %v9431_v5, %v12041_v56  ;;  %v9437_v10 = vadd.f32 %v11959_v9, %v5110_v1  ;;  %v12054_v15 = vadd.f32 %v8686_v59, %v8685_v47  ;;  %v5229_v5 = vunpack.c.l.bf16 %v10345_v44 }
 0x426   : > { %v5221_v19 = vadd.f32 %v5219_v20, %v5195_v43  ;;  %v5196_v61 = vadd.f32 %v9434_v2, %v12041_v56  ;;  %v5240_v20 = vunpack.c.h.bf16 %v10340_v39  ;;  %v5230_v1 = vunpack.c.h.bf16 %v10345_v44 }
 0x427   : > { %v5212_v62 = vadd.f32 %v5210_v63, %v5193_v11  ;;  %v5194_v27 = vadd.f32 %v9437_v10, %v12041_v56 }
 0x428   : > { %v5223_v9 = vmax.f32 %v5221_v19, 0.0  ;;  %v5222_v26 = vadd.f32 %v5220_v46, %v5196_v61 }
 0x429   : > { %v5214_v22 = vmax.f32 %v5212_v62, 0.0  ;;  %v5213_v29 = vadd.f32 %v5211_v54, %v5194_v27  ;;  %v9224_v23 = vpop.f32.mrb[196].mxu0  ;;  %v8688_v28 = vpop.f32.mrb[148].mxu1 }
 0x42a   : > { %7139 = vst [vmem:[%s12061_s19 + $0x10] sm:$0xff] %v5223_v9  ;;  %v5224_v6 = vmax.f32 %v5222_v26, 0.0  ;;  %v9440_v55 = vadd.f32 %v11986_v45, %v9224_v23  ;;  %v5123_v53 = vpop.f32.mrb[197].mxu0  ;;  %v8689_v0 = vpop.f32.mrb[149].mxu1 }
 0x42b   : > { %5216 = vst [vmem:[%s12061_s19] sm:$0xff] %v5214_v22  ;;  %v5215_v51 = vmax.f32 %v5213_v29, 0.0  ;;  %v9443_v25 = vadd.f32 %v11974_v34, %v5123_v53  ;;  %v12069_v17 = vadd.f32 %v8689_v0, %v8688_v28  ;;  %v9225_v16 = vpop.f32.mrb[198].mxu0  ;;  %v8691_v48 = vpop.f32.mrb[150].mxu1  ;;  %v5259_v22 = vunpack.c.l.bf16 %v10391_v12 }
 0x42c   : > { %7140 = vst [vmem:[%s12061_s19 + $0x18] sm:$0xff] %v5224_v6  ;;  %v5199_v30 = vadd.f32 %v9440_v55, %v12041_v56  ;;  %v9446_v35 = vadd.f32 %v11995_v40, %v9225_v16  ;;  %v5126_v7 = vpop.f32.mrb[199].mxu0  ;;  %v8692_v33 = vpop.f32.mrb[151].mxu1  ;;  %v12339_v6 = vld [vmem:[#allocation9_spill] sm:$0xff] }
 0x42d   : > { %5217 = vst [vmem:[%s12061_s19 + $0x8] sm:$0xff] %v5215_v51  ;;  %v5197_v45 = vadd.f32 %v9443_v25, %v12041_v56  ;;  %v9449_v34 = vadd.f32 %v11983_v36, %v5126_v7  ;;  %v12079_v3 = vadd.f32 %v8692_v33, %v8691_v48  ;;  %v5249_v55 = vunpack.c.l.bf16 %v12339_v6 }
 0x42e   : > { %v5241_v47 = vadd.f32 %v5239_v18, %v5199_v30  ;;  %v5200_v43 = vadd.f32 %v9446_v35, %v12041_v56  ;;  %v5260_v25 = vunpack.c.h.bf16 %v10391_v12  ;;  %v5250_v48 = vunpack.c.h.bf16 %v12339_v6 }
 0x42f   : > { %v5231_v2 = vadd.f32 %v5229_v5, %v5197_v45  ;;  %v5198_v40 = vadd.f32 %v9449_v34, %v12041_v56 }
 0x430   : > { %v5243_v59 = vmax.f32 %v5241_v47, 0.0  ;;  %v5242_v11 = vadd.f32 %v5240_v20, %v5200_v43 }
 0x431   : > { %v5233_v57 = vmax.f32 %v5231_v2, 0.0  ;;  %v5232_v63 = vadd.f32 %v5230_v1, %v5198_v40  ;;  %v9228_v10 = vpop.f32.mrb[200].mxu0  ;;  %v8694_v36 = vpop.f32.mrb[152].mxu1 }
 0x432   : > { %7143 = vst [vmem:[%s12061_s19 + $0x30] sm:$0xff] %v5243_v59  ;;  %v5244_v19 = vmax.f32 %v5242_v11, 0.0  ;;  %v9452_v61 = vadd.f32 %v12013_v32, %v9228_v10  ;;  %v5139_v46 = vpop.f32.mrb[201].mxu0  ;;  %v8695_v62 = vpop.f32.mrb[153].mxu1  ;;  %v12340_v59 = vld [vmem:[#allocation10_spill] sm:$0xff] }
 0x433   : > { %7141 = vst [vmem:[%s12061_s19 + $0x20] sm:$0xff] %v5233_v57  ;;  %v5234_v39 = vmax.f32 %v5232_v63, 0.0  ;;  %v9455_v27 = vadd.f32 %v12002_v14, %v5139_v46  ;;  %v12089_v54 = vadd.f32 %v8695_v62, %v8694_v36  ;;  %v9229_v44 = vpop.f32.mrb[202].mxu0  ;;  %v8697_v9 = vpop.f32.mrb[154].mxu1  ;;  %v5279_v11 = vunpack.c.l.bf16 %v12340_v59  ;;  %v12341_v36 = vld [vmem:[#allocation11_spill] sm:$0xff] }
 0x434   : > { %7144 = vst [vmem:[%s12061_s19 + $0x38] sm:$0xff] %v5244_v19  ;;  %v5203_v26 = vadd.f32 %v9452_v61, %v12041_v56  ;;  %v9458_v29 = vadd.f32 %v12016_v58, %v9229_v44  ;;  %v5142_v23 = vpop.f32.mrb[203].mxu0  ;;  %v8698_v28 = vpop.f32.mrb[155].mxu1  ;;  %v5269_v19 = vunpack.c.l.bf16 %v12341_v36  ;;  %v5270_v44 = vunpack.c.h.bf16 %v12341_v36 }
 0x435   : > { %7142 = vst [vmem:[%s12061_s19 + $0x28] sm:$0xff] %v5234_v39  ;;  %v5201_v32 = vadd.f32 %v9455_v27, %v12041_v56  ;;  %v9461_v14 = vadd.f32 %v12006_v4, %v5142_v23  ;;  %v12099_v53 = vadd.f32 %v8698_v28, %v8697_v9  ;;  %v5280_v39 = vunpack.c.h.bf16 %v12340_v59 }
 0x436   : > { %v5261_v0 = vadd.f32 %v5259_v22, %v5203_v26  ;;  %v5204_v51 = vadd.f32 %v9458_v29, %v12041_v56 }
 0x437   : > { %v5251_v16 = vadd.f32 %v5249_v55, %v5201_v32  ;;  %v5202_v58 = vadd.f32 %v9461_v14, %v12041_v56 }
 0x438   : > { %v5263_v30 = vmax.f32 %v5261_v0, 0.0  ;;  %v5262_v18 = vadd.f32 %v5260_v25, %v5204_v51 }
 0x439   : > { %v5253_v35 = vmax.f32 %v5251_v16, 0.0  ;;  %v5252_v7 = vadd.f32 %v5250_v48, %v5202_v58  ;;  %v9232_v33 = vpop.f32.mrb[204].mxu0  ;;  %v8700_v4 = vpop.f32.mrb[156].mxu1 }
 0x43a   : > { %7147 = vst [vmem:[%s12061_s19 + $0x50] sm:$0xff] %v5263_v30  ;;  %v5264_v45 = vmax.f32 %v5262_v18, 0.0  ;;  %v9464_v5 = vadd.f32 %v12033_v37, %v9232_v33  ;;  %v5155_v34 = vpop.f32.mrb[205].mxu0  ;;  %v8701_v47 = vpop.f32.mrb[157].mxu1 }
 0x43b   : > { %7145 = vst [vmem:[%s12061_s19 + $0x40] sm:$0xff] %v5253_v35  ;;  %v5254_v12 = vmax.f32 %v5252_v7, 0.0  ;;  %v9467_v43 = vadd.f32 %v12023_v60, %v5155_v34  ;;  %v12109_v20 = vadd.f32 %v8701_v47, %v8700_v4  ;;  %v9233_v2 = vpop.f32.mrb[206].mxu0  ;;  %v8703_v40 = vpop.f32.mrb[158].mxu1 }
 0x43c   : > { %7148 = vst [vmem:[%s12061_s19 + $0x58] sm:$0xff] %v5264_v45  ;;  %v5207_v1 = vadd.f32 %v9464_v5, %v12041_v56  ;;  %v9470_v57 = vadd.f32 %v12036_v52, %v9233_v2  ;;  %v5158_v63 = vpop.f32.mrb[207].mxu0  ;;  %v8704_v10 = vpop.f32.mrb[159].mxu1 }
 0x43d   : > { %7146 = vst [vmem:[%s12061_s19 + $0x48] sm:$0xff] %v5254_v12  ;;  %v5205_v37 = vadd.f32 %v9467_v43, %v12041_v56  ;;  %v9473_v60 = vadd.f32 %v12026_v38, %v5158_v63  ;;  %v12119_v61 = vadd.f32 %v8704_v10, %v8703_v40 }
 0x43e   : > { %v5281_v46 = vadd.f32 %v5279_v11, %v5207_v1  ;;  %v5208_v62 = vadd.f32 %v9470_v57, %v12041_v56 }
 0x43f   : > { %v5271_v52 = vadd.f32 %v5269_v19, %v5205_v37  ;;  %v5206_v27 = vadd.f32 %v9473_v60, %v12041_v56 }
 0x440   : > { %v5283_v9 = vmax.f32 %v5281_v46, 0.0  ;;  %v5282_v26 = vadd.f32 %v5280_v39, %v5208_v62 }
 0x441   : > { %v5273_v22 = vmax.f32 %v5271_v52, 0.0  ;;  %v5272_v29 = vadd.f32 %v5270_v44, %v5206_v27 }
 0x442   : > { %7151 = vst [vmem:[%s12061_s19 + $0x70] sm:$0xff] %v5283_v9  ;;  %v5284_v38 = vmax.f32 %v5282_v26, 0.0  ;;  %v8738_v23 = vpop.f32.mrb[240].mxu0 }
 0x443   : > { %7149 = vst [vmem:[%s12061_s19 + $0x60] sm:$0xff] %v5273_v22  ;;  %v5274_v28 = vmax.f32 %v5272_v29, 0.0  ;;  %v8739_v32 = vpop.f32.mrb[241].mxu0 }
 0x444   : > { %7152 = vst [vmem:[%s12061_s19 + $0x78] sm:$0xff] %v5284_v38  ;;  %v8740_v6 = vadd.f32 %v8739_v32, %v8738_v23  ;;  %v8741_v55 = vpop.f32.mrb[242].mxu0 }
 0x445   : > { %7150 = vst [vmem:[%s12061_s19 + $0x68] sm:$0xff] %v5274_v28  ;;  %v8742_v14 = vpop.f32.mrb[243].mxu0 }
 0x446   : > { %v12130_v0 = vadd.f32 %v8740_v6, %v11997_v41  ;;  %v8743_v51 = vadd.f32 %v8742_v14, %v8741_v55 }
 0x448   : > { %v12133_v25 = vadd.f32 %v8743_v51, %v11999_v42 }
 0x44a   : > { %v8744_v16 = vpop.f32.mrb[244].mxu0 }
 0x44b   : > { %v8745_v58 = vpop.f32.mrb[245].mxu0 }
 0x44c   : > { %v8746_v48 = vadd.f32 %v8745_v58, %v8744_v16  ;;  %v8747_v30 = vpop.f32.mrb[246].mxu0 }
 0x44d   : > { %v8748_v18 = vpop.f32.mrb[247].mxu0 }
 0x44e   : > { %v12136_v35 = vadd.f32 %v8746_v48, %v12008_v21  ;;  %v8749_v7 = vadd.f32 %v8748_v18, %v8747_v30 }
 0x450   : > { %v12139_v33 = vadd.f32 %v8749_v7, %v12010_v24 }
 0x452   : > { %v8750_v4 = vpop.f32.mrb[248].mxu0 }
 0x453   : > { %v8751_v45 = vpop.f32.mrb[249].mxu0 }
 0x454   : > { %v8752_v41 = vadd.f32 %v8751_v45, %v8750_v4  ;;  %v8753_v5 = vpop.f32.mrb[250].mxu0 }
 0x455   : > { %v8754_v34 = vpop.f32.mrb[251].mxu0 }
 0x456   : > { %v12142_v42 = vadd.f32 %v8752_v41, %v12018_v13  ;;  %v8755_v47 = vadd.f32 %v8754_v34, %v8753_v5 }
 0x458   : > { %v12145_v12 = vadd.f32 %v8755_v47, %v12020_v50 }
 0x45a   : > { %v8756_v43 = vpop.f32.mrb[252].mxu0 }
 0x45b   : > { %v8757_v2 = vpop.f32.mrb[253].mxu0 }
 0x45c   : > { %v8758_v21 = vadd.f32 %v8757_v2, %v8756_v43  ;;  %v8759_v40 = vpop.f32.mrb[254].mxu0 }
 0x45d   : > { %v8760_v1 = vpop.f32.mrb[255].mxu0 }
 0x45e   : > { %v12148_v24 = vadd.f32 %v8758_v21, %v12028_v8  ;;  %v8761_v59 = vadd.f32 %v8760_v1, %v8759_v40 }
 0x460   : > { %v12151_v11 = vadd.f32 %v8761_v59, %v12030_v31 }
 0x462   : > { %v8762_v57 = vpop.f32.mrb[0].mxu0 }
 0x463   : > { %v8763_v63 = vpop.f32.mrb[1].mxu0 }
 0x464   : > { %v8764_v13 = vadd.f32 %v8763_v63, %v8762_v57  ;;  %v8765_v10 = vpop.f32.mrb[2].mxu0 }
 0x465   : > { %v8766_v37 = vpop.f32.mrb[3].mxu0 }
 0x466   : > { %v12154_v50 = vadd.f32 %v8764_v13, %v12045_v49  ;;  %v8767_v36 = vadd.f32 %v8766_v37, %v8765_v10 }
 0x468   : > { %v12157_v19 = vadd.f32 %v8767_v36, %v12054_v15 }
 0x46a   : > { %v8768_v60 = vpop.f32.mrb[4].mxu0 }
 0x46b   : > { %v8769_v46 = vpop.f32.mrb[5].mxu0 }
 0x46c   : > { %v8770_v8 = vadd.f32 %v8769_v46, %v8768_v60  ;;  %v8771_v62 = vpop.f32.mrb[6].mxu0 }
 0x46d   : > { %v8772_v39 = vpop.f32.mrb[7].mxu0 }
 0x46e   : > { %v12160_v31 = vadd.f32 %v8770_v8, %v12069_v17  ;;  %v8773_v52 = vadd.f32 %v8772_v39, %v8771_v62 }
 0x470   : > { %v12163_v27 = vadd.f32 %v8773_v52, %v12079_v3 }
 0x472   : > { %v8774_v44 = vpop.f32.mrb[8].mxu0 }
 0x473   : > { %v8775_v9 = vpop.f32.mrb[9].mxu0 }
 0x474   : > { %v8776_v49 = vadd.f32 %v8775_v9, %v8774_v44  ;;  %v8777_v26 = vpop.f32.mrb[10].mxu0 }
 0x475   : > { %v8778_v22 = vpop.f32.mrb[11].mxu0 }
 0x476   : > { %v12166_v15 = vadd.f32 %v8776_v49, %v12089_v54  ;;  %v8779_v29 = vadd.f32 %v8778_v22, %v8777_v26 }
 0x478   : > { %v12169_v38 = vadd.f32 %v8779_v29, %v12099_v53 }
 0x47a   : > { %v8780_v23 = vpop.f32.mrb[12].mxu0 }
 0x47b   : > { %v8781_v28 = vpop.f32.mrb[13].mxu0 }
 0x47c   : > { %v8782_v17 = vadd.f32 %v8781_v28, %v8780_v23  ;;  %v8783_v32 = vpop.f32.mrb[14].mxu0 }
 0x47d   : > { %v8784_v6 = vpop.f32.mrb[15].mxu0 }
 0x47e   : > { %v12172_v3 = vadd.f32 %v8782_v17, %v12109_v20  ;;  %v8785_v55 = vadd.f32 %v8784_v6, %v8783_v32 }
 0x480   : > { %v12175_v14 = vadd.f32 %v8785_v55, %v12119_v61 }
 0x481   : > { %v8818_v51 = vpop.f32.mrb[176].mxu1 }
 0x482   : > { %v8819_v16 = vpop.f32.mrb[177].mxu1 }
 0x483   : > { %v8820_v54 = vadd.f32 %v8819_v16, %v8818_v51  ;;  %v8821_v58 = vpop.f32.mrb[178].mxu1 }
 0x484   : > { %v8822_v48 = vpop.f32.mrb[179].mxu1 }
 0x485   : > { %v8823_v30 = vadd.f32 %v8822_v48, %v8821_v58  ;;  %v9478_v53 = vadd.f32 %v12130_v0, %v8820_v54 }
 0x487   : > { %v12179_v18 = vadd.f32 %v12133_v25, %v8823_v30 }
 0x489   : > { %v8824_v7 = vpop.f32.mrb[180].mxu1 }
 0x48a   : > { %v8825_v4 = vpop.f32.mrb[181].mxu1 }
 0x48b   : > { %v8826_v45 = vadd.f32 %v8825_v4, %v8824_v7  ;;  %v8827_v20 = vpop.f32.mrb[182].mxu1 }
 0x48c   : > { %v8828_v41 = vpop.f32.mrb[183].mxu1 }
 0x48d   : > { %v8829_v5 = vadd.f32 %v8828_v41, %v8827_v20  ;;  %v9475_v61 = vadd.f32 %v12136_v35, %v8826_v45  ;;  %v12342_v20 = vld [vmem:[#allocation12_spill] sm:$0xff] }
 0x48e   : > { %v6547_v41 = vunpack.c.l.bf16 %v12342_v20 }
 0x48f   : > { %v9481_v34 = vadd.f32 %v12139_v33, %v8829_v5 }
 0x491   : > { %v8830_v47 = vpop.f32.mrb[184].mxu1 }
 0x492   : > { %v8831_v43 = vpop.f32.mrb[185].mxu1 }
 0x493   : > { %v8832_v2 = vadd.f32 %v8831_v43, %v8830_v47  ;;  %v8833_v21 = vpop.f32.mrb[186].mxu1 }
 0x494   : > { %v8834_v40 = vpop.f32.mrb[187].mxu1 }
 0x495   : > { %v8835_v1 = vadd.f32 %v8834_v40, %v8833_v21  ;;  %v12184_v0 = vadd.f32 %v12142_v42, %v8832_v2  ;;  %v12343_v2 = vld [vmem:[#allocation13_spill] sm:$0xff] }
 0x497   : > { %v12187_v25 = vadd.f32 %v12145_v12, %v8835_v1 }
 0x499   : > { %v8836_v59 = vpop.f32.mrb[188].mxu1 }
 0x49a   : > { %v8837_v57 = vpop.f32.mrb[189].mxu1 }
 0x49b   : > { %v8838_v63 = vadd.f32 %v8837_v57, %v8836_v59  ;;  %v8839_v13 = vpop.f32.mrb[190].mxu1 }
 0x49c   : > { %v8840_v10 = vpop.f32.mrb[191].mxu1 }
 0x49d   : > { %v8841_v35 = vadd.f32 %v8840_v10, %v8839_v13  ;;  %v9487_v33 = vadd.f32 %v12148_v24, %v8838_v63 }
 0x49f   : > { %v12191_v37 = vadd.f32 %v12151_v11, %v8841_v35 }
 0x4a1   : > { %v8842_v36 = vpop.f32.mrb[192].mxu1 }
 0x4a2   : > { %v8843_v60 = vpop.f32.mrb[193].mxu1 }
 0x4a3   : > { %v8844_v46 = vadd.f32 %v8843_v60, %v8842_v36  ;;  %v8845_v8 = vpop.f32.mrb[194].mxu1 }
 0x4a4   : > { %v8846_v42 = vpop.f32.mrb[195].mxu1 }
 0x4a5   : > { %v8847_v62 = vadd.f32 %v8846_v42, %v8845_v8  ;;  %v12194_v12 = vadd.f32 %v12154_v50, %v8844_v46 }
 0x4a7   : > { %v12197_v39 = vadd.f32 %v12157_v19, %v8847_v62  ;;  %v12344_v62 = vld [vmem:[#allocation14_spill] sm:$0xff] }
 0x4a9   : > { %v8848_v52 = vpop.f32.mrb[196].mxu1 }
 0x4aa   : > { %v8849_v44 = vpop.f32.mrb[197].mxu1 }
 0x4ab   : > { %v8850_v9 = vadd.f32 %v8849_v44, %v8848_v52  ;;  %v8851_v49 = vpop.f32.mrb[198].mxu1  ;;  %v6567_v52 = vunpack.c.l.bf16 %v12344_v62 }
 0x4ac   : > { %v8852_v24 = vpop.f32.mrb[199].mxu1 }
 0x4ad   : > { %v8853_v26 = vadd.f32 %v8852_v24, %v8851_v49  ;;  %v12200_v11 = vadd.f32 %v12160_v31, %v8850_v9  ;;  %v12345_v24 = vld [vmem:[#allocation15_spill] sm:$0xff] }
 0x4af   : > { %v12203_v22 = vadd.f32 %v12163_v27, %v8853_v26 }
 0x4b1   : > { %v8854_v29 = vpop.f32.mrb[200].mxu1 }
 0x4b2   : > { %v8855_v23 = vpop.f32.mrb[201].mxu1 }
 0x4b3   : > { %v8856_v28 = vadd.f32 %v8855_v23, %v8854_v29  ;;  %v8857_v50 = vpop.f32.mrb[202].mxu1  ;;  %v6568_v23 = vunpack.c.h.bf16 %v12344_v62 }
 0x4b4   : > { %v8858_v17 = vpop.f32.mrb[203].mxu1 }
 0x4b5   : > { %v8859_v32 = vadd.f32 %v8858_v17, %v8857_v50  ;;  %v12206_v19 = vadd.f32 %v12166_v15, %v8856_v28 }
 0x4b7   : > { %v12209_v6 = vadd.f32 %v12169_v38, %v8859_v32 }
 0x4b9   : > { %v8860_v55 = vpop.f32.mrb[204].mxu1 }
 0x4ba   : > { %v8861_v51 = vpop.f32.mrb[205].mxu1 }
 0x4bb   : > { %v8862_v16 = vadd.f32 %v8861_v51, %v8860_v55  ;;  %v8863_v31 = vpop.f32.mrb[206].mxu1 }
 0x4bc   : > { %v8864_v54 = vpop.f32.mrb[207].mxu1 }
 0x4bd   : > { %v8865_v58 = vadd.f32 %v8864_v54, %v8863_v31  ;;  %v12212_v27 = vadd.f32 %v12172_v3, %v8862_v16  ;;  %v6537_v3 = vunpack.c.l.bf16 %v12343_v2 }
 0x4bf   : > { %v12215_v48 = vadd.f32 %v12175_v14, %v8865_v58 }
 0x4c1   : > { %v9316_v30 = vpop.f32.mrb[160].mxu1 }
 0x4c2   : > { %v9476_v7 = vadd.f32 %v9475_v61, %v9316_v30  ;;  %v6434_v4 = vpop.f32.mrb[161].mxu1 }
 0x4c3   : > { %v9479_v15 = vadd.f32 %v9478_v53, %v6434_v4  ;;  %v9317_v45 = vpop.f32.mrb[162].mxu1  ;;  %v6548_v53 = vunpack.c.h.bf16 %v12342_v20 }
 0x4c4   : > { %v6522_v38 = vadd.f32 %v9476_v7, %v12041_v56  ;;  %v9482_v5 = vadd.f32 %v9481_v34, %v9317_v45  ;;  %v6437_v47 = vpop.f32.mrb[163].mxu1  ;;  %v6538_v34 = vunpack.c.h.bf16 %v12343_v2 }
 0x4c5   : > { %v6520_v43 = vadd.f32 %v9479_v15, %v12041_v56  ;;  %v9485_v21 = vadd.f32 %v12179_v18, %v6437_v47  ;;  %v12346_v15 = vld [vmem:[#allocation16_spill] sm:$0xff] }
 0x4c6   : > { %v6549_v14 = vadd.f32 %v6547_v41, %v6522_v38  ;;  %v6523_v61 = vadd.f32 %v9482_v5, %v12041_v56  ;;  %v6587_v45 = vunpack.c.l.bf16 %v12346_v15  ;;  %v12347_v5 = vld [vmem:[#allocation17_spill] sm:$0xff]  ;;  %v6588_v2 = vunpack.c.h.bf16 %v12346_v15 }
 0x4c7   : > { %v6539_v40 = vadd.f32 %v6537_v3, %v6520_v43  ;;  %v6521_v1 = vadd.f32 %v9485_v21, %v12041_v56 }
 0x4c8   : > { %v6551_v59 = vmax.f32 %v6549_v14, 0.0  ;;  %v6550_v57 = vadd.f32 %v6548_v53, %v6523_v61 }
 0x4c9   : > { %v6541_v63 = vmax.f32 %v6539_v40, 0.0  ;;  %v6540_v13 = vadd.f32 %v6538_v34, %v6521_v1  ;;  %v9320_v10 = vpop.f32.mrb[164].mxu1 }
 0x4ca   : > { %7228 = vst [vmem:[%s12061_s19 + $0x90] sm:$0xff] %v6551_v59  ;;  %v6552_v18 = vmax.f32 %v6550_v57, 0.0  ;;  %v9488_v35 = vadd.f32 %v9487_v33, %v9320_v10  ;;  %v6450_v36 = vpop.f32.mrb[165].mxu1  ;;  %v6557_v33 = vunpack.c.l.bf16 %v12345_v24 }
 0x4cb   : > { %7226 = vst [vmem:[%s12061_s19 + $0x80] sm:$0xff] %v6541_v63  ;;  %v6542_v60 = vmax.f32 %v6540_v13, 0.0  ;;  %v9491_v46 = vadd.f32 %v12184_v0, %v6450_v36  ;;  %v9321_v8 = vpop.f32.mrb[166].mxu1 }
 0x4cc   : > { %7229 = vst [vmem:[%s12061_s19 + $0x98] sm:$0xff] %v6552_v18  ;;  %v6526_v42 = vadd.f32 %v9488_v35, %v12041_v56  ;;  %v9494_v44 = vadd.f32 %v12191_v37, %v9321_v8  ;;  %v6453_v9 = vpop.f32.mrb[167].mxu1  ;;  %v6558_v37 = vunpack.c.h.bf16 %v12345_v24  ;;  %v12348_v18 = vld [vmem:[#allocation18_spill] sm:$0xff] }
 0x4cd   : > { %7227 = vst [vmem:[%s12061_s19 + $0x88] sm:$0xff] %v6542_v60  ;;  %v6524_v49 = vadd.f32 %v9491_v46, %v12041_v56  ;;  %v9497_v26 = vadd.f32 %v12187_v25, %v6453_v9  ;;  %v6607_v35 = vunpack.c.l.bf16 %v12348_v18 }
 0x4ce   : > { %v6569_v29 = vadd.f32 %v6567_v52, %v6526_v42  ;;  %v6527_v0 = vadd.f32 %v9494_v44, %v12041_v56  ;;  %v6608_v52 = vunpack.c.h.bf16 %v12348_v18 }
 0x4cf   : > { %v6559_v28 = vadd.f32 %v6557_v33, %v6524_v49  ;;  %v6525_v50 = vadd.f32 %v9497_v26, %v12041_v56 }
 0x4d0   : > { %v6571_v17 = vmax.f32 %v6569_v29, 0.0  ;;  %v6570_v32 = vadd.f32 %v6568_v23, %v6527_v0 }
 0x4d1   : > { %v6561_v55 = vmax.f32 %v6559_v28, 0.0  ;;  %v6560_v51 = vadd.f32 %v6558_v37, %v6525_v50  ;;  %v9324_v16 = vpop.f32.mrb[168].mxu1 }
 0x4d2   : > { %7232 = vst [vmem:[%s12061_s19 + $0xb0] sm:$0xff] %v6571_v17  ;;  %v6572_v25 = vmax.f32 %v6570_v32, 0.0  ;;  %v9500_v31 = vadd.f32 %v12200_v11, %v9324_v16  ;;  %v6466_v54 = vpop.f32.mrb[169].mxu1  ;;  %v6577_v11 = vunpack.c.l.bf16 %v12347_v5 }
 0x4d3   : > { %7230 = vst [vmem:[%s12061_s19 + $0xa0] sm:$0xff] %v6561_v55  ;;  %v6562_v58 = vmax.f32 %v6560_v51, 0.0  ;;  %v9503_v30 = vadd.f32 %v12194_v12, %v6466_v54  ;;  %v9325_v7 = vpop.f32.mrb[170].mxu1 }
 0x4d4   : > { %7233 = vst [vmem:[%s12061_s19 + $0xb8] sm:$0xff] %v6572_v25  ;;  %v6530_v4 = vadd.f32 %v9500_v31, %v12041_v56  ;;  %v9506_v38 = vadd.f32 %v12203_v22, %v9325_v7  ;;  %v6469_v20 = vpop.f32.mrb[171].mxu1  ;;  %v6578_v22 = vunpack.c.h.bf16 %v12347_v5 }
 0x4d5   : > { %7231 = vst [vmem:[%s12061_s19 + $0xa8] sm:$0xff] %v6562_v58  ;;  %v6528_v41 = vadd.f32 %v9503_v30, %v12041_v56  ;;  %v9509_v47 = vadd.f32 %v12197_v39, %v6469_v20 }
 0x4d6   : > { %v6589_v43 = vadd.f32 %v6587_v45, %v6530_v4  ;;  %v6531_v12 = vadd.f32 %v9506_v38, %v12041_v56 }
 0x4d7   : > { %v6579_v3 = vadd.f32 %v6577_v11, %v6528_v41  ;;  %v6529_v21 = vadd.f32 %v9509_v47, %v12041_v56 }
 0x4d8   : > { %v6591_v14 = vmax.f32 %v6589_v43, 0.0  ;;  %v6590_v61 = vadd.f32 %v6588_v2, %v6531_v12 }
 0x4d9   : > { %v6581_v53 = vmax.f32 %v6579_v3, 0.0  ;;  %v6580_v40 = vadd.f32 %v6578_v22, %v6529_v21  ;;  %v9328_v1 = vpop.f32.mrb[172].mxu1 }
 0x4da   : > { %7236 = vst [vmem:[%s12061_s19 + $0xd0] sm:$0xff] %v6591_v14  ;;  %v6592_v39 = vmax.f32 %v6590_v61, 0.0  ;;  %v9512_v34 = vadd.f32 %v12212_v27, %v9328_v1  ;;  %v6482_v59 = vpop.f32.mrb[173].mxu1  ;;  %v12349_v27 = vld [vmem:[#allocation19_spill] sm:$0xff] }
 0x4db   : > { %7234 = vst [vmem:[%s12061_s19 + $0xc0] sm:$0xff] %v6581_v53  ;;  %v6582_v57 = vmax.f32 %v6580_v40, 0.0  ;;  %v9515_v63 = vadd.f32 %v12206_v19, %v6482_v59  ;;  %v9329_v13 = vpop.f32.mrb[174].mxu1  ;;  %v6597_v8 = vunpack.c.l.bf16 %v12349_v27  ;;  %v6598_v9 = vunpack.c.h.bf16 %v12349_v27 }
 0x4dc   : > { %7237 = vst [vmem:[%s12061_s19 + $0xd8] sm:$0xff] %v6592_v39  ;;  %v6534_v10 = vadd.f32 %v9512_v34, %v12041_v56  ;;  %v9518_v36 = vadd.f32 %v12215_v48, %v9329_v13  ;;  %v6485_v60 = vpop.f32.mrb[175].mxu1 }
 0x4dd   : > { %7235 = vst [vmem:[%s12061_s19 + $0xc8] sm:$0xff] %v6582_v57  ;;  %v6532_v46 = vadd.f32 %v9515_v63, %v12041_v56  ;;  %v9521_v42 = vadd.f32 %v12209_v6, %v6485_v60 }
 0x4de   : > { %v6609_v19 = vadd.f32 %v6607_v35, %v6534_v10  ;;  %v6535_v62 = vadd.f32 %v9518_v36, %v12041_v56 }
 0x4df   : > { %v6599_v44 = vadd.f32 %v6597_v8, %v6532_v46  ;;  %v6533_v48 = vadd.f32 %v9521_v42, %v12041_v56 }
 0x4e0   : > { %v6611_v49 = vmax.f32 %v6609_v19, 0.0  ;;  %v6610_v24 = vadd.f32 %v6608_v52, %v6535_v62 }
 0x4e1   : > { %v6601_v33 = vmax.f32 %v6599_v44, 0.0  ;;  %v6600_v26 = vadd.f32 %v6598_v9, %v6533_v48 }
 0x4e2   : > { %7240 = vst [vmem:[%s12061_s19 + $0xf0] sm:$0xff] %v6611_v49  ;;  %v6612_v29 = vmax.f32 %v6610_v24, 0.0 }
 0x4e3   : > { %7238 = vst [vmem:[%s12061_s19 + $0xe0] sm:$0xff] %v6601_v33  ;;  %v6602_v0 = vmax.f32 %v6600_v26, 0.0 }
 0x4e4   : > { %7241 = vst [vmem:[%s12061_s19 + $0xf8] sm:$0xff] %v6612_v29 }
 0x4e5   : > { %7239 = vst [vmem:[%s12061_s19 + $0xe8] sm:$0xff] %v6602_v0 }
 0x4e6 PF: > { %s18_s24 = sadd.s32 1, %s10031_s24  }
 0x4e7   : > { %p15_p3 = scmp.ge.s32.totalorder %s18_s24, 4  }
 0x4e9   :  { %17 = sbr.rel (!%p15_p3) target bundleno = 1 (0x1), region = 102 }
 0x4f0   :  { %6637 = vsyncpa [#allocation6], 1 }
 0x4f1   :  { %6639 = vsyncpa [#allocation6 + $0x1], 1 }

</bundles_post_ra>
